<compile_context>
chip_gen: v7x
topology: tpu7x:2x2x1
jax: 0.10.0
libtpu: 0.0.40
codegen_flags: <defaults>
</compile_context>

<pallas_src>
import jax
import jax.numpy as jnp
from jax import lax
from jax.experimental import pallas as pl
from jax.experimental.pallas import tpu as pltpu


def _round_up(x, m):
    return (x + m - 1) // m * m


# ----------------------------------------------------------------------------
# Generic kernel: masked bidirectional GRU + tanh attention + weighted pooling
# ----------------------------------------------------------------------------
def _bigru_attention_kernel(
    x_ref,        # (T, B, Din)  bf16  input sequences (time-major)
    lenc_ref,     # (B, 1)       i32   valid timesteps (column layout)
    lenr_ref,     # (1, B)       i32   valid timesteps (row layout)
    wih_f_ref,    # (Din, 3H)    bf16  forward GRU input weights  [r|z|n]
    wih_b_ref,    # (Din, 3H)    bf16  backward GRU input weights
    whh_f_ref,    # (H,   3H)    f32   forward GRU hidden weights
    whh_b_ref,    # (H,   3H)    f32
    bih_f_ref,    # (1,   3H)    f32
    bih_b_ref,    # (1,   3H)    f32
    bhh_f_ref,    # (1,   3H)    f32
    bhh_b_ref,    # (1,   3H)    f32
    watt_f_ref,   # (H, A)       f32   attention projection (fwd half)
    watt_b_ref,   # (H, A)       f32   attention projection (bwd half)
    batt_ref,     # (1, A)       f32
    ctx_ref,      # (1, A)       f32   context vector (row)
    embf_ref,     # (B, H)       f32   out: pooled embedding, forward half
    embb_ref,     # (B, H)       f32   out: pooled embedding, backward half
    alphas_ref,   # (T, B)       f32   out: attention weights (time-major)
    gxf_scr,      # (T, B, 3H)   f32   scratch: hoisted input projections (fwd)
    gxb_scr,      # (T, B, 3H)   f32   scratch: hoisted input projections (bwd)
    outf_scr,     # (T, B, H)    f32   scratch: forward GRU outputs
    outb_scr,     # (T, B, H)    f32   scratch: backward GRU outputs
):
    T, B, Din = x_ref.shape
    H = whh_f_ref.shape[0]

    # ---- hoisted input projections: one large MXU matmul per direction ----
    x_flat = x_ref[...].reshape(T * B, Din)                       # bf16
    gxf = jnp.dot(x_flat, wih_f_ref[...],
                  preferred_element_type=jnp.float32) + bih_f_ref[...]
    gxb = jnp.dot(x_flat, wih_b_ref[...],
                  preferred_element_type=jnp.float32) + bih_b_ref[...]
    gxf_scr[...] = gxf.reshape(T, B, 3 * H)
    gxb_scr[...] = gxb.reshape(T, B, 3 * H)

    lens_col = lenc_ref[...]                                      # (B, 1) i32
    whh_f = whh_f_ref[...]
    whh_b = whh_b_ref[...]
    bhh_f = bhh_f_ref[...]
    bhh_b = bhh_b_ref[...]

    def gru_step(gx_t, h, whh, bhh):
        gh = jnp.dot(h, whh, preferred_element_type=jnp.float32) + bhh
        r = jax.nn.sigmoid(gx_t[:, 0:H] + gh[:, 0:H])
        z = jax.nn.sigmoid(gx_t[:, H:2 * H] + gh[:, H:2 * H])
        n = jnp.tanh(gx_t[:, 2 * H:3 * H] + r * gh[:, 2 * H:3 * H])
        return (1.0 - z) * n + z * h

    h0 = jnp.zeros((B, H), dtype=jnp.float32)
    unroll = bool(T <= 32)

    # Forward direction.  No per-step mask is needed: states at valid
    # timesteps t < len only depend on x[0..t], and invalid timesteps are
    # zeroed out later by the masked softmax (alpha = 0).
    def fwd_body(t, h):
        h = gru_step(gxf_scr[t], h, whh_f, bhh_f)
        outf_scr[t] = h
        return h

    lax.fori_loop(0, T, fwd_body, h0, unroll=unroll)

    # Backward direction: hidden state stays at zero until t < length so the
    # recurrence effectively starts at t = len - 1 (PackedSequence semantics).
    def bwd_body(i, h):
        t = T - 1 - i
        h_new = gru_step(gxb_scr[t], h, whh_b, bhh_b)
        h = jnp.where(lens_col > t, h_new, h)
        outb_scr[t] = h
        return h

    lax.fori_loop(0, T, bwd_body, h0, unroll=unroll)

    # ---- attention scores (split weights; no lane-axis concatenate) ----
    out_f = outf_scr[...]                                         # (T, B, H)
    out_b = outb_scr[...]                                         # (T, B, H)
    flat_f = out_f.reshape(T * B, H)
    flat_b = out_b.reshape(T * B, H)
    att = jnp.tanh(
        jnp.dot(flat_f, watt_f_ref[...], preferred_element_type=jnp.float32)
        + jnp.dot(flat_b, watt_b_ref[...], preferred_element_type=jnp.float32)
        + batt_ref[...])                                          # (T*B, A)
    # Degenerate (A x 1) context matmul replaced by VPU multiply + reduce.
    scores = jnp.sum(att.reshape(T, B, A := watt_f_ref.shape[1]) * ctx_ref[...],
                     axis=-1)                                     # (T, B)

    # ---- masked softmax over time (lane-dense: B on lanes) ----
    lens_row = lenr_ref[...]                                      # (1, B)
    t_iota = lax.broadcasted_iota(jnp.int32, (T, B), 0)
    mask = t_iota < lens_row                                      # (T, B)
    masked = jnp.where(mask, scores, jnp.float32(-1e30))
    m = jnp.max(masked, axis=0, keepdims=True)                    # (1, B)
    e = jnp.where(mask, jnp.exp(masked - m), jnp.float32(0.0))    # (T, B)
    denom = jnp.sum(e, axis=0, keepdims=True)                     # (1, B)
    denom = jnp.where(denom > 0.0, denom, jnp.float32(1.0))
    alphas = e / denom                                            # (T, B)
    alphas_ref[...] = alphas

    # ---- attention-weighted pooling (two halves; no concatenate) ----
    a3 = alphas[:, :, None]                                       # (T, B, 1)
    embf_ref[...] = jnp.sum(out_f * a3, axis=0)                   # (B, H)
    embb_ref[...] = jnp.sum(out_b * a3, axis=0)                   # (B, H)


# ----------------------------------------------------------------------------
# Wrapper: one pallas_call per hierarchy level
# ----------------------------------------------------------------------------
def bigru_attention(x, lengths, p, *, max_block_b=128):
    """x: (N, T, Din) f32, lengths: (N,) int -> ((N, 2H) f32, (N, T) f32)."""
    N, T, Din = x.shape
    H = p["whh_f"].shape[0]
    A = p["watt_f"].shape[1]

    # Pad the row dimension so block_b reaches up to 128 rows per grid step.
    N8 = _round_up(N, 8)
    block_b = min(max_block_b, N8)
    N_pad = _round_up(N8, block_b)

    x_p = jnp.zeros((N_pad, T, Din), jnp.float32).at[:N].set(
        x.astype(jnp.float32))
    len_p = jnp.zeros((N_pad,), jnp.int32).at[:N].set(lengths.astype(jnp.int32))

    # Time-major input; bf16 operands for the big hoisted MXU matmul.
    x_tm = jnp.transpose(x_p, (1, 0, 2)).astype(jnp.bfloat16)     # (T, Np, Din)
    lens_col = len_p.reshape(N_pad, 1)
    lens_row = len_p.reshape(1, N_pad)

    full2 = lambda i: (0, 0)

    embf, embb, alphas_tm = pl.pallas_call(
        _bigru_attention_kernel,
        out_shape=(
            jax.ShapeDtypeStruct((N_pad, H), jnp.float32),
            jax.ShapeDtypeStruct((N_pad, H), jnp.float32),
            jax.ShapeDtypeStruct((T, N_pad), jnp.float32),
        ),
        grid_spec=pltpu.PrefetchScalarGridSpec(
            num_scalar_prefetch=0,
            grid=(N_pad // block_b,),
            in_specs=[
                pl.BlockSpec((T, block_b, Din), lambda i: (0, i, 0)),
                pl.BlockSpec((block_b, 1), lambda i: (i, 0)),
                pl.BlockSpec((1, block_b), lambda i: (0, i)),
                pl.BlockSpec((Din, 3 * H), full2),   # wih_f (bf16)
                pl.BlockSpec((Din, 3 * H), full2),   # wih_b (bf16)
                pl.BlockSpec((H, 3 * H), full2),     # whh_f
                pl.BlockSpec((H, 3 * H), full2),     # whh_b
                pl.BlockSpec((1, 3 * H), full2),     # bih_f
                pl.BlockSpec((1, 3 * H), full2),     # bih_b
                pl.BlockSpec((1, 3 * H), full2),     # bhh_f
                pl.BlockSpec((1, 3 * H), full2),     # bhh_b
                pl.BlockSpec((H, A), full2),         # watt_f
                pl.BlockSpec((H, A), full2),         # watt_b
                pl.BlockSpec((1, A), full2),         # batt
                pl.BlockSpec((1, A), full2),         # ctx_row
            ],
            out_specs=[
                pl.BlockSpec((block_b, H), lambda i: (i, 0)),
                pl.BlockSpec((block_b, H), lambda i: (i, 0)),
                pl.BlockSpec((T, block_b), lambda i: (0, i)),
            ],
            scratch_shapes=[
                pltpu.VMEM((T, block_b, 3 * H), jnp.float32),
                pltpu.VMEM((T, block_b, 3 * H), jnp.float32),
                pltpu.VMEM((T, block_b, H), jnp.float32),
                pltpu.VMEM((T, block_b, H), jnp.float32),
            ],
        ),
        compiler_params=pltpu.CompilerParams(
            dimension_semantics=("parallel",),
            vmem_limit_bytes=48 * 1024 * 1024,   # fits v7x's 64 MiB per TC
        ),
    )(x_tm, lens_col, lens_row,
      p["wih_f"].astype(jnp.bfloat16), p["wih_b"].astype(jnp.bfloat16),
      p["whh_f"], p["whh_b"],
      p["bih_f"], p["bih_b"], p["bhh_f"], p["bhh_b"],
      p["watt_f"], p["watt_b"], p["batt"], p["ctx_row"])

    emb = jnp.concatenate([embf[:N], embb[:N]], axis=-1)          # (N, 2H)
    alphas = jnp.transpose(alphas_tm, (1, 0))[:N]                 # (N, T)
    return emb, alphas


def sentence_attention_forward(params, documents, sentences_per_document,
                               words_per_sentence):
    """Mirrors SentenceAttention.forward (inference).

    documents:               (n_docs, sent_pad, word_pad) int32 token ids
    sentences_per_document:  (n_docs,)                    int32
    words_per_sentence:      (n_docs, sent_pad)           int32
    returns: doc_emb (n_docs, 2*Hs), word_alphas (n_docs, sent_pad, word_pad),
             sentence_alphas (n_docs, sent_pad)
    """
    n_docs, sent_pad, word_pad = documents.shape

    # embedding lookup (plain-JAX glue)
    words = params["embedding"][documents]                  # (D, S, W, E) f32

    # zero word-lengths of padded sentence slots (emulates packing by doc len)
    sent_idx = jnp.arange(sent_pad, dtype=jnp.int32)[None, :]
    valid_sent = sent_idx < sentences_per_document[:, None]
    eff_wps = jnp.where(valid_sent, words_per_sentence, 0)  # (D, S)

    # word level: each (doc, sentence) slot is one sequence
    x_words = words.reshape(n_docs * sent_pad, word_pad, -1)
    wlens = eff_wps.reshape(n_docs * sent_pad)
    sent_emb, word_alphas = bigru_attention(x_words, wlens, params["word"])
    word_alphas = word_alphas.reshape(n_docs, sent_pad, word_pad)

    # sentence level: each document is one sequence of sentence embeddings
    sent_emb = sent_emb.reshape(n_docs, sent_pad, -1)
    doc_emb, sentence_alphas = bigru_attention(
        sent_emb, sentences_per_document, params["sent"])

    return doc_emb, word_alphas, sentence_alphas


# ----------------------------------------------------------------------------
# Deterministic parameter initialization
# ----------------------------------------------------------------------------
def _make_level_params(key, din, hidden, att, scale=0.1):
    ks = jax.random.split(key, 12)
    r = lambda k, s: jax.random.normal(k, s, dtype=jnp.float32) * scale
    return {
        "wih_f": r(ks[0], (din, 3 * hidden)),
        "whh_f": r(ks[1], (hidden, 3 * hidden)),
        "bih_f": r(ks[2], (1, 3 * hidden)),
        "bhh_f": r(ks[3], (1, 3 * hidden)),
        "wih_b": r(ks[4], (din, 3 * hidden)),
        "whh_b": r(ks[5], (hidden, 3 * hidden)),
        "bih_b": r(ks[6], (1, 3 * hidden)),
        "bhh_b": r(ks[7], (1, 3 * hidden)),
        # attention projection, split into forward/backward halves
        "watt_f": r(ks[8], (hidden, att)),
        "watt_b": r(ks[9], (hidden, att)),
        "batt": r(ks[10], (1, att)),
        "ctx_row": r(ks[11], (1, att)),
    }


def init_params(key, vocab, emb_size, word_rnn_size, sentence_rnn_size,
                word_att_size, sentence_att_size):
    k_emb, k_word, k_sent = jax.random.split(key, 3)
    return {
        "embedding": jax.random.normal(k_emb, (vocab, emb_size),
                                       dtype=jnp.float32) * 0.1,
        "word": _make_level_params(k_word, emb_size, word_rnn_size,
                                   word_att_size),
        "sent": _make_level_params(k_sent, 2 * word_rnn_size,
                                   sentence_rnn_size, sentence_att_size),
    }


# ----------------------------------------------------------------------------
if __name__ == "__main__":
    key = jax.random.PRNGKey(0)

    # small, module-consistent shapes
    n_docs, sent_pad, word_pad = 2, 4, 8
    vocab, emb_size = 50, 32
    word_rnn_size, sentence_rnn_size = 16, 16
    word_att_size, sentence_att_size = 16, 16

    k_p, k_doc, k_wps = jax.random.split(key, 3)
    params = init_params(k_p, vocab, emb_size, word_rnn_size,
                         sentence_rnn_size, word_att_size, sentence_att_size)

    documents = jax.random.randint(k_doc, (n_docs, sent_pad, word_pad),
                                   0, vocab, dtype=jnp.int32)
    sentences_per_document = jnp.array([4, 3], dtype=jnp.int32)
    words_per_sentence = jax.random.randint(k_wps, (n_docs, sent_pad),
                                            1, word_pad + 1, dtype=jnp.int32)

    doc_emb, word_alphas, sentence_alphas = sentence_attention_forward(
        params, documents, sentences_per_document, words_per_sentence)
    (doc_emb, word_alphas, sentence_alphas) = jax.block_until_ready(
        (doc_emb, word_alphas, sentence_alphas))

    # light sanity checks
    assert doc_emb.shape == (n_docs, 2 * sentence_rnn_size)
    assert word_alphas.shape == (n_docs, sent_pad, word_pad)
    assert sentence_alphas.shape == (n_docs, sent_pad)
    assert bool(jnp.all(jnp.isfinite(doc_emb)))
    assert bool(jnp.all(jnp.abs(jnp.sum(sentence_alphas, axis=1) - 1.0) < 1e-4))

    print("KERNEL_OK")
</pallas_src>

<mosaic_0001>
module attributes {stable_mosaic.version = 11 : i64} {
  func.func @_bigru_attention_kernel(%arg0: i32, %arg1: memref<8x8x32xbf16, #tpu.memory_space<vmem>>, %arg2: memref<8x1xi32, #tpu.memory_space<vmem>>, %arg3: memref<1x8xi32, #tpu.memory_space<vmem>>, %arg4: memref<32x48xbf16, #tpu.memory_space<vmem>>, %arg5: memref<32x48xbf16, #tpu.memory_space<vmem>>, %arg6: memref<16x48xf32, #tpu.memory_space<vmem>>, %arg7: memref<16x48xf32, #tpu.memory_space<vmem>>, %arg8: memref<1x48xf32, #tpu.memory_space<vmem>>, %arg9: memref<1x48xf32, #tpu.memory_space<vmem>>, %arg10: memref<1x48xf32, #tpu.memory_space<vmem>>, %arg11: memref<1x48xf32, #tpu.memory_space<vmem>>, %arg12: memref<16x16xf32, #tpu.memory_space<vmem>>, %arg13: memref<16x16xf32, #tpu.memory_space<vmem>>, %arg14: memref<1x16xf32, #tpu.memory_space<vmem>>, %arg15: memref<1x16xf32, #tpu.memory_space<vmem>>, %arg16: memref<8x16xf32, #tpu.memory_space<vmem>>, %arg17: memref<8x16xf32, #tpu.memory_space<vmem>>, %arg18: memref<8x8xf32, #tpu.memory_space<vmem>>, %arg19: memref<8x8x48xf32, #tpu.memory_space<vmem>>, %arg20: memref<8x8x48xf32, #tpu.memory_space<vmem>>, %arg21: memref<8x8x16xf32, #tpu.memory_space<vmem>>, %arg22: memref<8x8x16xf32, #tpu.memory_space<vmem>>) attributes {dimension_semantics = [#tpu.dimension_semantics<parallel>], iteration_bounds = array<i64: 1>, scalar_prefetch = 0 : i64, scratch_operands = 4 : i64, tpu.core_type = #tpu.core_type<tc>, window_params = [{transform_indices = @transform_0, window_bounds = array<i64: 8, 8, 32>}, {transform_indices = @transform_1, window_bounds = array<i64: 8, 1>}, {transform_indices = @transform_2, window_bounds = array<i64: 1, 8>}, {pipeline_mode = #tpu.pipeline_mode<synchronous>, transform_indices = @transform_3, window_bounds = array<i64: 32, 48>}, {pipeline_mode = #tpu.pipeline_mode<synchronous>, transform_indices = @transform_4, window_bounds = array<i64: 32, 48>}, {pipeline_mode = #tpu.pipeline_mode<synchronous>, transform_indices = @transform_5, window_bounds = array<i64: 16, 48>}, {pipeline_mode = #tpu.pipeline_mode<synchronous>, transform_indices = @transform_6, window_bounds = array<i64: 16, 48>}, {pipeline_mode = #tpu.pipeline_mode<synchronous>, transform_indices = @transform_7, window_bounds = array<i64: 1, 48>}, {pipeline_mode = #tpu.pipeline_mode<synchronous>, transform_indices = @transform_8, window_bounds = array<i64: 1, 48>}, {pipeline_mode = #tpu.pipeline_mode<synchronous>, transform_indices = @transform_9, window_bounds = array<i64: 1, 48>}, {pipeline_mode = #tpu.pipeline_mode<synchronous>, transform_indices = @transform_10, window_bounds = array<i64: 1, 48>}, {pipeline_mode = #tpu.pipeline_mode<synchronous>, transform_indices = @transform_11, window_bounds = array<i64: 16, 16>}, {pipeline_mode = #tpu.pipeline_mode<synchronous>, transform_indices = @transform_12, window_bounds = array<i64: 16, 16>}, {pipeline_mode = #tpu.pipeline_mode<synchronous>, transform_indices = @transform_13, window_bounds = array<i64: 1, 16>}, {pipeline_mode = #tpu.pipeline_mode<synchronous>, transform_indices = @transform_14, window_bounds = array<i64: 1, 16>}, {transform_indices = @transform_15, window_bounds = array<i64: 8, 16>}, {transform_indices = @transform_16, window_bounds = array<i64: 8, 16>}, {transform_indices = @transform_17, window_bounds = array<i64: 8, 8>}]} {
    %c0 = arith.constant 0 : index
    %c0_0 = arith.constant 0 : index
    %c0_1 = arith.constant 0 : index
    %0 = vector.load %arg1[%c0, %c0_0, %c0_1] : memref<8x8x32xbf16, #tpu.memory_space<vmem>>, vector<8x8x32xbf16>
    %1 = vector.shape_cast %0 : vector<8x8x32xbf16> to vector<64x32xbf16>
    %c0_2 = arith.constant 0 : index
    %c0_3 = arith.constant 0 : index
    %2 = vector.load %arg4[%c0_2, %c0_3] : memref<32x48xbf16, #tpu.memory_space<vmem>>, vector<32x48xbf16>
    %cst = arith.constant dense<0.000000e+00> : vector<64x48xf32>
    %3 = tpu.matmul %1, %2, %cst {dimension_numbers = #tpu.dot_dimension_numbers<[1], [0], [0], [1], [0, 0, 1, 1], [], []>} : vector<64x32xbf16>, vector<32x48xbf16>, vector<64x48xf32> -> vector<64x48xf32>
    %c0_4 = arith.constant 0 : index
    %c0_5 = arith.constant 0 : index
    %4 = vector.load %arg8[%c0_4, %c0_5] : memref<1x48xf32, #tpu.memory_space<vmem>>, vector<1x48xf32>
    %5 = vector.broadcast %4 : vector<1x48xf32> to vector<64x48xf32>
    %6 = arith.addf %3, %5 : vector<64x48xf32>
    %c0_6 = arith.constant 0 : index
    %c0_7 = arith.constant 0 : index
    %7 = vector.load %arg5[%c0_6, %c0_7] : memref<32x48xbf16, #tpu.memory_space<vmem>>, vector<32x48xbf16>
    %cst_8 = arith.constant dense<0.000000e+00> : vector<64x48xf32>
    %8 = tpu.matmul %1, %7, %cst_8 {dimension_numbers = #tpu.dot_dimension_numbers<[1], [0], [0], [1], [0, 0, 1, 1], [], []>} : vector<64x32xbf16>, vector<32x48xbf16>, vector<64x48xf32> -> vector<64x48xf32>
    %c0_9 = arith.constant 0 : index
    %c0_10 = arith.constant 0 : index
    %9 = vector.load %arg9[%c0_9, %c0_10] : memref<1x48xf32, #tpu.memory_space<vmem>>, vector<1x48xf32>
    %10 = vector.broadcast %9 : vector<1x48xf32> to vector<64x48xf32>
    %11 = arith.addf %8, %10 : vector<64x48xf32>
    %12 = vector.shape_cast %6 : vector<64x48xf32> to vector<8x8x48xf32>
    %c0_11 = arith.constant 0 : index
    %c0_12 = arith.constant 0 : index
    %c0_13 = arith.constant 0 : index
    %13 = vector.load %arg19[%c0_11, %c0_12, %c0_13] : memref<8x8x48xf32, #tpu.memory_space<vmem>>, vector<8x8x48xf32>
    tpu.vector_store %arg19[%c0_11, %c0_12, %c0_13], %12 {strides = array<i32>} : memref<8x8x48xf32, #tpu.memory_space<vmem>>, vector<8x8x48xf32>,
    %14 = vector.shape_cast %11 : vector<64x48xf32> to vector<8x8x48xf32>
    %c0_14 = arith.constant 0 : index
    %c0_15 = arith.constant 0 : index
    %c0_16 = arith.constant 0 : index
    %15 = vector.load %arg20[%c0_14, %c0_15, %c0_16] : memref<8x8x48xf32, #tpu.memory_space<vmem>>, vector<8x8x48xf32>
    tpu.vector_store %arg20[%c0_14, %c0_15, %c0_16], %14 {strides = array<i32>} : memref<8x8x48xf32, #tpu.memory_space<vmem>>, vector<8x8x48xf32>,
    %c0_17 = arith.constant 0 : index
    %c0_18 = arith.constant 0 : index
    %16 = vector.load %arg2[%c0_17, %c0_18] : memref<8x1xi32, #tpu.memory_space<vmem>>, vector<8x1xi32>
    %c0_19 = arith.constant 0 : index
    %c0_20 = arith.constant 0 : index
    %17 = vector.load %arg6[%c0_19, %c0_20] : memref<16x48xf32, #tpu.memory_space<vmem>>, vector<16x48xf32>
    %c0_21 = arith.constant 0 : index
    %c0_22 = arith.constant 0 : index
    %18 = vector.load %arg7[%c0_21, %c0_22] : memref<16x48xf32, #tpu.memory_space<vmem>>, vector<16x48xf32>
    %c0_23 = arith.constant 0 : index
    %c0_24 = arith.constant 0 : index
    %19 = vector.load %arg10[%c0_23, %c0_24] : memref<1x48xf32, #tpu.memory_space<vmem>>, vector<1x48xf32>
    %c0_25 = arith.constant 0 : index
    %c0_26 = arith.constant 0 : index
    %20 = vector.load %arg11[%c0_25, %c0_26] : memref<1x48xf32, #tpu.memory_space<vmem>>, vector<1x48xf32>
    %cst_27 = arith.constant 0.000000e+00 : f32
    %21 = vector.broadcast %cst_27 : f32 to vector<8x16xf32>
    %c0_i32 = arith.constant 0 : i32
    %22 = arith.index_cast %c0_i32 : i32 to index
    %c0_28 = arith.constant 0 : index
    %c0_29 = arith.constant 0 : index
    %23 = vector.load %arg19[%22, %c0_28, %c0_29] : memref<8x8x48xf32, #tpu.memory_space<vmem>>, vector<1x8x48xf32>
    %24 = vector.shape_cast %23 : vector<1x8x48xf32> to vector<8x48xf32>
    %cst_30 = arith.constant dense<0.000000e+00> : vector<8x48xf32>
    %25 = tpu.matmul %21, %17, %cst_30 {dimension_numbers = #tpu.dot_dimension_numbers<[1], [0], [0], [1], [0, 0, 1, 1], [], []>} : vector<8x16xf32>, vector<16x48xf32>, vector<8x48xf32> -> vector<8x48xf32>
    %26 = vector.broadcast %19 : vector<1x48xf32> to vector<8x48xf32>
    %27 = arith.addf %25, %26 : vector<8x48xf32>
    %28 = vector.extract_strided_slice %24 {offsets = [0, 0], sizes = [8, 16], strides = [1, 1]} : vector<8x48xf32> to vector<8x16xf32>
    %29 = vector.extract_strided_slice %27 {offsets = [0, 0], sizes = [8, 16], strides = [1, 1]} : vector<8x48xf32> to vector<8x16xf32>
    %30 = arith.addf %28, %29 : vector<8x16xf32>
    %31 = arith.negf %30 : vector<8x16xf32>
    %32 = math.exp %31 : vector<8x16xf32>
    %cst_31 = arith.constant 1.000000e+00 : f32
    %33 = vector.broadcast %cst_31 : f32 to vector<8x16xf32>
    %34 = arith.addf %33, %32 : vector<8x16xf32>
    %35 = arith.divf %33, %34 : vector<8x16xf32>
    %36 = vector.extract_strided_slice %24 {offsets = [0, 16], sizes = [8, 16], strides = [1, 1]} : vector<8x48xf32> to vector<8x16xf32>
    %37 = vector.extract_strided_slice %27 {offsets = [0, 16], sizes = [8, 16], strides = [1, 1]} : vector<8x48xf32> to vector<8x16xf32>
    %38 = arith.addf %36, %37 : vector<8x16xf32>
    %39 = arith.negf %38 : vector<8x16xf32>
    %40 = math.exp %39 : vector<8x16xf32>
    %cst_32 = arith.constant 1.000000e+00 : f32
    %41 = vector.broadcast %cst_32 : f32 to vector<8x16xf32>
    %42 = arith.addf %41, %40 : vector<8x16xf32>
    %43 = arith.divf %41, %42 : vector<8x16xf32>
    %44 = vector.extract_strided_slice %24 {offsets = [0, 32], sizes = [8, 16], strides = [1, 1]} : vector<8x48xf32> to vector<8x16xf32>
    %45 = vector.extract_strided_slice %27 {offsets = [0, 32], sizes = [8, 16], strides = [1, 1]} : vector<8x48xf32> to vector<8x16xf32>
    %46 = arith.mulf %35, %45 : vector<8x16xf32>
    %47 = arith.addf %44, %46 : vector<8x16xf32>
    %48 = math.tanh %47 : vector<8x16xf32>
    %cst_33 = arith.constant 1.000000e+00 : f32
    %49 = vector.broadcast %cst_33 : f32 to vector<8x16xf32>
    %50 = arith.subf %49, %43 : vector<8x16xf32>
    %51 = arith.mulf %50, %48 : vector<8x16xf32>
    %52 = arith.mulf %43, %21 : vector<8x16xf32>
    %53 = arith.addf %51, %52 : vector<8x16xf32>
    %54 = arith.index_cast %c0_i32 : i32 to index
    %c0_34 = arith.constant 0 : index
    %c0_35 = arith.constant 0 : index
    %55 = vector.load %arg21[%54, %c0_34, %c0_35] : memref<8x8x16xf32, #tpu.memory_space<vmem>>, vector<1x8x16xf32>
    %56 = vector.shape_cast %55 : vector<1x8x16xf32> to vector<8x16xf32>
    %57 = vector.shape_cast %53 : vector<8x16xf32> to vector<1x8x16xf32>
    tpu.vector_store %arg21[%54, %c0_34, %c0_35], %57 {strides = array<i32>} : memref<8x8x16xf32, #tpu.memory_space<vmem>>, vector<1x8x16xf32>,
    %c1_i32 = arith.constant 1 : i32
    %58 = arith.index_cast %c1_i32 : i32 to index
    %c0_36 = arith.constant 0 : index
    %c0_37 = arith.constant 0 : index
    %59 = vector.load %arg19[%58, %c0_36, %c0_37] : memref<8x8x48xf32, #tpu.memory_space<vmem>>, vector<1x8x48xf32>
    %60 = vector.shape_cast %59 : vector<1x8x48xf32> to vector<8x48xf32>
    %cst_38 = arith.constant dense<0.000000e+00> : vector<8x48xf32>
    %61 = tpu.matmul %53, %17, %cst_38 {dimension_numbers = #tpu.dot_dimension_numbers<[1], [0], [0], [1], [0, 0, 1, 1], [], []>} : vector<8x16xf32>, vector<16x48xf32>, vector<8x48xf32> -> vector<8x48xf32>
    %62 = vector.broadcast %19 : vector<1x48xf32> to vector<8x48xf32>
    %63 = arith.addf %61, %62 : vector<8x48xf32>
    %64 = vector.extract_strided_slice %60 {offsets = [0, 0], sizes = [8, 16], strides = [1, 1]} : vector<8x48xf32> to vector<8x16xf32>
    %65 = vector.extract_strided_slice %63 {offsets = [0, 0], sizes = [8, 16], strides = [1, 1]} : vector<8x48xf32> to vector<8x16xf32>
    %66 = arith.addf %64, %65 : vector<8x16xf32>
    %67 = arith.negf %66 : vector<8x16xf32>
    %68 = math.exp %67 : vector<8x16xf32>
    %cst_39 = arith.constant 1.000000e+00 : f32
    %69 = vector.broadcast %cst_39 : f32 to vector<8x16xf32>
    %70 = arith.addf %69, %68 : vector<8x16xf32>
    %71 = arith.divf %69, %70 : vector<8x16xf32>
    %72 = vector.extract_strided_slice %60 {offsets = [0, 16], sizes = [8, 16], strides = [1, 1]} : vector<8x48xf32> to vector<8x16xf32>
    %73 = vector.extract_strided_slice %63 {offsets = [0, 16], sizes = [8, 16], strides = [1, 1]} : vector<8x48xf32> to vector<8x16xf32>
    %74 = arith.addf %72, %73 : vector<8x16xf32>
    %75 = arith.negf %74 : vector<8x16xf32>
    %76 = math.exp %75 : vector<8x16xf32>
    %cst_40 = arith.constant 1.000000e+00 : f32
    %77 = vector.broadcast %cst_40 : f32 to vector<8x16xf32>
    %78 = arith.addf %77, %76 : vector<8x16xf32>
    %79 = arith.divf %77, %78 : vector<8x16xf32>
    %80 = vector.extract_strided_slice %60 {offsets = [0, 32], sizes = [8, 16], strides = [1, 1]} : vector<8x48xf32> to vector<8x16xf32>
    %81 = vector.extract_strided_slice %63 {offsets = [0, 32], sizes = [8, 16], strides = [1, 1]} : vector<8x48xf32> to vector<8x16xf32>
    %82 = arith.mulf %71, %81 : vector<8x16xf32>
    %83 = arith.addf %80, %82 : vector<8x16xf32>
    %84 = math.tanh %83 : vector<8x16xf32>
    %cst_41 = arith.constant 1.000000e+00 : f32
    %85 = vector.broadcast %cst_41 : f32 to vector<8x16xf32>
    %86 = arith.subf %85, %79 : vector<8x16xf32>
    %87 = arith.mulf %86, %84 : vector<8x16xf32>
    %88 = arith.mulf %79, %53 : vector<8x16xf32>
    %89 = arith.addf %87, %88 : vector<8x16xf32>
    %90 = arith.index_cast %c1_i32 : i32 to index
    %c0_42 = arith.constant 0 : index
    %c0_43 = arith.constant 0 : index
    %91 = vector.load %arg21[%90, %c0_42, %c0_43] : memref<8x8x16xf32, #tpu.memory_space<vmem>>, vector<1x8x16xf32>
    %92 = vector.shape_cast %91 : vector<1x8x16xf32> to vector<8x16xf32>
    %93 = vector.shape_cast %89 : vector<8x16xf32> to vector<1x8x16xf32>
    tpu.vector_store %arg21[%90, %c0_42, %c0_43], %93 {strides = array<i32>} : memref<8x8x16xf32, #tpu.memory_space<vmem>>, vector<1x8x16xf32>,
    %c2_i32 = arith.constant 2 : i32
    %94 = arith.index_cast %c2_i32 : i32 to index
    %c0_44 = arith.constant 0 : index
    %c0_45 = arith.constant 0 : index
    %95 = vector.load %arg19[%94, %c0_44, %c0_45] : memref<8x8x48xf32, #tpu.memory_space<vmem>>, vector<1x8x48xf32>
    %96 = vector.shape_cast %95 : vector<1x8x48xf32> to vector<8x48xf32>
    %cst_46 = arith.constant dense<0.000000e+00> : vector<8x48xf32>
    %97 = tpu.matmul %89, %17, %cst_46 {dimension_numbers = #tpu.dot_dimension_numbers<[1], [0], [0], [1], [0, 0, 1, 1], [], []>} : vector<8x16xf32>, vector<16x48xf32>, vector<8x48xf32> -> vector<8x48xf32>
    %98 = vector.broadcast %19 : vector<1x48xf32> to vector<8x48xf32>
    %99 = arith.addf %97, %98 : vector<8x48xf32>
    %100 = vector.extract_strided_slice %96 {offsets = [0, 0], sizes = [8, 16], strides = [1, 1]} : vector<8x48xf32> to vector<8x16xf32>
    %101 = vector.extract_strided_slice %99 {offsets = [0, 0], sizes = [8, 16], strides = [1, 1]} : vector<8x48xf32> to vector<8x16xf32>
    %102 = arith.addf %100, %101 : vector<8x16xf32>
    %103 = arith.negf %102 : vector<8x16xf32>
    %104 = math.exp %103 : vector<8x16xf32>
    %cst_47 = arith.constant 1.000000e+00 : f32
    %105 = vector.broadcast %cst_47 : f32 to vector<8x16xf32>
    %106 = arith.addf %105, %104 : vector<8x16xf32>
    %107 = arith.divf %105, %106 : vector<8x16xf32>
    %108 = vector.extract_strided_slice %96 {offsets = [0, 16], sizes = [8, 16], strides = [1, 1]} : vector<8x48xf32> to vector<8x16xf32>
    %109 = vector.extract_strided_slice %99 {offsets = [0, 16], sizes = [8, 16], strides = [1, 1]} : vector<8x48xf32> to vector<8x16xf32>
    %110 = arith.addf %108, %109 : vector<8x16xf32>
    %111 = arith.negf %110 : vector<8x16xf32>
    %112 = math.exp %111 : vector<8x16xf32>
    %cst_48 = arith.constant 1.000000e+00 : f32
    %113 = vector.broadcast %cst_48 : f32 to vector<8x16xf32>
    %114 = arith.addf %113, %112 : vector<8x16xf32>
    %115 = arith.divf %113, %114 : vector<8x16xf32>
    %116 = vector.extract_strided_slice %96 {offsets = [0, 32], sizes = [8, 16], strides = [1, 1]} : vector<8x48xf32> to vector<8x16xf32>
    %117 = vector.extract_strided_slice %99 {offsets = [0, 32], sizes = [8, 16], strides = [1, 1]} : vector<8x48xf32> to vector<8x16xf32>
    %118 = arith.mulf %107, %117 : vector<8x16xf32>
    %119 = arith.addf %116, %118 : vector<8x16xf32>
    %120 = math.tanh %119 : vector<8x16xf32>
    %cst_49 = arith.constant 1.000000e+00 : f32
    %121 = vector.broadcast %cst_49 : f32 to vector<8x16xf32>
    %122 = arith.subf %121, %115 : vector<8x16xf32>
    %123 = arith.mulf %122, %120 : vector<8x16xf32>
    %124 = arith.mulf %115, %89 : vector<8x16xf32>
    %125 = arith.addf %123, %124 : vector<8x16xf32>
    %126 = arith.index_cast %c2_i32 : i32 to index
    %c0_50 = arith.constant 0 : index
    %c0_51 = arith.constant 0 : index
    %127 = vector.load %arg21[%126, %c0_50, %c0_51] : memref<8x8x16xf32, #tpu.memory_space<vmem>>, vector<1x8x16xf32>
    %128 = vector.shape_cast %127 : vector<1x8x16xf32> to vector<8x16xf32>
    %129 = vector.shape_cast %125 : vector<8x16xf32> to vector<1x8x16xf32>
    tpu.vector_store %arg21[%126, %c0_50, %c0_51], %129 {strides = array<i32>} : memref<8x8x16xf32, #tpu.memory_space<vmem>>, vector<1x8x16xf32>,
    %c3_i32 = arith.constant 3 : i32
    %130 = arith.index_cast %c3_i32 : i32 to index
    %c0_52 = arith.constant 0 : index
    %c0_53 = arith.constant 0 : index
    %131 = vector.load %arg19[%130, %c0_52, %c0_53] : memref<8x8x48xf32, #tpu.memory_space<vmem>>, vector<1x8x48xf32>
    %132 = vector.shape_cast %131 : vector<1x8x48xf32> to vector<8x48xf32>
    %cst_54 = arith.constant dense<0.000000e+00> : vector<8x48xf32>
    %133 = tpu.matmul %125, %17, %cst_54 {dimension_numbers = #tpu.dot_dimension_numbers<[1], [0], [0], [1], [0, 0, 1, 1], [], []>} : vector<8x16xf32>, vector<16x48xf32>, vector<8x48xf32> -> vector<8x48xf32>
    %134 = vector.broadcast %19 : vector<1x48xf32> to vector<8x48xf32>
    %135 = arith.addf %133, %134 : vector<8x48xf32>
    %136 = vector.extract_strided_slice %132 {offsets = [0, 0], sizes = [8, 16], strides = [1, 1]} : vector<8x48xf32> to vector<8x16xf32>
    %137 = vector.extract_strided_slice %135 {offsets = [0, 0], sizes = [8, 16], strides = [1, 1]} : vector<8x48xf32> to vector<8x16xf32>
    %138 = arith.addf %136, %137 : vector<8x16xf32>
    %139 = arith.negf %138 : vector<8x16xf32>
    %140 = math.exp %139 : vector<8x16xf32>
    %cst_55 = arith.constant 1.000000e+00 : f32
    %141 = vector.broadcast %cst_55 : f32 to vector<8x16xf32>
    %142 = arith.addf %141, %140 : vector<8x16xf32>
    %143 = arith.divf %141, %142 : vector<8x16xf32>
    %144 = vector.extract_strided_slice %132 {offsets = [0, 16], sizes = [8, 16], strides = [1, 1]} : vector<8x48xf32> to vector<8x16xf32>
    %145 = vector.extract_strided_slice %135 {offsets = [0, 16], sizes = [8, 16], strides = [1, 1]} : vector<8x48xf32> to vector<8x16xf32>
    %146 = arith.addf %144, %145 : vector<8x16xf32>
    %147 = arith.negf %146 : vector<8x16xf32>
    %148 = math.exp %147 : vector<8x16xf32>
    %cst_56 = arith.constant 1.000000e+00 : f32
    %149 = vector.broadcast %cst_56 : f32 to vector<8x16xf32>
    %150 = arith.addf %149, %148 : vector<8x16xf32>
    %151 = arith.divf %149, %150 : vector<8x16xf32>
    %152 = vector.extract_strided_slice %132 {offsets = [0, 32], sizes = [8, 16], strides = [1, 1]} : vector<8x48xf32> to vector<8x16xf32>
    %153 = vector.extract_strided_slice %135 {offsets = [0, 32], sizes = [8, 16], strides = [1, 1]} : vector<8x48xf32> to vector<8x16xf32>
    %154 = arith.mulf %143, %153 : vector<8x16xf32>
    %155 = arith.addf %152, %154 : vector<8x16xf32>
    %156 = math.tanh %155 : vector<8x16xf32>
    %cst_57 = arith.constant 1.000000e+00 : f32
    %157 = vector.broadcast %cst_57 : f32 to vector<8x16xf32>
    %158 = arith.subf %157, %151 : vector<8x16xf32>
    %159 = arith.mulf %158, %156 : vector<8x16xf32>
    %160 = arith.mulf %151, %125 : vector<8x16xf32>
    %161 = arith.addf %159, %160 : vector<8x16xf32>
    %162 = arith.index_cast %c3_i32 : i32 to index
    %c0_58 = arith.constant 0 : index
    %c0_59 = arith.constant 0 : index
    %163 = vector.load %arg21[%162, %c0_58, %c0_59] : memref<8x8x16xf32, #tpu.memory_space<vmem>>, vector<1x8x16xf32>
    %164 = vector.shape_cast %163 : vector<1x8x16xf32> to vector<8x16xf32>
    %165 = vector.shape_cast %161 : vector<8x16xf32> to vector<1x8x16xf32>
    tpu.vector_store %arg21[%162, %c0_58, %c0_59], %165 {strides = array<i32>} : memref<8x8x16xf32, #tpu.memory_space<vmem>>, vector<1x8x16xf32>,
    %c4_i32 = arith.constant 4 : i32
    %166 = arith.index_cast %c4_i32 : i32 to index
    %c0_60 = arith.constant 0 : index
    %c0_61 = arith.constant 0 : index
    %167 = vector.load %arg19[%166, %c0_60, %c0_61] : memref<8x8x48xf32, #tpu.memory_space<vmem>>, vector<1x8x48xf32>
    %168 = vector.shape_cast %167 : vector<1x8x48xf32> to vector<8x48xf32>
    %cst_62 = arith.constant dense<0.000000e+00> : vector<8x48xf32>
    %169 = tpu.matmul %161, %17, %cst_62 {dimension_numbers = #tpu.dot_dimension_numbers<[1], [0], [0], [1], [0, 0, 1, 1], [], []>} : vector<8x16xf32>, vector<16x48xf32>, vector<8x48xf32> -> vector<8x48xf32>
    %170 = vector.broadcast %19 : vector<1x48xf32> to vector<8x48xf32>
    %171 = arith.addf %169, %170 : vector<8x48xf32>
    %172 = vector.extract_strided_slice %168 {offsets = [0, 0], sizes = [8, 16], strides = [1, 1]} : vector<8x48xf32> to vector<8x16xf32>
    %173 = vector.extract_strided_slice %171 {offsets = [0, 0], sizes = [8, 16], strides = [1, 1]} : vector<8x48xf32> to vector<8x16xf32>
    %174 = arith.addf %172, %173 : vector<8x16xf32>
    %175 = arith.negf %174 : vector<8x16xf32>
    %176 = math.exp %175 : vector<8x16xf32>
    %cst_63 = arith.constant 1.000000e+00 : f32
    %177 = vector.broadcast %cst_63 : f32 to vector<8x16xf32>
    %178 = arith.addf %177, %176 : vector<8x16xf32>
    %179 = arith.divf %177, %178 : vector<8x16xf32>
    %180 = vector.extract_strided_slice %168 {offsets = [0, 16], sizes = [8, 16], strides = [1, 1]} : vector<8x48xf32> to vector<8x16xf32>
    %181 = vector.extract_strided_slice %171 {offsets = [0, 16], sizes = [8, 16], strides = [1, 1]} : vector<8x48xf32> to vector<8x16xf32>
    %182 = arith.addf %180, %181 : vector<8x16xf32>
    %183 = arith.negf %182 : vector<8x16xf32>
    %184 = math.exp %183 : vector<8x16xf32>
    %cst_64 = arith.constant 1.000000e+00 : f32
    %185 = vector.broadcast %cst_64 : f32 to vector<8x16xf32>
    %186 = arith.addf %185, %184 : vector<8x16xf32>
    %187 = arith.divf %185, %186 : vector<8x16xf32>
    %188 = vector.extract_strided_slice %168 {offsets = [0, 32], sizes = [8, 16], strides = [1, 1]} : vector<8x48xf32> to vector<8x16xf32>
    %189 = vector.extract_strided_slice %171 {offsets = [0, 32], sizes = [8, 16], strides = [1, 1]} : vector<8x48xf32> to vector<8x16xf32>
    %190 = arith.mulf %179, %189 : vector<8x16xf32>
    %191 = arith.addf %188, %190 : vector<8x16xf32>
    %192 = math.tanh %191 : vector<8x16xf32>
    %cst_65 = arith.constant 1.000000e+00 : f32
    %193 = vector.broadcast %cst_65 : f32 to vector<8x16xf32>
    %194 = arith.subf %193, %187 : vector<8x16xf32>
    %195 = arith.mulf %194, %192 : vector<8x16xf32>
    %196 = arith.mulf %187, %161 : vector<8x16xf32>
    %197 = arith.addf %195, %196 : vector<8x16xf32>
    %198 = arith.index_cast %c4_i32 : i32 to index
    %c0_66 = arith.constant 0 : index
    %c0_67 = arith.constant 0 : index
    %199 = vector.load %arg21[%198, %c0_66, %c0_67] : memref<8x8x16xf32, #tpu.memory_space<vmem>>, vector<1x8x16xf32>
    %200 = vector.shape_cast %199 : vector<1x8x16xf32> to vector<8x16xf32>
    %201 = vector.shape_cast %197 : vector<8x16xf32> to vector<1x8x16xf32>
    tpu.vector_store %arg21[%198, %c0_66, %c0_67], %201 {strides = array<i32>} : memref<8x8x16xf32, #tpu.memory_space<vmem>>, vector<1x8x16xf32>,
    %c5_i32 = arith.constant 5 : i32
    %202 = arith.index_cast %c5_i32 : i32 to index
    %c0_68 = arith.constant 0 : index
    %c0_69 = arith.constant 0 : index
    %203 = vector.load %arg19[%202, %c0_68, %c0_69] : memref<8x8x48xf32, #tpu.memory_space<vmem>>, vector<1x8x48xf32>
    %204 = vector.shape_cast %203 : vector<1x8x48xf32> to vector<8x48xf32>
    %cst_70 = arith.constant dense<0.000000e+00> : vector<8x48xf32>
    %205 = tpu.matmul %197, %17, %cst_70 {dimension_numbers = #tpu.dot_dimension_numbers<[1], [0], [0], [1], [0, 0, 1, 1], [], []>} : vector<8x16xf32>, vector<16x48xf32>, vector<8x48xf32> -> vector<8x48xf32>
    %206 = vector.broadcast %19 : vector<1x48xf32> to vector<8x48xf32>
    %207 = arith.addf %205, %206 : vector<8x48xf32>
    %208 = vector.extract_strided_slice %204 {offsets = [0, 0], sizes = [8, 16], strides = [1, 1]} : vector<8x48xf32> to vector<8x16xf32>
    %209 = vector.extract_strided_slice %207 {offsets = [0, 0], sizes = [8, 16], strides = [1, 1]} : vector<8x48xf32> to vector<8x16xf32>
    %210 = arith.addf %208, %209 : vector<8x16xf32>
    %211 = arith.negf %210 : vector<8x16xf32>
    %212 = math.exp %211 : vector<8x16xf32>
    %cst_71 = arith.constant 1.000000e+00 : f32
    %213 = vector.broadcast %cst_71 : f32 to vector<8x16xf32>
    %214 = arith.addf %213, %212 : vector<8x16xf32>
    %215 = arith.divf %213, %214 : vector<8x16xf32>
    %216 = vector.extract_strided_slice %204 {offsets = [0, 16], sizes = [8, 16], strides = [1, 1]} : vector<8x48xf32> to vector<8x16xf32>
    %217 = vector.extract_strided_slice %207 {offsets = [0, 16], sizes = [8, 16], strides = [1, 1]} : vector<8x48xf32> to vector<8x16xf32>
    %218 = arith.addf %216, %217 : vector<8x16xf32>
    %219 = arith.negf %218 : vector<8x16xf32>
    %220 = math.exp %219 : vector<8x16xf32>
    %cst_72 = arith.constant 1.000000e+00 : f32
    %221 = vector.broadcast %cst_72 : f32 to vector<8x16xf32>
    %222 = arith.addf %221, %220 : vector<8x16xf32>
    %223 = arith.divf %221, %222 : vector<8x16xf32>
    %224 = vector.extract_strided_slice %204 {offsets = [0, 32], sizes = [8, 16], strides = [1, 1]} : vector<8x48xf32> to vector<8x16xf32>
    %225 = vector.extract_strided_slice %207 {offsets = [0, 32], sizes = [8, 16], strides = [1, 1]} : vector<8x48xf32> to vector<8x16xf32>
    %226 = arith.mulf %215, %225 : vector<8x16xf32>
    %227 = arith.addf %224, %226 : vector<8x16xf32>
    %228 = math.tanh %227 : vector<8x16xf32>
    %cst_73 = arith.constant 1.000000e+00 : f32
    %229 = vector.broadcast %cst_73 : f32 to vector<8x16xf32>
    %230 = arith.subf %229, %223 : vector<8x16xf32>
    %231 = arith.mulf %230, %228 : vector<8x16xf32>
    %232 = arith.mulf %223, %197 : vector<8x16xf32>
    %233 = arith.addf %231, %232 : vector<8x16xf32>
    %234 = arith.index_cast %c5_i32 : i32 to index
    %c0_74 = arith.constant 0 : index
    %c0_75 = arith.constant 0 : index
    %235 = vector.load %arg21[%234, %c0_74, %c0_75] : memref<8x8x16xf32, #tpu.memory_space<vmem>>, vector<1x8x16xf32>
    %236 = vector.shape_cast %235 : vector<1x8x16xf32> to vector<8x16xf32>
    %237 = vector.shape_cast %233 : vector<8x16xf32> to vector<1x8x16xf32>
    tpu.vector_store %arg21[%234, %c0_74, %c0_75], %237 {strides = array<i32>} : memref<8x8x16xf32, #tpu.memory_space<vmem>>, vector<1x8x16xf32>,
    %c6_i32 = arith.constant 6 : i32
    %238 = arith.index_cast %c6_i32 : i32 to index
    %c0_76 = arith.constant 0 : index
    %c0_77 = arith.constant 0 : index
    %239 = vector.load %arg19[%238, %c0_76, %c0_77] : memref<8x8x48xf32, #tpu.memory_space<vmem>>, vector<1x8x48xf32>
    %240 = vector.shape_cast %239 : vector<1x8x48xf32> to vector<8x48xf32>
    %cst_78 = arith.constant dense<0.000000e+00> : vector<8x48xf32>
    %241 = tpu.matmul %233, %17, %cst_78 {dimension_numbers = #tpu.dot_dimension_numbers<[1], [0], [0], [1], [0, 0, 1, 1], [], []>} : vector<8x16xf32>, vector<16x48xf32>, vector<8x48xf32> -> vector<8x48xf32>
    %242 = vector.broadcast %19 : vector<1x48xf32> to vector<8x48xf32>
    %243 = arith.addf %241, %242 : vector<8x48xf32>
    %244 = vector.extract_strided_slice %240 {offsets = [0, 0], sizes = [8, 16], strides = [1, 1]} : vector<8x48xf32> to vector<8x16xf32>
    %245 = vector.extract_strided_slice %243 {offsets = [0, 0], sizes = [8, 16], strides = [1, 1]} : vector<8x48xf32> to vector<8x16xf32>
    %246 = arith.addf %244, %245 : vector<8x16xf32>
    %247 = arith.negf %246 : vector<8x16xf32>
    %248 = math.exp %247 : vector<8x16xf32>
    %cst_79 = arith.constant 1.000000e+00 : f32
    %249 = vector.broadcast %cst_79 : f32 to vector<8x16xf32>
    %250 = arith.addf %249, %248 : vector<8x16xf32>
    %251 = arith.divf %249, %250 : vector<8x16xf32>
    %252 = vector.extract_strided_slice %240 {offsets = [0, 16], sizes = [8, 16], strides = [1, 1]} : vector<8x48xf32> to vector<8x16xf32>
    %253 = vector.extract_strided_slice %243 {offsets = [0, 16], sizes = [8, 16], strides = [1, 1]} : vector<8x48xf32> to vector<8x16xf32>
    %254 = arith.addf %252, %253 : vector<8x16xf32>
    %255 = arith.negf %254 : vector<8x16xf32>
    %256 = math.exp %255 : vector<8x16xf32>
    %cst_80 = arith.constant 1.000000e+00 : f32
    %257 = vector.broadcast %cst_80 : f32 to vector<8x16xf32>
    %258 = arith.addf %257, %256 : vector<8x16xf32>
    %259 = arith.divf %257, %258 : vector<8x16xf32>
    %260 = vector.extract_strided_slice %240 {offsets = [0, 32], sizes = [8, 16], strides = [1, 1]} : vector<8x48xf32> to vector<8x16xf32>
    %261 = vector.extract_strided_slice %243 {offsets = [0, 32], sizes = [8, 16], strides = [1, 1]} : vector<8x48xf32> to vector<8x16xf32>
    %262 = arith.mulf %251, %261 : vector<8x16xf32>
    %263 = arith.addf %260, %262 : vector<8x16xf32>
    %264 = math.tanh %263 : vector<8x16xf32>
    %cst_81 = arith.constant 1.000000e+00 : f32
    %265 = vector.broadcast %cst_81 : f32 to vector<8x16xf32>
    %266 = arith.subf %265, %259 : vector<8x16xf32>
    %267 = arith.mulf %266, %264 : vector<8x16xf32>
    %268 = arith.mulf %259, %233 : vector<8x16xf32>
    %269 = arith.addf %267, %268 : vector<8x16xf32>
    %270 = arith.index_cast %c6_i32 : i32 to index
    %c0_82 = arith.constant 0 : index
    %c0_83 = arith.constant 0 : index
    %271 = vector.load %arg21[%270, %c0_82, %c0_83] : memref<8x8x16xf32, #tpu.memory_space<vmem>>, vector<1x8x16xf32>
    %272 = vector.shape_cast %271 : vector<1x8x16xf32> to vector<8x16xf32>
    %273 = vector.shape_cast %269 : vector<8x16xf32> to vector<1x8x16xf32>
    tpu.vector_store %arg21[%270, %c0_82, %c0_83], %273 {strides = array<i32>} : memref<8x8x16xf32, #tpu.memory_space<vmem>>, vector<1x8x16xf32>,
    %c7_i32 = arith.constant 7 : i32
    %274 = arith.index_cast %c7_i32 : i32 to index
    %c0_84 = arith.constant 0 : index
    %c0_85 = arith.constant 0 : index
    %275 = vector.load %arg19[%274, %c0_84, %c0_85] : memref<8x8x48xf32, #tpu.memory_space<vmem>>, vector<1x8x48xf32>
    %276 = vector.shape_cast %275 : vector<1x8x48xf32> to vector<8x48xf32>
    %cst_86 = arith.constant dense<0.000000e+00> : vector<8x48xf32>
    %277 = tpu.matmul %269, %17, %cst_86 {dimension_numbers = #tpu.dot_dimension_numbers<[1], [0], [0], [1], [0, 0, 1, 1], [], []>} : vector<8x16xf32>, vector<16x48xf32>, vector<8x48xf32> -> vector<8x48xf32>
    %278 = vector.broadcast %19 : vector<1x48xf32> to vector<8x48xf32>
    %279 = arith.addf %277, %278 : vector<8x48xf32>
    %280 = vector.extract_strided_slice %276 {offsets = [0, 0], sizes = [8, 16], strides = [1, 1]} : vector<8x48xf32> to vector<8x16xf32>
    %281 = vector.extract_strided_slice %279 {offsets = [0, 0], sizes = [8, 16], strides = [1, 1]} : vector<8x48xf32> to vector<8x16xf32>
    %282 = arith.addf %280, %281 : vector<8x16xf32>
    %283 = arith.negf %282 : vector<8x16xf32>
    %284 = math.exp %283 : vector<8x16xf32>
    %cst_87 = arith.constant 1.000000e+00 : f32
    %285 = vector.broadcast %cst_87 : f32 to vector<8x16xf32>
    %286 = arith.addf %285, %284 : vector<8x16xf32>
    %287 = arith.divf %285, %286 : vector<8x16xf32>
    %288 = vector.extract_strided_slice %276 {offsets = [0, 16], sizes = [8, 16], strides = [1, 1]} : vector<8x48xf32> to vector<8x16xf32>
    %289 = vector.extract_strided_slice %279 {offsets = [0, 16], sizes = [8, 16], strides = [1, 1]} : vector<8x48xf32> to vector<8x16xf32>
    %290 = arith.addf %288, %289 : vector<8x16xf32>
    %291 = arith.negf %290 : vector<8x16xf32>
    %292 = math.exp %291 : vector<8x16xf32>
    %cst_88 = arith.constant 1.000000e+00 : f32
    %293 = vector.broadcast %cst_88 : f32 to vector<8x16xf32>
    %294 = arith.addf %293, %292 : vector<8x16xf32>
    %295 = arith.divf %293, %294 : vector<8x16xf32>
    %296 = vector.extract_strided_slice %276 {offsets = [0, 32], sizes = [8, 16], strides = [1, 1]} : vector<8x48xf32> to vector<8x16xf32>
    %297 = vector.extract_strided_slice %279 {offsets = [0, 32], sizes = [8, 16], strides = [1, 1]} : vector<8x48xf32> to vector<8x16xf32>
    %298 = arith.mulf %287, %297 : vector<8x16xf32>
    %299 = arith.addf %296, %298 : vector<8x16xf32>
    %300 = math.tanh %299 : vector<8x16xf32>
    %cst_89 = arith.constant 1.000000e+00 : f32
    %301 = vector.broadcast %cst_89 : f32 to vector<8x16xf32>
    %302 = arith.subf %301, %295 : vector<8x16xf32>
    %303 = arith.mulf %302, %300 : vector<8x16xf32>
    %304 = arith.mulf %295, %269 : vector<8x16xf32>
    %305 = arith.addf %303, %304 : vector<8x16xf32>
    %306 = arith.index_cast %c7_i32 : i32 to index
    %c0_90 = arith.constant 0 : index
    %c0_91 = arith.constant 0 : index
    %307 = vector.load %arg21[%306, %c0_90, %c0_91] : memref<8x8x16xf32, #tpu.memory_space<vmem>>, vector<1x8x16xf32>
    %308 = vector.shape_cast %307 : vector<1x8x16xf32> to vector<8x16xf32>
    %309 = vector.shape_cast %305 : vector<8x16xf32> to vector<1x8x16xf32>
    tpu.vector_store %arg21[%306, %c0_90, %c0_91], %309 {strides = array<i32>} : memref<8x8x16xf32, #tpu.memory_space<vmem>>, vector<1x8x16xf32>,
    %c8_i32 = arith.constant 8 : i32
    %c0_i32_92 = arith.constant 0 : i32
    %c7_i32_93 = arith.constant 7 : i32
    %310 = arith.subi %c7_i32_93, %c0_i32_92 : i32
    %311 = arith.index_cast %310 : i32 to index
    %c0_94 = arith.constant 0 : index
    %c0_95 = arith.constant 0 : index
    %312 = vector.load %arg20[%311, %c0_94, %c0_95] : memref<8x8x48xf32, #tpu.memory_space<vmem>>, vector<1x8x48xf32>
    %313 = vector.shape_cast %312 : vector<1x8x48xf32> to vector<8x48xf32>
    %cst_96 = arith.constant dense<0.000000e+00> : vector<8x48xf32>
    %314 = tpu.matmul %21, %18, %cst_96 {dimension_numbers = #tpu.dot_dimension_numbers<[1], [0], [0], [1], [0, 0, 1, 1], [], []>} : vector<8x16xf32>, vector<16x48xf32>, vector<8x48xf32> -> vector<8x48xf32>
    %315 = vector.broadcast %20 : vector<1x48xf32> to vector<8x48xf32>
    %316 = arith.addf %314, %315 : vector<8x48xf32>
    %317 = vector.extract_strided_slice %313 {offsets = [0, 0], sizes = [8, 16], strides = [1, 1]} : vector<8x48xf32> to vector<8x16xf32>
    %318 = vector.extract_strided_slice %316 {offsets = [0, 0], sizes = [8, 16], strides = [1, 1]} : vector<8x48xf32> to vector<8x16xf32>
    %319 = arith.addf %317, %318 : vector<8x16xf32>
    %320 = arith.negf %319 : vector<8x16xf32>
    %321 = math.exp %320 : vector<8x16xf32>
    %cst_97 = arith.constant 1.000000e+00 : f32
    %322 = vector.broadcast %cst_97 : f32 to vector<8x16xf32>
    %323 = arith.addf %322, %321 : vector<8x16xf32>
    %324 = arith.divf %322, %323 : vector<8x16xf32>
    %325 = vector.extract_strided_slice %313 {offsets = [0, 16], sizes = [8, 16], strides = [1, 1]} : vector<8x48xf32> to vector<8x16xf32>
    %326 = vector.extract_strided_slice %316 {offsets = [0, 16], sizes = [8, 16], strides = [1, 1]} : vector<8x48xf32> to vector<8x16xf32>
    %327 = arith.addf %325, %326 : vector<8x16xf32>
    %328 = arith.negf %327 : vector<8x16xf32>
    %329 = math.exp %328 : vector<8x16xf32>
    %cst_98 = arith.constant 1.000000e+00 : f32
    %330 = vector.broadcast %cst_98 : f32 to vector<8x16xf32>
    %331 = arith.addf %330, %329 : vector<8x16xf32>
    %332 = arith.divf %330, %331 : vector<8x16xf32>
    %333 = vector.extract_strided_slice %313 {offsets = [0, 32], sizes = [8, 16], strides = [1, 1]} : vector<8x48xf32> to vector<8x16xf32>
    %334 = vector.extract_strided_slice %316 {offsets = [0, 32], sizes = [8, 16], strides = [1, 1]} : vector<8x48xf32> to vector<8x16xf32>
    %335 = arith.mulf %324, %334 : vector<8x16xf32>
    %336 = arith.addf %333, %335 : vector<8x16xf32>
    %337 = math.tanh %336 : vector<8x16xf32>
    %cst_99 = arith.constant 1.000000e+00 : f32
    %338 = vector.broadcast %cst_99 : f32 to vector<8x16xf32>
    %339 = arith.subf %338, %332 : vector<8x16xf32>
    %340 = arith.mulf %339, %337 : vector<8x16xf32>
    %341 = arith.mulf %332, %21 : vector<8x16xf32>
    %342 = arith.addf %340, %341 : vector<8x16xf32>
    %343 = vector.broadcast %310 : i32 to vector<8x1xi32>
    %344 = arith.cmpi sgt, %16, %343 : vector<8x1xi32>
    %345 = vector.shape_cast %344 : vector<8x1xi1> to vector<8x1xi1>
    %346 = vector.broadcast %345 : vector<8x1xi1> to vector<8x16xi1>
    %347 = arith.select %346, %342, %21 : vector<8x16xi1>, vector<8x16xf32>
    %348 = arith.index_cast %310 : i32 to index
    %c0_100 = arith.constant 0 : index
    %c0_101 = arith.constant 0 : index
    %349 = vector.load %arg22[%348, %c0_100, %c0_101] : memref<8x8x16xf32, #tpu.memory_space<vmem>>, vector<1x8x16xf32>
    %350 = vector.shape_cast %349 : vector<1x8x16xf32> to vector<8x16xf32>
    %351 = vector.shape_cast %347 : vector<8x16xf32> to vector<1x8x16xf32>
    tpu.vector_store %arg22[%348, %c0_100, %c0_101], %351 {strides = array<i32>} : memref<8x8x16xf32, #tpu.memory_space<vmem>>, vector<1x8x16xf32>,
    %c1_i32_102 = arith.constant 1 : i32
    %c7_i32_103 = arith.constant 7 : i32
    %352 = arith.subi %c7_i32_103, %c1_i32_102 : i32
    %353 = arith.index_cast %352 : i32 to index
    %c0_104 = arith.constant 0 : index
    %c0_105 = arith.constant 0 : index
    %354 = vector.load %arg20[%353, %c0_104, %c0_105] : memref<8x8x48xf32, #tpu.memory_space<vmem>>, vector<1x8x48xf32>
    %355 = vector.shape_cast %354 : vector<1x8x48xf32> to vector<8x48xf32>
    %cst_106 = arith.constant dense<0.000000e+00> : vector<8x48xf32>
    %356 = tpu.matmul %347, %18, %cst_106 {dimension_numbers = #tpu.dot_dimension_numbers<[1], [0], [0], [1], [0, 0, 1, 1], [], []>} : vector<8x16xf32>, vector<16x48xf32>, vector<8x48xf32> -> vector<8x48xf32>
    %357 = vector.broadcast %20 : vector<1x48xf32> to vector<8x48xf32>
    %358 = arith.addf %356, %357 : vector<8x48xf32>
    %359 = vector.extract_strided_slice %355 {offsets = [0, 0], sizes = [8, 16], strides = [1, 1]} : vector<8x48xf32> to vector<8x16xf32>
    %360 = vector.extract_strided_slice %358 {offsets = [0, 0], sizes = [8, 16], strides = [1, 1]} : vector<8x48xf32> to vector<8x16xf32>
    %361 = arith.addf %359, %360 : vector<8x16xf32>
    %362 = arith.negf %361 : vector<8x16xf32>
    %363 = math.exp %362 : vector<8x16xf32>
    %cst_107 = arith.constant 1.000000e+00 : f32
    %364 = vector.broadcast %cst_107 : f32 to vector<8x16xf32>
    %365 = arith.addf %364, %363 : vector<8x16xf32>
    %366 = arith.divf %364, %365 : vector<8x16xf32>
    %367 = vector.extract_strided_slice %355 {offsets = [0, 16], sizes = [8, 16], strides = [1, 1]} : vector<8x48xf32> to vector<8x16xf32>
    %368 = vector.extract_strided_slice %358 {offsets = [0, 16], sizes = [8, 16], strides = [1, 1]} : vector<8x48xf32> to vector<8x16xf32>
    %369 = arith.addf %367, %368 : vector<8x16xf32>
    %370 = arith.negf %369 : vector<8x16xf32>
    %371 = math.exp %370 : vector<8x16xf32>
    %cst_108 = arith.constant 1.000000e+00 : f32
    %372 = vector.broadcast %cst_108 : f32 to vector<8x16xf32>
    %373 = arith.addf %372, %371 : vector<8x16xf32>
    %374 = arith.divf %372, %373 : vector<8x16xf32>
    %375 = vector.extract_strided_slice %355 {offsets = [0, 32], sizes = [8, 16], strides = [1, 1]} : vector<8x48xf32> to vector<8x16xf32>
    %376 = vector.extract_strided_slice %358 {offsets = [0, 32], sizes = [8, 16], strides = [1, 1]} : vector<8x48xf32> to vector<8x16xf32>
    %377 = arith.mulf %366, %376 : vector<8x16xf32>
    %378 = arith.addf %375, %377 : vector<8x16xf32>
    %379 = math.tanh %378 : vector<8x16xf32>
    %cst_109 = arith.constant 1.000000e+00 : f32
    %380 = vector.broadcast %cst_109 : f32 to vector<8x16xf32>
    %381 = arith.subf %380, %374 : vector<8x16xf32>
    %382 = arith.mulf %381, %379 : vector<8x16xf32>
    %383 = arith.mulf %374, %347 : vector<8x16xf32>
    %384 = arith.addf %382, %383 : vector<8x16xf32>
    %385 = vector.broadcast %352 : i32 to vector<8x1xi32>
    %386 = arith.cmpi sgt, %16, %385 : vector<8x1xi32>
    %387 = vector.shape_cast %386 : vector<8x1xi1> to vector<8x1xi1>
    %388 = vector.broadcast %387 : vector<8x1xi1> to vector<8x16xi1>
    %389 = arith.select %388, %384, %347 : vector<8x16xi1>, vector<8x16xf32>
    %390 = arith.index_cast %352 : i32 to index
    %c0_110 = arith.constant 0 : index
    %c0_111 = arith.constant 0 : index
    %391 = vector.load %arg22[%390, %c0_110, %c0_111] : memref<8x8x16xf32, #tpu.memory_space<vmem>>, vector<1x8x16xf32>
    %392 = vector.shape_cast %391 : vector<1x8x16xf32> to vector<8x16xf32>
    %393 = vector.shape_cast %389 : vector<8x16xf32> to vector<1x8x16xf32>
    tpu.vector_store %arg22[%390, %c0_110, %c0_111], %393 {strides = array<i32>} : memref<8x8x16xf32, #tpu.memory_space<vmem>>, vector<1x8x16xf32>,
    %c2_i32_112 = arith.constant 2 : i32
    %c7_i32_113 = arith.constant 7 : i32
    %394 = arith.subi %c7_i32_113, %c2_i32_112 : i32
    %395 = arith.index_cast %394 : i32 to index
    %c0_114 = arith.constant 0 : index
    %c0_115 = arith.constant 0 : index
    %396 = vector.load %arg20[%395, %c0_114, %c0_115] : memref<8x8x48xf32, #tpu.memory_space<vmem>>, vector<1x8x48xf32>
    %397 = vector.shape_cast %396 : vector<1x8x48xf32> to vector<8x48xf32>
    %cst_116 = arith.constant dense<0.000000e+00> : vector<8x48xf32>
    %398 = tpu.matmul %389, %18, %cst_116 {dimension_numbers = #tpu.dot_dimension_numbers<[1], [0], [0], [1], [0, 0, 1, 1], [], []>} : vector<8x16xf32>, vector<16x48xf32>, vector<8x48xf32> -> vector<8x48xf32>
    %399 = vector.broadcast %20 : vector<1x48xf32> to vector<8x48xf32>
    %400 = arith.addf %398, %399 : vector<8x48xf32>
    %401 = vector.extract_strided_slice %397 {offsets = [0, 0], sizes = [8, 16], strides = [1, 1]} : vector<8x48xf32> to vector<8x16xf32>
    %402 = vector.extract_strided_slice %400 {offsets = [0, 0], sizes = [8, 16], strides = [1, 1]} : vector<8x48xf32> to vector<8x16xf32>
    %403 = arith.addf %401, %402 : vector<8x16xf32>
    %404 = arith.negf %403 : vector<8x16xf32>
    %405 = math.exp %404 : vector<8x16xf32>
    %cst_117 = arith.constant 1.000000e+00 : f32
    %406 = vector.broadcast %cst_117 : f32 to vector<8x16xf32>
    %407 = arith.addf %406, %405 : vector<8x16xf32>
    %408 = arith.divf %406, %407 : vector<8x16xf32>
    %409 = vector.extract_strided_slice %397 {offsets = [0, 16], sizes = [8, 16], strides = [1, 1]} : vector<8x48xf32> to vector<8x16xf32>
    %410 = vector.extract_strided_slice %400 {offsets = [0, 16], sizes = [8, 16], strides = [1, 1]} : vector<8x48xf32> to vector<8x16xf32>
    %411 = arith.addf %409, %410 : vector<8x16xf32>
    %412 = arith.negf %411 : vector<8x16xf32>
    %413 = math.exp %412 : vector<8x16xf32>
    %cst_118 = arith.constant 1.000000e+00 : f32
    %414 = vector.broadcast %cst_118 : f32 to vector<8x16xf32>
    %415 = arith.addf %414, %413 : vector<8x16xf32>
    %416 = arith.divf %414, %415 : vector<8x16xf32>
    %417 = vector.extract_strided_slice %397 {offsets = [0, 32], sizes = [8, 16], strides = [1, 1]} : vector<8x48xf32> to vector<8x16xf32>
    %418 = vector.extract_strided_slice %400 {offsets = [0, 32], sizes = [8, 16], strides = [1, 1]} : vector<8x48xf32> to vector<8x16xf32>
    %419 = arith.mulf %408, %418 : vector<8x16xf32>
    %420 = arith.addf %417, %419 : vector<8x16xf32>
    %421 = math.tanh %420 : vector<8x16xf32>
    %cst_119 = arith.constant 1.000000e+00 : f32
    %422 = vector.broadcast %cst_119 : f32 to vector<8x16xf32>
    %423 = arith.subf %422, %416 : vector<8x16xf32>
    %424 = arith.mulf %423, %421 : vector<8x16xf32>
    %425 = arith.mulf %416, %389 : vector<8x16xf32>
    %426 = arith.addf %424, %425 : vector<8x16xf32>
    %427 = vector.broadcast %394 : i32 to vector<8x1xi32>
    %428 = arith.cmpi sgt, %16, %427 : vector<8x1xi32>
    %429 = vector.shape_cast %428 : vector<8x1xi1> to vector<8x1xi1>
    %430 = vector.broadcast %429 : vector<8x1xi1> to vector<8x16xi1>
    %431 = arith.select %430, %426, %389 : vector<8x16xi1>, vector<8x16xf32>
    %432 = arith.index_cast %394 : i32 to index
    %c0_120 = arith.constant 0 : index
    %c0_121 = arith.constant 0 : index
    %433 = vector.load %arg22[%432, %c0_120, %c0_121] : memref<8x8x16xf32, #tpu.memory_space<vmem>>, vector<1x8x16xf32>
    %434 = vector.shape_cast %433 : vector<1x8x16xf32> to vector<8x16xf32>
    %435 = vector.shape_cast %431 : vector<8x16xf32> to vector<1x8x16xf32>
    tpu.vector_store %arg22[%432, %c0_120, %c0_121], %435 {strides = array<i32>} : memref<8x8x16xf32, #tpu.memory_space<vmem>>, vector<1x8x16xf32>,
    %c3_i32_122 = arith.constant 3 : i32
    %c7_i32_123 = arith.constant 7 : i32
    %436 = arith.subi %c7_i32_123, %c3_i32_122 : i32
    %437 = arith.index_cast %436 : i32 to index
    %c0_124 = arith.constant 0 : index
    %c0_125 = arith.constant 0 : index
    %438 = vector.load %arg20[%437, %c0_124, %c0_125] : memref<8x8x48xf32, #tpu.memory_space<vmem>>, vector<1x8x48xf32>
    %439 = vector.shape_cast %438 : vector<1x8x48xf32> to vector<8x48xf32>
    %cst_126 = arith.constant dense<0.000000e+00> : vector<8x48xf32>
    %440 = tpu.matmul %431, %18, %cst_126 {dimension_numbers = #tpu.dot_dimension_numbers<[1], [0], [0], [1], [0, 0, 1, 1], [], []>} : vector<8x16xf32>, vector<16x48xf32>, vector<8x48xf32> -> vector<8x48xf32>
    %441 = vector.broadcast %20 : vector<1x48xf32> to vector<8x48xf32>
    %442 = arith.addf %440, %441 : vector<8x48xf32>
    %443 = vector.extract_strided_slice %439 {offsets = [0, 0], sizes = [8, 16], strides = [1, 1]} : vector<8x48xf32> to vector<8x16xf32>
    %444 = vector.extract_strided_slice %442 {offsets = [0, 0], sizes = [8, 16], strides = [1, 1]} : vector<8x48xf32> to vector<8x16xf32>
    %445 = arith.addf %443, %444 : vector<8x16xf32>
    %446 = arith.negf %445 : vector<8x16xf32>
    %447 = math.exp %446 : vector<8x16xf32>
    %cst_127 = arith.constant 1.000000e+00 : f32
    %448 = vector.broadcast %cst_127 : f32 to vector<8x16xf32>
    %449 = arith.addf %448, %447 : vector<8x16xf32>
    %450 = arith.divf %448, %449 : vector<8x16xf32>
    %451 = vector.extract_strided_slice %439 {offsets = [0, 16], sizes = [8, 16], strides = [1, 1]} : vector<8x48xf32> to vector<8x16xf32>
    %452 = vector.extract_strided_slice %442 {offsets = [0, 16], sizes = [8, 16], strides = [1, 1]} : vector<8x48xf32> to vector<8x16xf32>
    %453 = arith.addf %451, %452 : vector<8x16xf32>
    %454 = arith.negf %453 : vector<8x16xf32>
    %455 = math.exp %454 : vector<8x16xf32>
    %cst_128 = arith.constant 1.000000e+00 : f32
    %456 = vector.broadcast %cst_128 : f32 to vector<8x16xf32>
    %457 = arith.addf %456, %455 : vector<8x16xf32>
    %458 = arith.divf %456, %457 : vector<8x16xf32>
    %459 = vector.extract_strided_slice %439 {offsets = [0, 32], sizes = [8, 16], strides = [1, 1]} : vector<8x48xf32> to vector<8x16xf32>
    %460 = vector.extract_strided_slice %442 {offsets = [0, 32], sizes = [8, 16], strides = [1, 1]} : vector<8x48xf32> to vector<8x16xf32>
    %461 = arith.mulf %450, %460 : vector<8x16xf32>
    %462 = arith.addf %459, %461 : vector<8x16xf32>
    %463 = math.tanh %462 : vector<8x16xf32>
    %cst_129 = arith.constant 1.000000e+00 : f32
    %464 = vector.broadcast %cst_129 : f32 to vector<8x16xf32>
    %465 = arith.subf %464, %458 : vector<8x16xf32>
    %466 = arith.mulf %465, %463 : vector<8x16xf32>
    %467 = arith.mulf %458, %431 : vector<8x16xf32>
    %468 = arith.addf %466, %467 : vector<8x16xf32>
    %469 = vector.broadcast %436 : i32 to vector<8x1xi32>
    %470 = arith.cmpi sgt, %16, %469 : vector<8x1xi32>
    %471 = vector.shape_cast %470 : vector<8x1xi1> to vector<8x1xi1>
    %472 = vector.broadcast %471 : vector<8x1xi1> to vector<8x16xi1>
    %473 = arith.select %472, %468, %431 : vector<8x16xi1>, vector<8x16xf32>
    %474 = arith.index_cast %436 : i32 to index
    %c0_130 = arith.constant 0 : index
    %c0_131 = arith.constant 0 : index
    %475 = vector.load %arg22[%474, %c0_130, %c0_131] : memref<8x8x16xf32, #tpu.memory_space<vmem>>, vector<1x8x16xf32>
    %476 = vector.shape_cast %475 : vector<1x8x16xf32> to vector<8x16xf32>
    %477 = vector.shape_cast %473 : vector<8x16xf32> to vector<1x8x16xf32>
    tpu.vector_store %arg22[%474, %c0_130, %c0_131], %477 {strides = array<i32>} : memref<8x8x16xf32, #tpu.memory_space<vmem>>, vector<1x8x16xf32>,
    %c4_i32_132 = arith.constant 4 : i32
    %c7_i32_133 = arith.constant 7 : i32
    %478 = arith.subi %c7_i32_133, %c4_i32_132 : i32
    %479 = arith.index_cast %478 : i32 to index
    %c0_134 = arith.constant 0 : index
    %c0_135 = arith.constant 0 : index
    %480 = vector.load %arg20[%479, %c0_134, %c0_135] : memref<8x8x48xf32, #tpu.memory_space<vmem>>, vector<1x8x48xf32>
    %481 = vector.shape_cast %480 : vector<1x8x48xf32> to vector<8x48xf32>
    %cst_136 = arith.constant dense<0.000000e+00> : vector<8x48xf32>
    %482 = tpu.matmul %473, %18, %cst_136 {dimension_numbers = #tpu.dot_dimension_numbers<[1], [0], [0], [1], [0, 0, 1, 1], [], []>} : vector<8x16xf32>, vector<16x48xf32>, vector<8x48xf32> -> vector<8x48xf32>
    %483 = vector.broadcast %20 : vector<1x48xf32> to vector<8x48xf32>
    %484 = arith.addf %482, %483 : vector<8x48xf32>
    %485 = vector.extract_strided_slice %481 {offsets = [0, 0], sizes = [8, 16], strides = [1, 1]} : vector<8x48xf32> to vector<8x16xf32>
    %486 = vector.extract_strided_slice %484 {offsets = [0, 0], sizes = [8, 16], strides = [1, 1]} : vector<8x48xf32> to vector<8x16xf32>
    %487 = arith.addf %485, %486 : vector<8x16xf32>
    %488 = arith.negf %487 : vector<8x16xf32>
    %489 = math.exp %488 : vector<8x16xf32>
    %cst_137 = arith.constant 1.000000e+00 : f32
    %490 = vector.broadcast %cst_137 : f32 to vector<8x16xf32>
    %491 = arith.addf %490, %489 : vector<8x16xf32>
    %492 = arith.divf %490, %491 : vector<8x16xf32>
    %493 = vector.extract_strided_slice %481 {offsets = [0, 16], sizes = [8, 16], strides = [1, 1]} : vector<8x48xf32> to vector<8x16xf32>
    %494 = vector.extract_strided_slice %484 {offsets = [0, 16], sizes = [8, 16], strides = [1, 1]} : vector<8x48xf32> to vector<8x16xf32>
    %495 = arith.addf %493, %494 : vector<8x16xf32>
    %496 = arith.negf %495 : vector<8x16xf32>
    %497 = math.exp %496 : vector<8x16xf32>
    %cst_138 = arith.constant 1.000000e+00 : f32
    %498 = vector.broadcast %cst_138 : f32 to vector<8x16xf32>
    %499 = arith.addf %498, %497 : vector<8x16xf32>
    %500 = arith.divf %498, %499 : vector<8x16xf32>
    %501 = vector.extract_strided_slice %481 {offsets = [0, 32], sizes = [8, 16], strides = [1, 1]} : vector<8x48xf32> to vector<8x16xf32>
    %502 = vector.extract_strided_slice %484 {offsets = [0, 32], sizes = [8, 16], strides = [1, 1]} : vector<8x48xf32> to vector<8x16xf32>
    %503 = arith.mulf %492, %502 : vector<8x16xf32>
    %504 = arith.addf %501, %503 : vector<8x16xf32>
    %505 = math.tanh %504 : vector<8x16xf32>
    %cst_139 = arith.constant 1.000000e+00 : f32
    %506 = vector.broadcast %cst_139 : f32 to vector<8x16xf32>
    %507 = arith.subf %506, %500 : vector<8x16xf32>
    %508 = arith.mulf %507, %505 : vector<8x16xf32>
    %509 = arith.mulf %500, %473 : vector<8x16xf32>
    %510 = arith.addf %508, %509 : vector<8x16xf32>
    %511 = vector.broadcast %478 : i32 to vector<8x1xi32>
    %512 = arith.cmpi sgt, %16, %511 : vector<8x1xi32>
    %513 = vector.shape_cast %512 : vector<8x1xi1> to vector<8x1xi1>
    %514 = vector.broadcast %513 : vector<8x1xi1> to vector<8x16xi1>
    %515 = arith.select %514, %510, %473 : vector<8x16xi1>, vector<8x16xf32>
    %516 = arith.index_cast %478 : i32 to index
    %c0_140 = arith.constant 0 : index
    %c0_141 = arith.constant 0 : index
    %517 = vector.load %arg22[%516, %c0_140, %c0_141] : memref<8x8x16xf32, #tpu.memory_space<vmem>>, vector<1x8x16xf32>
    %518 = vector.shape_cast %517 : vector<1x8x16xf32> to vector<8x16xf32>
    %519 = vector.shape_cast %515 : vector<8x16xf32> to vector<1x8x16xf32>
    tpu.vector_store %arg22[%516, %c0_140, %c0_141], %519 {strides = array<i32>} : memref<8x8x16xf32, #tpu.memory_space<vmem>>, vector<1x8x16xf32>,
    %c5_i32_142 = arith.constant 5 : i32
    %c7_i32_143 = arith.constant 7 : i32
    %520 = arith.subi %c7_i32_143, %c5_i32_142 : i32
    %521 = arith.index_cast %520 : i32 to index
    %c0_144 = arith.constant 0 : index
    %c0_145 = arith.constant 0 : index
    %522 = vector.load %arg20[%521, %c0_144, %c0_145] : memref<8x8x48xf32, #tpu.memory_space<vmem>>, vector<1x8x48xf32>
    %523 = vector.shape_cast %522 : vector<1x8x48xf32> to vector<8x48xf32>
    %cst_146 = arith.constant dense<0.000000e+00> : vector<8x48xf32>
    %524 = tpu.matmul %515, %18, %cst_146 {dimension_numbers = #tpu.dot_dimension_numbers<[1], [0], [0], [1], [0, 0, 1, 1], [], []>} : vector<8x16xf32>, vector<16x48xf32>, vector<8x48xf32> -> vector<8x48xf32>
    %525 = vector.broadcast %20 : vector<1x48xf32> to vector<8x48xf32>
    %526 = arith.addf %524, %525 : vector<8x48xf32>
    %527 = vector.extract_strided_slice %523 {offsets = [0, 0], sizes = [8, 16], strides = [1, 1]} : vector<8x48xf32> to vector<8x16xf32>
    %528 = vector.extract_strided_slice %526 {offsets = [0, 0], sizes = [8, 16], strides = [1, 1]} : vector<8x48xf32> to vector<8x16xf32>
    %529 = arith.addf %527, %528 : vector<8x16xf32>
    %530 = arith.negf %529 : vector<8x16xf32>
    %531 = math.exp %530 : vector<8x16xf32>
    %cst_147 = arith.constant 1.000000e+00 : f32
    %532 = vector.broadcast %cst_147 : f32 to vector<8x16xf32>
    %533 = arith.addf %532, %531 : vector<8x16xf32>
    %534 = arith.divf %532, %533 : vector<8x16xf32>
    %535 = vector.extract_strided_slice %523 {offsets = [0, 16], sizes = [8, 16], strides = [1, 1]} : vector<8x48xf32> to vector<8x16xf32>
    %536 = vector.extract_strided_slice %526 {offsets = [0, 16], sizes = [8, 16], strides = [1, 1]} : vector<8x48xf32> to vector<8x16xf32>
    %537 = arith.addf %535, %536 : vector<8x16xf32>
    %538 = arith.negf %537 : vector<8x16xf32>
    %539 = math.exp %538 : vector<8x16xf32>
    %cst_148 = arith.constant 1.000000e+00 : f32
    %540 = vector.broadcast %cst_148 : f32 to vector<8x16xf32>
    %541 = arith.addf %540, %539 : vector<8x16xf32>
    %542 = arith.divf %540, %541 : vector<8x16xf32>
    %543 = vector.extract_strided_slice %523 {offsets = [0, 32], sizes = [8, 16], strides = [1, 1]} : vector<8x48xf32> to vector<8x16xf32>
    %544 = vector.extract_strided_slice %526 {offsets = [0, 32], sizes = [8, 16], strides = [1, 1]} : vector<8x48xf32> to vector<8x16xf32>
    %545 = arith.mulf %534, %544 : vector<8x16xf32>
    %546 = arith.addf %543, %545 : vector<8x16xf32>
    %547 = math.tanh %546 : vector<8x16xf32>
    %cst_149 = arith.constant 1.000000e+00 : f32
    %548 = vector.broadcast %cst_149 : f32 to vector<8x16xf32>
    %549 = arith.subf %548, %542 : vector<8x16xf32>
    %550 = arith.mulf %549, %547 : vector<8x16xf32>
    %551 = arith.mulf %542, %515 : vector<8x16xf32>
    %552 = arith.addf %550, %551 : vector<8x16xf32>
    %553 = vector.broadcast %520 : i32 to vector<8x1xi32>
    %554 = arith.cmpi sgt, %16, %553 : vector<8x1xi32>
    %555 = vector.shape_cast %554 : vector<8x1xi1> to vector<8x1xi1>
    %556 = vector.broadcast %555 : vector<8x1xi1> to vector<8x16xi1>
    %557 = arith.select %556, %552, %515 : vector<8x16xi1>, vector<8x16xf32>
    %558 = arith.index_cast %520 : i32 to index
    %c0_150 = arith.constant 0 : index
    %c0_151 = arith.constant 0 : index
    %559 = vector.load %arg22[%558, %c0_150, %c0_151] : memref<8x8x16xf32, #tpu.memory_space<vmem>>, vector<1x8x16xf32>
    %560 = vector.shape_cast %559 : vector<1x8x16xf32> to vector<8x16xf32>
    %561 = vector.shape_cast %557 : vector<8x16xf32> to vector<1x8x16xf32>
    tpu.vector_store %arg22[%558, %c0_150, %c0_151], %561 {strides = array<i32>} : memref<8x8x16xf32, #tpu.memory_space<vmem>>, vector<1x8x16xf32>,
    %c6_i32_152 = arith.constant 6 : i32
    %c7_i32_153 = arith.constant 7 : i32
    %562 = arith.subi %c7_i32_153, %c6_i32_152 : i32
    %563 = arith.index_cast %562 : i32 to index
    %c0_154 = arith.constant 0 : index
    %c0_155 = arith.constant 0 : index
    %564 = vector.load %arg20[%563, %c0_154, %c0_155] : memref<8x8x48xf32, #tpu.memory_space<vmem>>, vector<1x8x48xf32>
    %565 = vector.shape_cast %564 : vector<1x8x48xf32> to vector<8x48xf32>
    %cst_156 = arith.constant dense<0.000000e+00> : vector<8x48xf32>
    %566 = tpu.matmul %557, %18, %cst_156 {dimension_numbers = #tpu.dot_dimension_numbers<[1], [0], [0], [1], [0, 0, 1, 1], [], []>} : vector<8x16xf32>, vector<16x48xf32>, vector<8x48xf32> -> vector<8x48xf32>
    %567 = vector.broadcast %20 : vector<1x48xf32> to vector<8x48xf32>
    %568 = arith.addf %566, %567 : vector<8x48xf32>
    %569 = vector.extract_strided_slice %565 {offsets = [0, 0], sizes = [8, 16], strides = [1, 1]} : vector<8x48xf32> to vector<8x16xf32>
    %570 = vector.extract_strided_slice %568 {offsets = [0, 0], sizes = [8, 16], strides = [1, 1]} : vector<8x48xf32> to vector<8x16xf32>
    %571 = arith.addf %569, %570 : vector<8x16xf32>
    %572 = arith.negf %571 : vector<8x16xf32>
    %573 = math.exp %572 : vector<8x16xf32>
    %cst_157 = arith.constant 1.000000e+00 : f32
    %574 = vector.broadcast %cst_157 : f32 to vector<8x16xf32>
    %575 = arith.addf %574, %573 : vector<8x16xf32>
    %576 = arith.divf %574, %575 : vector<8x16xf32>
    %577 = vector.extract_strided_slice %565 {offsets = [0, 16], sizes = [8, 16], strides = [1, 1]} : vector<8x48xf32> to vector<8x16xf32>
    %578 = vector.extract_strided_slice %568 {offsets = [0, 16], sizes = [8, 16], strides = [1, 1]} : vector<8x48xf32> to vector<8x16xf32>
    %579 = arith.addf %577, %578 : vector<8x16xf32>
    %580 = arith.negf %579 : vector<8x16xf32>
    %581 = math.exp %580 : vector<8x16xf32>
    %cst_158 = arith.constant 1.000000e+00 : f32
    %582 = vector.broadcast %cst_158 : f32 to vector<8x16xf32>
    %583 = arith.addf %582, %581 : vector<8x16xf32>
    %584 = arith.divf %582, %583 : vector<8x16xf32>
    %585 = vector.extract_strided_slice %565 {offsets = [0, 32], sizes = [8, 16], strides = [1, 1]} : vector<8x48xf32> to vector<8x16xf32>
    %586 = vector.extract_strided_slice %568 {offsets = [0, 32], sizes = [8, 16], strides = [1, 1]} : vector<8x48xf32> to vector<8x16xf32>
    %587 = arith.mulf %576, %586 : vector<8x16xf32>
    %588 = arith.addf %585, %587 : vector<8x16xf32>
    %589 = math.tanh %588 : vector<8x16xf32>
    %cst_159 = arith.constant 1.000000e+00 : f32
    %590 = vector.broadcast %cst_159 : f32 to vector<8x16xf32>
    %591 = arith.subf %590, %584 : vector<8x16xf32>
    %592 = arith.mulf %591, %589 : vector<8x16xf32>
    %593 = arith.mulf %584, %557 : vector<8x16xf32>
    %594 = arith.addf %592, %593 : vector<8x16xf32>
    %595 = vector.broadcast %562 : i32 to vector<8x1xi32>
    %596 = arith.cmpi sgt, %16, %595 : vector<8x1xi32>
    %597 = vector.shape_cast %596 : vector<8x1xi1> to vector<8x1xi1>
    %598 = vector.broadcast %597 : vector<8x1xi1> to vector<8x16xi1>
    %599 = arith.select %598, %594, %557 : vector<8x16xi1>, vector<8x16xf32>
    %600 = arith.index_cast %562 : i32 to index
    %c0_160 = arith.constant 0 : index
    %c0_161 = arith.constant 0 : index
    %601 = vector.load %arg22[%600, %c0_160, %c0_161] : memref<8x8x16xf32, #tpu.memory_space<vmem>>, vector<1x8x16xf32>
    %602 = vector.shape_cast %601 : vector<1x8x16xf32> to vector<8x16xf32>
    %603 = vector.shape_cast %599 : vector<8x16xf32> to vector<1x8x16xf32>
    tpu.vector_store %arg22[%600, %c0_160, %c0_161], %603 {strides = array<i32>} : memref<8x8x16xf32, #tpu.memory_space<vmem>>, vector<1x8x16xf32>,
    %c7_i32_162 = arith.constant 7 : i32
    %c7_i32_163 = arith.constant 7 : i32
    %604 = arith.subi %c7_i32_163, %c7_i32_162 : i32
    %605 = arith.index_cast %604 : i32 to index
    %c0_164 = arith.constant 0 : index
    %c0_165 = arith.constant 0 : index
    %606 = vector.load %arg20[%605, %c0_164, %c0_165] : memref<8x8x48xf32, #tpu.memory_space<vmem>>, vector<1x8x48xf32>
    %607 = vector.shape_cast %606 : vector<1x8x48xf32> to vector<8x48xf32>
    %cst_166 = arith.constant dense<0.000000e+00> : vector<8x48xf32>
    %608 = tpu.matmul %599, %18, %cst_166 {dimension_numbers = #tpu.dot_dimension_numbers<[1], [0], [0], [1], [0, 0, 1, 1], [], []>} : vector<8x16xf32>, vector<16x48xf32>, vector<8x48xf32> -> vector<8x48xf32>
    %609 = vector.broadcast %20 : vector<1x48xf32> to vector<8x48xf32>
    %610 = arith.addf %608, %609 : vector<8x48xf32>
    %611 = vector.extract_strided_slice %607 {offsets = [0, 0], sizes = [8, 16], strides = [1, 1]} : vector<8x48xf32> to vector<8x16xf32>
    %612 = vector.extract_strided_slice %610 {offsets = [0, 0], sizes = [8, 16], strides = [1, 1]} : vector<8x48xf32> to vector<8x16xf32>
    %613 = arith.addf %611, %612 : vector<8x16xf32>
    %614 = arith.negf %613 : vector<8x16xf32>
    %615 = math.exp %614 : vector<8x16xf32>
    %cst_167 = arith.constant 1.000000e+00 : f32
    %616 = vector.broadcast %cst_167 : f32 to vector<8x16xf32>
    %617 = arith.addf %616, %615 : vector<8x16xf32>
    %618 = arith.divf %616, %617 : vector<8x16xf32>
    %619 = vector.extract_strided_slice %607 {offsets = [0, 16], sizes = [8, 16], strides = [1, 1]} : vector<8x48xf32> to vector<8x16xf32>
    %620 = vector.extract_strided_slice %610 {offsets = [0, 16], sizes = [8, 16], strides = [1, 1]} : vector<8x48xf32> to vector<8x16xf32>
    %621 = arith.addf %619, %620 : vector<8x16xf32>
    %622 = arith.negf %621 : vector<8x16xf32>
    %623 = math.exp %622 : vector<8x16xf32>
    %cst_168 = arith.constant 1.000000e+00 : f32
    %624 = vector.broadcast %cst_168 : f32 to vector<8x16xf32>
    %625 = arith.addf %624, %623 : vector<8x16xf32>
    %626 = arith.divf %624, %625 : vector<8x16xf32>
    %627 = vector.extract_strided_slice %607 {offsets = [0, 32], sizes = [8, 16], strides = [1, 1]} : vector<8x48xf32> to vector<8x16xf32>
    %628 = vector.extract_strided_slice %610 {offsets = [0, 32], sizes = [8, 16], strides = [1, 1]} : vector<8x48xf32> to vector<8x16xf32>
    %629 = arith.mulf %618, %628 : vector<8x16xf32>
    %630 = arith.addf %627, %629 : vector<8x16xf32>
    %631 = math.tanh %630 : vector<8x16xf32>
    %cst_169 = arith.constant 1.000000e+00 : f32
    %632 = vector.broadcast %cst_169 : f32 to vector<8x16xf32>
    %633 = arith.subf %632, %626 : vector<8x16xf32>
    %634 = arith.mulf %633, %631 : vector<8x16xf32>
    %635 = arith.mulf %626, %599 : vector<8x16xf32>
    %636 = arith.addf %634, %635 : vector<8x16xf32>
    %637 = vector.broadcast %604 : i32 to vector<8x1xi32>
    %638 = arith.cmpi sgt, %16, %637 : vector<8x1xi32>
    %639 = vector.shape_cast %638 : vector<8x1xi1> to vector<8x1xi1>
    %640 = vector.broadcast %639 : vector<8x1xi1> to vector<8x16xi1>
    %641 = arith.select %640, %636, %599 : vector<8x16xi1>, vector<8x16xf32>
    %642 = arith.index_cast %604 : i32 to index
    %c0_170 = arith.constant 0 : index
    %c0_171 = arith.constant 0 : index
    %643 = vector.load %arg22[%642, %c0_170, %c0_171] : memref<8x8x16xf32, #tpu.memory_space<vmem>>, vector<1x8x16xf32>
    %644 = vector.shape_cast %643 : vector<1x8x16xf32> to vector<8x16xf32>
    %645 = vector.shape_cast %641 : vector<8x16xf32> to vector<1x8x16xf32>
    tpu.vector_store %arg22[%642, %c0_170, %c0_171], %645 {strides = array<i32>} : memref<8x8x16xf32, #tpu.memory_space<vmem>>, vector<1x8x16xf32>,
    %c8_i32_172 = arith.constant 8 : i32
    %c0_173 = arith.constant 0 : index
    %c0_174 = arith.constant 0 : index
    %c0_175 = arith.constant 0 : index
    %646 = vector.load %arg21[%c0_173, %c0_174, %c0_175] : memref<8x8x16xf32, #tpu.memory_space<vmem>>, vector<8x8x16xf32>
    %c0_176 = arith.constant 0 : index
    %c0_177 = arith.constant 0 : index
    %c0_178 = arith.constant 0 : index
    %647 = vector.load %arg22[%c0_176, %c0_177, %c0_178] : memref<8x8x16xf32, #tpu.memory_space<vmem>>, vector<8x8x16xf32>
    %648 = vector.shape_cast %646 : vector<8x8x16xf32> to vector<64x16xf32>
    %649 = vector.shape_cast %647 : vector<8x8x16xf32> to vector<64x16xf32>
    %c0_179 = arith.constant 0 : index
    %c0_180 = arith.constant 0 : index
    %650 = vector.load %arg12[%c0_179, %c0_180] : memref<16x16xf32, #tpu.memory_space<vmem>>, vector<16x16xf32>
    %cst_181 = arith.constant dense<0.000000e+00> : vector<64x16xf32>
    %651 = tpu.matmul %648, %650, %cst_181 {dimension_numbers = #tpu.dot_dimension_numbers<[1], [0], [0], [1], [0, 0, 1, 1], [], []>} : vector<64x16xf32>, vector<16x16xf32>, vector<64x16xf32> -> vector<64x16xf32>
    %c0_182 = arith.constant 0 : index
    %c0_183 = arith.constant 0 : index
    %652 = vector.load %arg13[%c0_182, %c0_183] : memref<16x16xf32, #tpu.memory_space<vmem>>, vector<16x16xf32>
    %cst_184 = arith.constant dense<0.000000e+00> : vector<64x16xf32>
    %653 = tpu.matmul %649, %652, %cst_184 {dimension_numbers = #tpu.dot_dimension_numbers<[1], [0], [0], [1], [0, 0, 1, 1], [], []>} : vector<64x16xf32>, vector<16x16xf32>, vector<64x16xf32> -> vector<64x16xf32>
    %654 = arith.addf %651, %653 : vector<64x16xf32>
    %c0_185 = arith.constant 0 : index
    %c0_186 = arith.constant 0 : index
    %655 = vector.load %arg14[%c0_185, %c0_186] : memref<1x16xf32, #tpu.memory_space<vmem>>, vector<1x16xf32>
    %656 = vector.broadcast %655 : vector<1x16xf32> to vector<64x16xf32>
    %657 = arith.addf %654, %656 : vector<64x16xf32>
    %658 = math.tanh %657 : vector<64x16xf32>
    %659 = vector.shape_cast %658 : vector<64x16xf32> to vector<8x8x16xf32>
    %c0_187 = arith.constant 0 : index
    %c0_188 = arith.constant 0 : index
    %660 = vector.load %arg15[%c0_187, %c0_188] : memref<1x16xf32, #tpu.memory_space<vmem>>, vector<1x16xf32>
    %661 = vector.shape_cast %660 : vector<1x16xf32> to vector<1x1x16xf32>
    %662 = vector.broadcast %661 : vector<1x1x16xf32> to vector<8x8x16xf32>
    %663 = arith.mulf %659, %662 : vector<8x8x16xf32>
    %cst_189 = arith.constant dense<0.000000e+00> : vector<8x8xf32>
    %664 = vector.multi_reduction <add>, %663, %cst_189 [2] : vector<8x8x16xf32> to vector<8x8xf32>
    %c0_190 = arith.constant 0 : index
    %c0_191 = arith.constant 0 : index
    %665 = vector.load %arg3[%c0_190, %c0_191] : memref<1x8xi32, #tpu.memory_space<vmem>>, vector<1x8xi32>
    %666 = tpu.iota {dimensions = array<i32: 0>} : vector<8x8xi32>
    %667 = vector.broadcast %665 : vector<1x8xi32> to vector<8x8xi32>
    %668 = arith.cmpi slt, %666, %667 : vector<8x8xi32>
    %cst_192 = arith.constant -1.000000e+30 : f32
    %669 = vector.broadcast %cst_192 : f32 to vector<8x8xf32>
    %670 = arith.select %668, %664, %669 : vector<8x8xi1>, vector<8x8xf32>
    %cst_193 = arith.constant dense<0xFF800000> : vector<8xf32>
    %671 = vector.multi_reduction <maximumf>, %670, %cst_193 [0] : vector<8x8xf32> to vector<8xf32>
    %672 = vector.shape_cast %671 : vector<8xf32> to vector<1x8xf32>
    %673 = vector.broadcast %672 : vector<1x8xf32> to vector<8x8xf32>
    %674 = arith.subf %670, %673 : vector<8x8xf32>
    %675 = math.exp %674 : vector<8x8xf32>
    %cst_194 = arith.constant 0.000000e+00 : f32
    %676 = vector.broadcast %cst_194 : f32 to vector<8x8xf32>
    %677 = arith.select %668, %675, %676 : vector<8x8xi1>, vector<8x8xf32>
    %cst_195 = arith.constant dense<0.000000e+00> : vector<8xf32>
    %678 = vector.multi_reduction <add>, %677, %cst_195 [0] : vector<8x8xf32> to vector<8xf32>
    %679 = vector.shape_cast %678 : vector<8xf32> to vector<1x8xf32>
    %cst_196 = arith.constant 0.000000e+00 : f32
    %680 = vector.broadcast %cst_196 : f32 to vector<1x8xf32>
    %681 = arith.cmpf ogt, %679, %680 : vector<1x8xf32>
    %cst_197 = arith.constant 1.000000e+00 : f32
    %682 = vector.broadcast %cst_197 : f32 to vector<1x8xf32>
    %683 = arith.select %681, %679, %682 : vector<1x8xi1>, vector<1x8xf32>
    %684 = vector.broadcast %683 : vector<1x8xf32> to vector<8x8xf32>
    %685 = arith.divf %677, %684 : vector<8x8xf32>
    %c0_198 = arith.constant 0 : index
    %c0_199 = arith.constant 0 : index
    %686 = vector.load %arg18[%c0_198, %c0_199] : memref<8x8xf32, #tpu.memory_space<vmem>>, vector<8x8xf32>
    tpu.vector_store %arg18[%c0_198, %c0_199], %685 {strides = array<i32>} : memref<8x8xf32, #tpu.memory_space<vmem>>, vector<8x8xf32>,
    %687 = vector.shape_cast %685 : vector<8x8xf32> to vector<8x8x1xf32>
    %688 = vector.broadcast %687 : vector<8x8x1xf32> to vector<8x8x16xf32>
    %689 = arith.mulf %646, %688 : vector<8x8x16xf32>
    %cst_200 = arith.constant dense<0.000000e+00> : vector<8x16xf32>
    %690 = vector.multi_reduction <add>, %689, %cst_200 [0] : vector<8x8x16xf32> to vector<8x16xf32>
    %c0_201 = arith.constant 0 : index
    %c0_202 = arith.constant 0 : index
    %691 = vector.load %arg16[%c0_201, %c0_202] : memref<8x16xf32, #tpu.memory_space<vmem>>, vector<8x16xf32>
    tpu.vector_store %arg16[%c0_201, %c0_202], %690 {strides = array<i32>} : memref<8x16xf32, #tpu.memory_space<vmem>>, vector<8x16xf32>,
    %692 = vector.broadcast %687 : vector<8x8x1xf32> to vector<8x8x16xf32>
    %693 = arith.mulf %647, %692 : vector<8x8x16xf32>
    %cst_203 = arith.constant dense<0.000000e+00> : vector<8x16xf32>
    %694 = vector.multi_reduction <add>, %693, %cst_203 [0] : vector<8x8x16xf32> to vector<8x16xf32>
    %c0_204 = arith.constant 0 : index
    %c0_205 = arith.constant 0 : index
    %695 = vector.load %arg17[%c0_204, %c0_205] : memref<8x16xf32, #tpu.memory_space<vmem>>, vector<8x16xf32>
    tpu.vector_store %arg17[%c0_204, %c0_205], %694 {strides = array<i32>} : memref<8x16xf32, #tpu.memory_space<vmem>>, vector<8x16xf32>,
    return
  }
  func.func @transform_0(%arg0: i32) -> (i32, i32, i32) {
    %c0_i32 = arith.constant 0 : i32
    %c0_i32_0 = arith.constant 0 : i32
    %c0_i32_1 = arith.constant 0 : i32
    return %c0_i32, %arg0, %c0_i32_0 : i32, i32, i32
  }
  func.func @transform_1(%arg0: i32) -> (i32, i32) {
    %c0_i32 = arith.constant 0 : i32
    %c0_i32_0 = arith.constant 0 : i32
    return %arg0, %c0_i32 : i32, i32
  }
  func.func @transform_2(%arg0: i32) -> (i32, i32) {
    %c0_i32 = arith.constant 0 : i32
    %c0_i32_0 = arith.constant 0 : i32
    return %c0_i32, %arg0 : i32, i32
  }
  func.func @transform_3(%arg0: i32) -> (i32, i32) {
    %c0_i32 = arith.constant 0 : i32
    %c0_i32_0 = arith.constant 0 : i32
    %c0_i32_1 = arith.constant 0 : i32
    return %c0_i32, %c0_i32_0 : i32, i32
  }
  func.func @transform_4(%arg0: i32) -> (i32, i32) {
    %c0_i32 = arith.constant 0 : i32
    %c0_i32_0 = arith.constant 0 : i32
    %c0_i32_1 = arith.constant 0 : i32
    return %c0_i32, %c0_i32_0 : i32, i32
  }
  func.func @transform_5(%arg0: i32) -> (i32, i32) {
    %c0_i32 = arith.constant 0 : i32
    %c0_i32_0 = arith.constant 0 : i32
    %c0_i32_1 = arith.constant 0 : i32
    return %c0_i32, %c0_i32_0 : i32, i32
  }
  func.func @transform_6(%arg0: i32) -> (i32, i32) {
    %c0_i32 = arith.constant 0 : i32
    %c0_i32_0 = arith.constant 0 : i32
    %c0_i32_1 = arith.constant 0 : i32
    return %c0_i32, %c0_i32_0 : i32, i32
  }
  func.func @transform_7(%arg0: i32) -> (i32, i32) {
    %c0_i32 = arith.constant 0 : i32
    %c0_i32_0 = arith.constant 0 : i32
    %c0_i32_1 = arith.constant 0 : i32
    return %c0_i32, %c0_i32_0 : i32, i32
  }
  func.func @transform_8(%arg0: i32) -> (i32, i32) {
    %c0_i32 = arith.constant 0 : i32
    %c0_i32_0 = arith.constant 0 : i32
    %c0_i32_1 = arith.constant 0 : i32
    return %c0_i32, %c0_i32_0 : i32, i32
  }
  func.func @transform_9(%arg0: i32) -> (i32, i32) {
    %c0_i32 = arith.constant 0 : i32
    %c0_i32_0 = arith.constant 0 : i32
    %c0_i32_1 = arith.constant 0 : i32
    return %c0_i32, %c0_i32_0 : i32, i32
  }
  func.func @transform_10(%arg0: i32) -> (i32, i32) {
    %c0_i32 = arith.constant 0 : i32
    %c0_i32_0 = arith.constant 0 : i32
    %c0_i32_1 = arith.constant 0 : i32
    return %c0_i32, %c0_i32_0 : i32, i32
  }
  func.func @transform_11(%arg0: i32) -> (i32, i32) {
    %c0_i32 = arith.constant 0 : i32
    %c0_i32_0 = arith.constant 0 : i32
    %c0_i32_1 = arith.constant 0 : i32
    return %c0_i32, %c0_i32_0 : i32, i32
  }
  func.func @transform_12(%arg0: i32) -> (i32, i32) {
    %c0_i32 = arith.constant 0 : i32
    %c0_i32_0 = arith.constant 0 : i32
    %c0_i32_1 = arith.constant 0 : i32
    return %c0_i32, %c0_i32_0 : i32, i32
  }
  func.func @transform_13(%arg0: i32) -> (i32, i32) {
    %c0_i32 = arith.constant 0 : i32
    %c0_i32_0 = arith.constant 0 : i32
    %c0_i32_1 = arith.constant 0 : i32
    return %c0_i32, %c0_i32_0 : i32, i32
  }
  func.func @transform_14(%arg0: i32) -> (i32, i32) {
    %c0_i32 = arith.constant 0 : i32
    %c0_i32_0 = arith.constant 0 : i32
    %c0_i32_1 = arith.constant 0 : i32
    return %c0_i32, %c0_i32_0 : i32, i32
  }
  func.func @transform_15(%arg0: i32) -> (i32, i32) {
    %c0_i32 = arith.constant 0 : i32
    %c0_i32_0 = arith.constant 0 : i32
    return %arg0, %c0_i32 : i32, i32
  }
  func.func @transform_16(%arg0: i32) -> (i32, i32) {
    %c0_i32 = arith.constant 0 : i32
    %c0_i32_0 = arith.constant 0 : i32
    return %arg0, %c0_i32 : i32, i32
  }
  func.func @transform_17(%arg0: i32) -> (i32, i32) {
    %c0_i32 = arith.constant 0 : i32
    %c0_i32_0 = arith.constant 0 : i32
    return %c0_i32, %arg0 : i32, i32
  }
}

</mosaic_0001>

<bundles_post_ra>
// kernel: tpu_custom_call.1
= control target key start
LH: loop header
LB: loop body
LE: loop exit
PB: predicated region body
PF: predicated region fallthrough
CT: control target
= control target key end

     0   :  { %s4158_s0 = inlined_call_operand.hbm [shape: bf16[8,8,32], index: 0, kind: input, shape index: {}]   ;;  %s4159_s1 = inlined_call_operand.vmem [shape: s32[8,1], index: 1, kind: input, shape index: {}]   ;;  %s4160_s2 = inlined_call_operand.vmem [shape: s32[1,8], index: 2, kind: input, shape index: {}]   ;;  %s4161_s3 = inlined_call_operand.vmem [shape: bf16[32,48], index: 3, kind: input, shape index: {}]   ;;  %s4162_s4 = inlined_call_operand.hbm [shape: bf16[32,48], index: 4, kind: input, shape index: {}]   ;;  %s4163_s5 = inlined_call_operand.hbm [shape: f32[16,48], index: 5, kind: input, shape index: {}]   ;;  %s4164_s6 = inlined_call_operand.hbm [shape: f32[16,48], index: 6, kind: input, shape index: {}]   ;;  %s4165_s7 = inlined_call_operand.vmem [shape: f32[1,48], index: 7, kind: input, shape index: {}]   ;;  %s4166_s8 = inlined_call_operand.hbm [shape: f32[1,48], index: 8, kind: input, shape index: {}]   ;;  %s4167_s9 = inlined_call_operand.hbm [shape: f32[1,48], index: 9, kind: input, shape index: {}]   ;;  %s4168_s10 = inlined_call_operand.hbm [shape: f32[1,48], index: 10, kind: input, shape index: {}]   ;;  %s4169_s11 = inlined_call_operand.vmem [shape: f32[16,16], index: 11, kind: input, shape index: {}]   ;;  %s4170_s12 = inlined_call_operand.vmem [shape: f32[16,16], index: 12, kind: input, shape index: {}]   ;;  %s4171_s13 = inlined_call_operand.vmem [shape: f32[1,16], index: 13, kind: input, shape index: {}]   ;;  %s4172_s14 = inlined_call_operand.vmem [shape: f32[1,16], index: 14, kind: input, shape index: {}]   ;;  %s4173_s15 = inlined_call_operand.hbm [shape: f32[8,16], index: 15, kind: output, shape index: {0}]   ;;  %s4174_s16 = inlined_call_operand.hbm [shape: f32[8,16], index: 16, kind: output, shape index: {1}]   ;;  %s4175_s17 = inlined_call_operand.hbm [shape: f32[8,8], index: 17, kind: output, shape index: {2}]  }
   0x1   :  { %4179 = sst [smem:[#allocation28_spill]] %s4158_s0 }
   0x2   :  { %4180 = sst [smem:[#allocation29_spill]] %s4159_s1 }
   0x3   :  { %4181 = sst [smem:[#allocation30_spill]] %s4175_s17 }
   0x4   :  { %23 = vsyncpa [#allocation7], 0 }
   0x5   :  { %24 = vsyncpa [#allocation10], 0 }
   0x6   :  { %25 = vsyncpa [#allocation13], 0 }
   0x7   :  { %26 = vsyncpa [#allocation16], 0 }
   0x8   :  { %27 = vsyncpa [#allocation8], 0 }
   0x9   :  { %28 = vsyncpa [#allocation20], 0  ;;  %s3486_s24 = smov [#allocation9]   ;;  %s3254_s28 = scalar_lea.hbm %s4162_s4, 256 }
   0xa   :  { %s52_s25 = sshll.u32 %s3486_s24, 4  ;;  %p3255_p0 = scmp.ne.s32.totalorder %s4162_s4, %s3254_s28  ;;  %s53_s25 = int_to_ptr.vmem [resolvable:$true] %s52_s25 }
   0xb   :  { %p3258_p1 = scmp.lt.u32.totalorder %s3254_s28, %s4162_s4 }
   0xd   :  { %p3260_p2 = pnand %p3258_p1, %p3255_p0 }
   0xf   :  { %3263 = shalt.err (!%p3260_p2)
}
  0x10   :  { %s3264_s19 = scalar_lea.vmem %s53_s25, 256  ;;  %p3269_p4 = scmp.lt.s32.totalorder %s53_s25, %s53_s25 }
  0x11   :  { %p3265_p3 = scmp.ne.s32.totalorder %s53_s25, %s3264_s19  ;;  %p3270_p5 = scmp.lt.s32.totalorder %s3264_s19, %s3264_s19 }
  0x13   :  { %p3271_p6 = por %p3270_p5, %p3269_p4 }
  0x15   :  { %p3272_p7 = pnand %p3271_p6, %p3265_p3 }
  0x17   :  { %3275 = shalt.err (!%p3272_p7)
}
  0x18   :  { %s3487_s1 = smov 64   ;;  %s3488_s20 = smov 4  }
  0x19   :  { %58 = dma.hbm_to_vmem [thread:$0]  %s4162_s4, 256, %s53_s25, [#allocation10], %s3487_s1, %s3487_s1, %s3488_s20  }
  0x1a   :  { %s3489_s23 = smov [#allocation12]   ;;  %s3490_s26 = smov [#allocation15]  }
  0x1b   :  { %s76_s24 = sshll.u32 %s3489_s23, 4  ;;  %s101_s27 = sshll.u32 %s3490_s26, 4  ;;  %s77_s24 = int_to_ptr.vmem [resolvable:$true] %s76_s24  ;;  %s102_s27 = int_to_ptr.vmem [resolvable:$true] %s101_s27 }
  0x1c   :  { %s3276_s0 = scalar_lea.hbm %s4164_s6, 256 }
  0x1d   :  { %p3277_p8 = scmp.ne.s32.totalorder %s4164_s6, %s3276_s0  ;;  %p3280_p9 = scmp.lt.u32.totalorder %s3276_s0, %s4164_s6 }
  0x1f   :  { %p3282_p10 = pnand %p3280_p9, %p3277_p8 }
  0x21   :  { %3285 = shalt.err (!%p3282_p10)
}
  0x22   :  { %s3286_s4 = scalar_lea.vmem %s77_s24, 256  ;;  %p3291_p12 = scmp.lt.s32.totalorder %s77_s24, %s77_s24 }
  0x23   :  { %p3287_p11 = scmp.ne.s32.totalorder %s77_s24, %s3286_s4  ;;  %p3292_p13 = scmp.lt.s32.totalorder %s3286_s4, %s3286_s4 }
  0x25   :  { %p3293_p0 = por %p3292_p13, %p3291_p12 }
  0x27   :  { %p3294_p1 = pnand %p3293_p0, %p3287_p11 }
  0x29   :  { %3297 = shalt.err (!%p3294_p1)
}
  0x2a   :  { %s4178_s25 = smov 128   ;;  %s3492_s21 = smov 8  }
  0x2b   :  { %82 = dma.hbm_to_vmem [thread:$0]  %s4164_s6, 256, %s77_s24, [#allocation13], %s4178_s25, %s4178_s25, %s3492_s21  }
  0x2c   :  { %s3298_s28 = scalar_lea.hbm %s4167_s9, 16 }
  0x2d   :  { %p3299_p2 = scmp.ne.s32.totalorder %s4167_s9, %s3298_s28  ;;  %p3302_p3 = scmp.lt.u32.totalorder %s3298_s28, %s4167_s9 }
  0x2f   :  { %p3304_p4 = pnand %p3302_p3, %p3299_p2 }
  0x31   :  { %3307 = shalt.err (!%p3304_p4)
}
  0x32   :  { %s3308_s19 = scalar_lea.vmem %s102_s27, 16  ;;  %s3312_s4 = scalar_lea.vmem %s102_s27, 32 }
  0x33   :  { %p3309_p5 = scmp.ne.s32.totalorder %s102_s27, %s3308_s19  ;;  %p3313_p6 = scmp.lt.s32.totalorder %s102_s27, %s102_s27 }
  0x34   :  { %p3314_p7 = scmp.lt.s32.totalorder %s3312_s4, %s3308_s19 }
  0x36   :  { %p3315_p8 = por %p3314_p7, %p3313_p6 }
  0x38   :  { %p3316_p9 = pnand %p3315_p8, %p3309_p5 }
  0x3a   :  { %3319 = shalt.err (!%p3316_p9)
}
  0x3b   :  { %104 = dma.hbm_to_vmem [thread:$0]  %s4167_s9, 16, %s102_s27, [#allocation16]  }
  0x3c   :  { %s3493_s22 = smov [#allocation6]   ;;  %s3494_s17 = smov [#allocation11]  }
  0x3d   :  { %s34_s23 = sshll.u32 %s3493_s22, 4  ;;  %s64_s26 = sshll.u32 %s3494_s17, 4  ;;  %s35_s23 = int_to_ptr.vmem [resolvable:$true] %s34_s23  ;;  %s65_s26 = int_to_ptr.vmem [resolvable:$true] %s64_s26 }
  0x3e   :  { %s4182_s0 = sld [smem:[#allocation28_spill]] }
  0x44   :  { %s3320_s30 = scalar_lea.hbm %s4182_s0, 512 }
  0x45   :  { %p3321_p10 = scmp.ne.s32.totalorder %s4182_s0, %s3320_s30  ;;  %p3324_p11 = scmp.lt.u32.totalorder %s3320_s30, %s4182_s0 }
  0x47   :  { %p3326_p12 = pnand %p3324_p11, %p3321_p10 }
  0x49   :  { %3329 = shalt.err (!%p3326_p12)
}
  0x4a   :  { %s3330_s9 = scalar_lea.vmem %s35_s23, 512  ;;  %p3335_p0 = scmp.lt.s32.totalorder %s35_s23, %s35_s23 }
  0x4b   :  { %p3331_p13 = scmp.ne.s32.totalorder %s35_s23, %s3330_s9  ;;  %p3336_p1 = scmp.lt.s32.totalorder %s3330_s9, %s3330_s9 }
  0x4d   :  { %p3337_p2 = por %p3336_p1, %p3335_p0 }
  0x4f   :  { %p3338_p3 = pnand %p3337_p2, %p3331_p13 }
  0x51   :  { %3341 = shalt.err (!%p3338_p3)
}
  0x52   :  { %40 = dma.hbm_to_vmem [thread:$0]  %s4182_s0, 512, %s35_s23, [#allocation7], %s3487_s1, %s3487_s1, %s3488_s20  }
  0x53   :  { %s3342_s22 = scalar_lea.hbm %s4163_s5, 256 }
  0x54   :  { %p3343_p4 = scmp.ne.s32.totalorder %s4163_s5, %s3342_s22  ;;  %p3346_p5 = scmp.lt.u32.totalorder %s3342_s22, %s4163_s5 }
  0x56   :  { %p3348_p6 = pnand %p3346_p5, %p3343_p4 }
  0x58   :  { %3351 = shalt.err (!%p3348_p6)
}
  0x59   :  { %s3352_s18 = scalar_lea.vmem %s65_s26, 256  ;;  %p3357_p8 = scmp.lt.s32.totalorder %s65_s26, %s65_s26 }
  0x5a   :  { %p3353_p7 = scmp.ne.s32.totalorder %s65_s26, %s3352_s18  ;;  %p3358_p9 = scmp.lt.s32.totalorder %s3352_s18, %s3352_s18 }
  0x5c   :  { %p3359_p10 = por %p3358_p9, %p3357_p8 }
  0x5e   :  { %p3360_p11 = pnand %p3359_p10, %p3353_p7 }
  0x60   :  { %3363 = shalt.err (!%p3360_p11)
}
  0x61   :  { %s4183_s1 = smov 128   ;;  %s3495_s0 = smov [#allocation14]  }
  0x62   :  { %70 = dma.hbm_to_vmem [thread:$0]  %s4163_s5, 256, %s65_s26, [#allocation10], %s4183_s1, %s4183_s1, %s3492_s21  }
  0x63   :  { %s91_s19 = sshll.u32 %s3495_s0, 4  ;;  %s3496_s4 = smov [#allocation17]   ;;  %s92_s19 = int_to_ptr.vmem [resolvable:$true] %s91_s19 }
  0x64   :  { %s111_s9 = sshll.u32 %s3496_s4, 4  ;;  %s3364_s25 = scalar_lea.hbm %s4166_s8, 16  ;;  %s112_s9 = int_to_ptr.vmem [resolvable:$true] %s111_s9 }
  0x65   :  { %p3365_p12 = scmp.ne.s32.totalorder %s4166_s8, %s3364_s25  ;;  %p3368_p13 = scmp.lt.u32.totalorder %s3364_s25, %s4166_s8 }
  0x67   :  { %p3370_p0 = pnand %p3368_p13, %p3365_p12 }
  0x69   :  { %3373 = shalt.err (!%p3370_p0)
}
  0x6a   :  { %s3374_s5 = scalar_lea.vmem %s92_s19, 16  ;;  %s3378_s21 = scalar_lea.vmem %s92_s19, 32 }
  0x6b   :  { %p3375_p1 = scmp.ne.s32.totalorder %s92_s19, %s3374_s5  ;;  %p3379_p2 = scmp.lt.s32.totalorder %s92_s19, %s92_s19 }
  0x6c   :  { %p3380_p3 = scmp.lt.s32.totalorder %s3378_s21, %s3374_s5 }
  0x6e   :  { %p3381_p4 = por %p3380_p3, %p3379_p2 }
  0x70   :  { %p3382_p5 = pnand %p3381_p4, %p3375_p1 }
  0x72   :  { %3385 = shalt.err (!%p3382_p5)
}
  0x73   :  { %94 = dma.hbm_to_vmem [thread:$0]  %s4166_s8, 16, %s92_s19, [#allocation13]  }
  0x74   :  { %s3386_s1 = scalar_lea.hbm %s4168_s10, 16 }
  0x75   :  { %p3387_p6 = scmp.ne.s32.totalorder %s4168_s10, %s3386_s1  ;;  %p3390_p7 = scmp.lt.u32.totalorder %s3386_s1, %s4168_s10 }
  0x77   :  { %p3392_p8 = pnand %p3390_p7, %p3387_p6 }
  0x79   :  { %3395 = shalt.err (!%p3392_p8)
}
  0x7a   :  { %s3396_s27 = scalar_lea.vmem %s112_s9, 16  ;;  %s3400_s6 = scalar_lea.vmem %s112_s9, 32 }
  0x7b   :  { %p3397_p9 = scmp.ne.s32.totalorder %s112_s9, %s3396_s27  ;;  %p3401_p10 = scmp.lt.s32.totalorder %s112_s9, %s112_s9 }
  0x7c   :  { %p3402_p11 = scmp.lt.s32.totalorder %s3400_s6, %s3396_s27 }
  0x7e   :  { %p3403_p12 = por %p3402_p11, %p3401_p10 }
  0x80   :  { %p3404_p13 = pnand %p3403_p12, %p3397_p9 }
  0x82   :  { %3407 = shalt.err (!%p3404_p13)
}
  0x83   :  { %114 = dma.hbm_to_vmem [thread:$0]  %s4168_s10, 16, %s112_s9, [#allocation16]  }
  0x84   :  { %3474 = dma.done.wait [#allocation7], 512  }
  0x85   :  { %3475 = vsyncadd [#allocation7], 4294966784 }
  0x86   :  { %3476 = dma.done.wait [#allocation10], 512  }
  0x87   :  { %3477 = vsyncadd [#allocation10], 4294966784 }
  0x88   :  { %3478 = dma.done.wait [#allocation13], 272  }
  0x89   :  { %3479 = vsyncadd [#allocation13], 4294967024 }
  0x8a   :  { %3480 = dma.done.wait [#allocation16], 32  }
  0x8b   :  { %3481 = vsyncadd [#allocation16], 4294967264  ;;  %v3497_v0 = vmov 0.0|0.0   ;;  %vm3498_vm0 = vmmov 0   ;;  %v3499_v1 = vmov 0.0   ;;  %v3129_v2 = vld [vmem:[%s4161_s3] sm:$0xff]  }
  0x8c   :  { %3042 = vmatprep.subr.bf16.mxu0 %v3497_v0  ;;  %2902 = vmatprep.mubr.msk.f32.mxu0 %vm3498_vm0, %v3499_v1  ;;  %v380_v3 = vld [vmem:[#allocation11] sm:$0xff]  ;;  %v381_v4 = vld [vmem:[#allocation11 + $0x8] sm:$0xff]  ;;  %v3130_v6 = vld [vmem:[%s4161_s3 + $0x8] sm:$0xff]   ;;  %vm196_vm1 = vcmask 261120   ;;  %s3500_s17 = smov 96   ;;  %vm362_vm2 = vcmask 392192  }
  0x8d   :  { %2874 = vmatprep.subr.bf16.mxu1 %v3129_v2  ;;  %v3699_v5 = vpack.c.bf16 %v381_v4, %v380_v3  ;;  %v3131_v7 = vld [vmem:[#allocation6] sm:$0xff]   ;;  %v3132_v8 = vld [vmem:[#allocation6 + $0x8] sm:$0xff]   ;;  %v3713_v9 = vld [vmem:[#allocation15] ss:$0 sm:$0xff]  ;;  %s3502_s28 = smov 112   ;;  %vm393_vm3 = vcmask 130048  }
  0x8e   :  { %2875 = vmatpush3.bf16.msra.mxu1 %v3129_v2  ;;  %2878 = vmatprep.mubr.msk.bf16.mxu1 %vm196_vm1, %v3131_v7  ;;  %v3719_v13 = vld [vmem:[%s4165_s7] ss:$0 sm:$0xff]  ;;  %s3501_s7 = smov 32   ;;  %v3134_v33 = vld [vmem:[#allocation6 + $0x10] sm:$0xff]   ;;  %v3135_v34 = vld [vmem:[#allocation6 + $0x18] sm:$0xff]   ;;  %s4184_s26 = sld [smem:[#allocation29_spill]] }
  0x8f   :  { %3044 = vmatpush3.bf16.msra.mxu0 %v3699_v5  ;;  %2876 = vmatprep.subr.bf16.mxu1 %v3130_v6  ;;  %v3133_v32 = vld [vmem:[#allocation9] sm:$0xff]   ;;  %v3136_v35 = vld [vmem:[#allocation9 + $0x8] sm:$0xff]   ;;  %v2736_v50 = vld [vmem:[#allocation14] ss:$0 sm:$0xff]  ;;  %s3505_s19 = smov [#allocation18]   ;;  %s3506_s24 = smov [#allocation21]  }
  0x90   :  { %3048 = vmatprep.subr.bf16.mxu0 %v3497_v0  ;;  %s2686_s25 = sshll.u32 %s3505_s19, 4  ;;  %s2706_s10 = sshll.u32 %s3506_s24, 4  ;;  %s4106_s25 = int_to_ptr.vmem [resolvable:$true] %s2686_s25  ;;  %s4110_s10 = int_to_ptr.vmem [resolvable:$true] %s2706_s10 }
  0x92   :  { %2903 = vmatmul.mubr.f32.vlgmr.msra.gmra.mrb[0].mxu0 %v3499_v1  ;;  %2877 = vmatpush3.bf16.msra.mxu1 %v3130_v6 }
  0x93   :  { %3050 = vmatpush3.bf16.msra.mxu0 %v3699_v5  ;;  %2916 = vmatprep.mubr.msk.f32.mxu0 %vm3498_vm0, %v3499_v1 }
  0x94   :  { %3054 = vmatprep.subr.bf16.mxu0 %v3497_v0  ;;  %2886 = vmatprep.subr.bf16.mxu1 %v3133_v32 }
  0x95   :  { %2879 = vmatmul.mubr.msk.bf16.vlgmr.msra.gmra.mrb[0].mxu1 %vm196_vm1, %v3132_v8 }
  0x96   :  { %2882 = vmatprep.mubr.msk.bf16.mxu1 %vm196_vm1, %v3134_v33  ;;  %2887 = vmatpush3.bf16.msra.mxu1 %v3133_v32 }
  0x97   :  { %2888 = vmatprep.subr.bf16.mxu1 %v3136_v35 }
  0x9a   :  { %2889 = vmatpush3.bf16.msra.mxu1 %v3136_v35 }
  0x9b   :  { %3045 = vmatprep.subr.bf16.mxu1 %v3497_v0 }
  0x9d   :  { %2883 = vmatmul.mubr.msk.bf16.gmra.mrb[4].mxu1 %vm196_vm1, %v3135_v34 }
  0x9e   :  { %2890 = vmatprep.mubr.msk.bf16.mxu1 %vm196_vm1, %v3131_v7 }
  0xa5   :  { %2891 = vmatmul.mubr.msk.bf16.vlgmr.msra.gmra.mrb[8].mxu1 %vm196_vm1, %v3132_v8 }
  0xa6   :  { %3047 = vmatpush3.bf16.msra.mxu1 %v3699_v5  ;;  %2894 = vmatprep.mubr.msk.bf16.mxu1 %vm196_vm1, %v3134_v33 }
  0xa7   :  { %3051 = vmatprep.subr.bf16.mxu1 %v3497_v0 }
  0xad   :  { %2895 = vmatmul.mubr.msk.bf16.gmra.mrb[12].mxu1 %vm196_vm1, %v3135_v34 }
  0xae   :  { %2909 = vmatprep.mubr.msk.f32.mxu1 %vm3498_vm0, %v3499_v1 }
 0x165   :  { %v463_v10 = vpop.f32.mrb[0].mxu0 }
 0x166   :  { %v464_v11 = vadd.f32 %v3713_v9, %v463_v10  ;;  %v2904_v12 = vpop.f32.mrb[1].mxu0 }
 0x168   :  { %475 = vrot.lane.b32.xlu0 %v464_v11, %s3500_s17  ;;  %v2880_v14 = vpop.f32.mrb[0].mxu1 }
 0x169   :  { %v252_v15 = vadd.f32 %v2880_v14, %v3719_v13  ;;  %v243_v16 = vpop.f32.mrb[1].mxu1 }
 0x16a   :  { %v244_v17 = vadd.f32 %v3719_v13, %v243_v16  ;;  %v2881_v18 = vpop.f32.mrb[2].mxu1 }
 0x16b   :  { %365 = vst.msk [vmem:[#allocation2 + $0x10] sm:$0xff] %vm362_vm2, %v252_v15  ;;  %v255_v19 = vadd.f32 %v2881_v18, %v3719_v13  ;;  %v246_v20 = vpop.f32.mrb[3].mxu1 }
 0x16c   :  { %363 = vst.msk [vmem:[#allocation2] sm:$0xff] %vm362_vm2, %v244_v17  ;;  %v247_v21 = vadd.f32 %v3719_v13, %v246_v20 }
 0x16d   :  { %366 = vst.msk [vmem:[#allocation2 + $0x18] sm:$0xff] %vm362_vm2, %v255_v19 }
 0x16e   :  { %364 = vst.msk [vmem:[#allocation2 + $0x8] sm:$0xff] %vm362_vm2, %v247_v21 }
 0x170   :  { %v2884_v42 = vpop.f32.mrb[4].mxu1 }
 0x171   :  { %v268_v43 = vadd.f32 %v2884_v42, %v3719_v13  ;;  %v259_v44 = vpop.f32.mrb[5].mxu1 }
 0x172   :  { %v260_v45 = vadd.f32 %v3719_v13, %v259_v44  ;;  %v2885_v46 = vpop.f32.mrb[6].mxu1 }
 0x173   :  { %v386_v22 = vld [vmem:[#allocation2] sm:$0xff]  ;;  %369 = vst.msk [vmem:[#allocation2 + $0x30] sm:$0xff] %vm362_vm2, %v268_v43  ;;  %v271_v47 = vadd.f32 %v2885_v46, %v3719_v13  ;;  %v262_v48 = vpop.f32.mrb[7].mxu1 }
 0x174   :  { %v467_v23 = vadd.f32 %v464_v11, %v386_v22  ;;  %367 = vst.msk [vmem:[#allocation2 + $0x20] sm:$0xff] %vm362_vm2, %v260_v45  ;;  %v263_v49 = vadd.f32 %v3719_v13, %v262_v48 }
 0x175   :  { %370 = vst.msk [vmem:[#allocation2 + $0x38] sm:$0xff] %vm362_vm2, %v271_v47  ;;  %v499_v11 = vld [vmem:[#allocation2 + $0x8] sm:$0xff] }
 0x176   :  { %v2744_v24 = vmul.f32 -1.442695, %v467_v23  ;;  %368 = vst.msk [vmem:[#allocation2 + $0x28] sm:$0xff] %vm362_vm2, %v263_v49 }
 0x178   :  { %3137 = vpow2.f32 %v2744_v24  ;;  %v2892_v51 = vpop.f32.mrb[8].mxu1 }
 0x179   :  { %v340_v52 = vadd.f32 %v2892_v51, %v2736_v50  ;;  %v331_v53 = vpop.f32.mrb[9].mxu1  ;;  %v711_v51 = vld [vmem:[#allocation2 + $0x18] sm:$0xff] }
 0x17a   :  { %v332_v54 = vadd.f32 %v2736_v50, %v331_v53  ;;  %v2893_v55 = vpop.f32.mrb[10].mxu1 }
 0x17b   :  { %373 = vst.msk [vmem:[#allocation3 + $0x10] sm:$0xff] %vm362_vm2, %v340_v52  ;;  %v343_v56 = vadd.f32 %v2893_v55, %v2736_v50  ;;  %v334_v57 = vpop.f32.mrb[11].mxu1 }
 0x17c   :  { %371 = vst.msk [vmem:[#allocation3] sm:$0xff] %vm362_vm2, %v332_v54  ;;  %v335_v58 = vadd.f32 %v2736_v50, %v334_v57 }
 0x17d   :  { %374 = vst.msk [vmem:[#allocation3 + $0x18] sm:$0xff] %vm362_vm2, %v343_v56 }
 0x17e   :  { %372 = vst.msk [vmem:[#allocation3 + $0x8] sm:$0xff] %vm362_vm2, %v335_v58 }
 0x180   :  { %v2896_v59 = vpop.f32.mrb[12].mxu1 }
 0x181   :  { %v356_v60 = vadd.f32 %v2896_v59, %v2736_v50  ;;  %v347_v61 = vpop.f32.mrb[13].mxu1 }
 0x182   :  { %v3138_v25 = vpop.eup %3137  ;;  %v348_v62 = vadd.f32 %v2736_v50, %v347_v61  ;;  %v2897_v63 = vpop.f32.mrb[14].mxu1 }
 0x183   :  { %v471_v26 = vadd.f32 1.0, %v3138_v25  ;;  %377 = vst.msk [vmem:[#allocation3 + $0x30] sm:$0xff] %vm362_vm2, %v356_v60  ;;  %v359_v2 = vadd.f32 %v2897_v63, %v2736_v50  ;;  %v350_v3 = vpop.f32.mrb[15].mxu1 }
 0x184   :  { %375 = vst.msk [vmem:[#allocation3 + $0x20] sm:$0xff] %vm362_vm2, %v348_v62  ;;  %v351_v4 = vadd.f32 %v2736_v50, %v350_v3 }
 0x185   :  { %3139 = vrcp.f32 %v471_v26  ;;  %378 = vst.msk [vmem:[#allocation3 + $0x38] sm:$0xff] %vm362_vm2, %v359_v2 }
 0x186   :  { %376 = vst.msk [vmem:[#allocation3 + $0x28] sm:$0xff] %vm362_vm2, %v351_v4 }
 0x18f   :  { %v3140_v27 = vpop.eup %3139 }
 0x190   :  { %v485_v37 = vsub.f32 1.0, %v3140_v27  ;;  %v491_v39 = vmul.f32 0.0, %v3140_v27 }
 0x1da   :  { %v476_v28 = vpop.permute.xlu0 %475 }
 0x1db   :  { %v478_v29 = vmul.f32 %v3140_v27, %v476_v28 }
 0x1dd   :  { %480 = vrot.lane.b32.xlu0 %v478_v29, %s3501_s7 }
 0x24f   :  { %v481_v30 = vpop.permute.xlu0 %480 }
 0x250   :  { %v483_v31 = vadd.f32 %v481_v30, %v386_v22 }
 0x252   :  { %3141 = vtanh.f32 %v483_v31  ;;  %v605_v31 = vld [vmem:[#allocation2 + $0x10] sm:$0xff] }
 0x25c   :  { %v3142_v36 = vpop.eup %3141 }
 0x25d   :  { %487 = vrot.lane.b32.xlu1 %v3142_v36, %s3502_s28 }
 0x2cf   :  { %v488_v38 = vpop.permute.xlu1 %487 }
 0x2d0   :  { %v490_v40 = vmul.f32 %v488_v38, %v485_v37 }
 0x2d2   :  { %v3743_v41 = vadd.f32 %v491_v39, %v490_v40 }
 0x2d4   :  { %494 = vrot.lane.b32.xlu1 %v3743_v41, %s3502_s28 }
 0x346   :  { %v495_v6 = vpop.permute.xlu1 %494 }
 0x347   :  { %497 = vst.msk [vmem:[#allocation4] sm:$0xff] %vm393_vm3, %v495_v6  ;;  %2910 = vmatmul.mubr.msk.f32.vlgmr.msra.gmra.mrb[16].mxu1 %vm393_vm3, %v495_v6 }
 0x348   :  { %3053 = vmatpush3.bf16.msra.mxu1 %v3699_v5  ;;  %2923 = vmatprep.mubr.msk.f32.mxu1 %vm3498_vm0, %v3499_v1 }
 0x349   :  { %3057 = vmatprep.subr.bf16.mxu1 %v3497_v0 }
 0x41a   :  { %v568_v7 = vpop.f32.mrb[16].mxu1 }
 0x41b   :  { %v569_v8 = vadd.f32 %v3713_v9, %v568_v7  ;;  %v2911_v10 = vpop.f32.mrb[17].mxu1 }
 0x41d   :  { %580 = vrot.lane.b32.xlu0 %v569_v8, %s3500_s17  ;;  %v572_v12 = vadd.f32 %v569_v8, %v499_v11 }
 0x41f   :  { %v2746_v13 = vmul.f32 -1.442695, %v572_v12 }
 0x421   :  { %3143 = vpow2.f32 %v2746_v13 }
 0x42b   :  { %v3144_v14 = vpop.eup %3143 }
 0x42c   :  { %v576_v15 = vadd.f32 1.0, %v3144_v14 }
 0x42e   :  { %3145 = vrcp.f32 %v576_v15 }
 0x438   :  { %v3146_v16 = vpop.eup %3145 }
 0x439   :  { %v590_v22 = vsub.f32 1.0, %v3146_v16  ;;  %v596_v24 = vmul.f32 %v3146_v16, %v3743_v41 }
 0x48f   :  { %v581_v17 = vpop.permute.xlu0 %580 }
 0x490   :  { %v583_v18 = vmul.f32 %v3146_v16, %v581_v17 }
 0x492   :  { %585 = vrot.lane.b32.xlu1 %v583_v18, %s3501_s7 }
 0x504   :  { %v586_v19 = vpop.permute.xlu1 %585 }
 0x505   :  { %v588_v20 = vadd.f32 %v586_v19, %v499_v11  ;;  %v817_v11 = vld [vmem:[#allocation2 + $0x20] sm:$0xff] }
 0x507   :  { %3147 = vtanh.f32 %v588_v20 }
 0x511   :  { %v3148_v21 = vpop.eup %3147 }
 0x512   :  { %592 = vrot.lane.b32.xlu0 %v3148_v21, %s3502_s28 }
 0x584   :  { %v593_v23 = vpop.permute.xlu0 %592 }
 0x585   :  { %v595_v25 = vmul.f32 %v593_v23, %v590_v22 }
 0x587   :  { %v597_v26 = vadd.f32 %v596_v24, %v595_v25 }
 0x589   :  { %599 = vrot.lane.b32.xlu1 %v597_v26, %s3502_s28 }
 0x5fb   :  { %v600_v27 = vpop.permute.xlu1 %599 }
 0x5fc   :  { %603 = vst.msk [vmem:[#allocation4 + $0x8] sm:$0xff] %vm393_vm3, %v600_v27  ;;  %2917 = vmatmul.mubr.msk.f32.vlgmr.msra.gmra.mrb[2].mxu0 %vm393_vm3, %v600_v27 }
 0x5fd   :  { %3056 = vmatpush3.bf16.msra.mxu0 %v3699_v5  ;;  %2930 = vmatprep.mubr.msk.f32.mxu0 %vm3498_vm0, %v3499_v1 }
 0x5fe   :  { %3060 = vmatprep.subr.bf16.mxu0 %v3497_v0 }
 0x6cf   :  { %v674_v28 = vpop.f32.mrb[2].mxu0 }
 0x6d0   :  { %v675_v29 = vadd.f32 %v3713_v9, %v674_v28  ;;  %v2918_v30 = vpop.f32.mrb[3].mxu0 }
 0x6d2   :  { %686 = vrot.lane.b32.xlu0 %v675_v29, %s3500_s17  ;;  %v678_v32 = vadd.f32 %v675_v29, %v605_v31 }
 0x6d4   :  { %v2748_v33 = vmul.f32 -1.442695, %v678_v32 }
 0x6d6   :  { %3149 = vpow2.f32 %v2748_v33 }
 0x6e0   :  { %v3150_v34 = vpop.eup %3149 }
 0x6e1   :  { %v682_v35 = vadd.f32 1.0, %v3150_v34 }
 0x6e3   :  { %3151 = vrcp.f32 %v682_v35 }
 0x6ed   :  { %v3152_v36 = vpop.eup %3151 }
 0x6ee   :  { %v696_v42 = vsub.f32 1.0, %v3152_v36  ;;  %v702_v44 = vmul.f32 %v3152_v36, %v597_v26 }
 0x744   :  { %v687_v37 = vpop.permute.xlu0 %686 }
 0x745   :  { %v689_v38 = vmul.f32 %v3152_v36, %v687_v37 }
 0x747   :  { %691 = vrot.lane.b32.xlu1 %v689_v38, %s3501_s7 }
 0x7b9   :  { %v692_v39 = vpop.permute.xlu1 %691 }
 0x7ba   :  { %v694_v40 = vadd.f32 %v692_v39, %v605_v31  ;;  %v923_v31 = vld [vmem:[#allocation2 + $0x28] sm:$0xff] }
 0x7bc   :  { %3153 = vtanh.f32 %v694_v40 }
 0x7c6   :  { %v3154_v41 = vpop.eup %3153 }
 0x7c7   :  { %698 = vrot.lane.b32.xlu0 %v3154_v41, %s3502_s28 }
 0x839   :  { %v699_v43 = vpop.permute.xlu0 %698 }
 0x83a   :  { %v701_v45 = vmul.f32 %v699_v43, %v696_v42 }
 0x83c   :  { %v703_v46 = vadd.f32 %v702_v44, %v701_v45 }
 0x83e   :  { %705 = vrot.lane.b32.xlu1 %v703_v46, %s3502_s28 }
 0x8b0   :  { %v706_v47 = vpop.permute.xlu1 %705 }
 0x8b1   :  { %709 = vst.msk [vmem:[#allocation4 + $0x10] sm:$0xff] %vm393_vm3, %v706_v47  ;;  %2924 = vmatmul.mubr.msk.f32.vlgmr.msra.gmra.mrb[18].mxu1 %vm393_vm3, %v706_v47  ;;  %v383_v47 = vld [vmem:[#allocation12 + $0x8] sm:$0xff] }
 0x8b2   :  { %3059 = vmatpush3.bf16.msra.mxu1 %v3699_v5  ;;  %2937 = vmatprep.mubr.msk.f32.mxu1 %vm3498_vm0, %v3499_v1 }
 0x8b3   :  { %3063 = vmatprep.subr.bf16.mxu1 %v3497_v0 }
 0x984   :  { %v780_v48 = vpop.f32.mrb[18].mxu1 }
 0x985   :  { %v781_v49 = vadd.f32 %v3713_v9, %v780_v48  ;;  %v2925_v50 = vpop.f32.mrb[19].mxu1 }
 0x987   :  { %792 = vrot.lane.b32.xlu0 %v781_v49, %s3500_s17  ;;  %v784_v52 = vadd.f32 %v781_v49, %v711_v51 }
 0x989   :  { %v2750_v53 = vmul.f32 -1.442695, %v784_v52 }
 0x98b   :  { %3155 = vpow2.f32 %v2750_v53  ;;  %v3836_v53 = vld [vmem:[#allocation17] ss:$0 sm:$0xff] }
 0x995   :  { %v3156_v54 = vpop.eup %3155 }
 0x996   :  { %v788_v55 = vadd.f32 1.0, %v3156_v54 }
 0x998   :  { %3157 = vrcp.f32 %v788_v55 }
 0x9a2   :  { %v3158_v56 = vpop.eup %3157 }
 0x9a3   :  { %v802_v62 = vsub.f32 1.0, %v3158_v56  ;;  %v808_v2 = vmul.f32 %v3158_v56, %v703_v46  ;;  %v382_v46 = vld [vmem:[#allocation12] sm:$0xff] }
 0x9a4   :  { %v3822_v48 = vpack.c.bf16 %v383_v47, %v382_v46 }
 0x9f9   :  { %v793_v57 = vpop.permute.xlu0 %792 }
 0x9fa   :  { %v795_v58 = vmul.f32 %v3158_v56, %v793_v57  ;;  %v1029_v57 = vld [vmem:[#allocation2 + $0x30] sm:$0xff] }
 0x9fc   :  { %797 = vrot.lane.b32.xlu1 %v795_v58, %s3501_s7 }
 0xa6e   :  { %v798_v59 = vpop.permute.xlu1 %797 }
 0xa6f   :  { %v800_v60 = vadd.f32 %v798_v59, %v711_v51  ;;  %v1241_v59 = vld [vmem:[#allocation3 + $0x38] sm:$0xff] }
 0xa71   :  { %3159 = vtanh.f32 %v800_v60 }
 0xa7b   :  { %v3160_v61 = vpop.eup %3159 }
 0xa7c   :  { %804 = vrot.lane.b32.xlu0 %v3160_v61, %s3502_s28 }
 0xaee   :  { %v805_v63 = vpop.permute.xlu0 %804 }
 0xaef   :  { %v807_v3 = vmul.f32 %v805_v63, %v802_v62 }
 0xaf1   :  { %v809_v4 = vadd.f32 %v808_v2, %v807_v3 }
 0xaf3   :  { %811 = vrot.lane.b32.xlu1 %v809_v4, %s3502_s28 }
 0xb65   :  { %v812_v6 = vpop.permute.xlu1 %811 }
 0xb66   :  { %815 = vst.msk [vmem:[#allocation4 + $0x18] sm:$0xff] %vm393_vm3, %v812_v6  ;;  %2931 = vmatmul.mubr.msk.f32.vlgmr.msra.gmra.mrb[4].mxu0 %vm393_vm3, %v812_v6  ;;  %v3846_v6 = vld [vmem:[%s4184_s26] sm:$0xff] }
 0xb67   :  { %3062 = vmatpush3.bf16.msra.mxu0 %v3699_v5  ;;  %2944 = vmatprep.mubr.msk.f32.mxu0 %vm3498_vm0, %v3499_v1  ;;  %vm1344_vm4 = vcmp.gt.s32.totalorder %v3846_v6, 7  ;;  %vm1457_vm6 = vcmp.gt.s32.totalorder %v3846_v6, 6  ;;  %vm1570_vm8 = vcmp.gt.s32.totalorder %v3846_v6, 5  ;;  %vm1683_vm10 = vcmp.gt.s32.totalorder %v3846_v6, 4 }
 0xb68   :  { %3066 = vmatprep.subr.bf16.mxu0 %v3497_v0  ;;  %vm1796_vm12 = vcmp.gt.s32.totalorder %v3846_v6, 3  ;;  %vm1909_vm14 = vcmp.gt.s32.totalorder %v3846_v6, 2  ;;  %vm2134_vm2 = vcmp.gt.s32.totalorder %v3846_v6, 0 }
 0xc39   :  { %v886_v7 = vpop.f32.mrb[4].mxu0 }
 0xc3a   :  { %v887_v8 = vadd.f32 %v3713_v9, %v886_v7  ;;  %v2932_v10 = vpop.f32.mrb[5].mxu0 }
 0xc3c   :  { %898 = vrot.lane.b32.xlu0 %v887_v8, %s3500_s17  ;;  %v890_v12 = vadd.f32 %v887_v8, %v817_v11 }
 0xc3e   :  { %v2752_v13 = vmul.f32 -1.442695, %v890_v12 }
 0xc40   :  { %3161 = vpow2.f32 %v2752_v13 }
 0xc4a   :  { %v3162_v14 = vpop.eup %3161 }
 0xc4b   :  { %v894_v15 = vadd.f32 1.0, %v3162_v14 }
 0xc4d   :  { %3163 = vrcp.f32 %v894_v15 }
 0xc57   :  { %v3164_v16 = vpop.eup %3163 }
 0xc58   :  { %v908_v22 = vsub.f32 1.0, %v3164_v16  ;;  %v914_v24 = vmul.f32 %v3164_v16, %v809_v4  ;;  %v3503_v4 = vmov 0  }
 0xc59   :  { %3127 = vset.pattern.permute.xlu0 %v3503_v4  ;;  %3128 = vset.pattern.permute.xlu1 %v3503_v4  ;;  %v1345_v13 = vsel %vm1344_vm4, 1, %v3503_v4 }
 0xcae   :  { %v899_v17 = vpop.permute.xlu0 %898 }
 0xcaf   :  { %v901_v18 = vmul.f32 %v3164_v16, %v899_v17 }
 0xcb1   :  { %903 = vrot.lane.b32.xlu1 %v901_v18, %s3501_s7 }
 0xd23   :  { %v904_v19 = vpop.permute.xlu1 %903 }
 0xd24   :  { %v906_v20 = vadd.f32 %v904_v19, %v817_v11 }
 0xd26   :  { %3165 = vtanh.f32 %v906_v20 }
 0xd30   :  { %v3166_v21 = vpop.eup %3165 }
 0xd31   :  { %910 = vrot.lane.b32.xlu0 %v3166_v21, %s3502_s28 }
 0xda3   :  { %v911_v23 = vpop.permute.xlu0 %910 }
 0xda4   :  { %v913_v25 = vmul.f32 %v911_v23, %v908_v22 }
 0xda6   :  { %v915_v26 = vadd.f32 %v914_v24, %v913_v25 }
 0xda8   :  { %917 = vrot.lane.b32.xlu1 %v915_v26, %s3502_s28 }
 0xe1a   :  { %v918_v27 = vpop.permute.xlu1 %917 }
 0xe1b   :  { %921 = vst.msk [vmem:[#allocation4 + $0x20] sm:$0xff] %vm393_vm3, %v918_v27  ;;  %2938 = vmatmul.mubr.msk.f32.vlgmr.msra.gmra.mrb[20].mxu1 %vm393_vm3, %v918_v27 }
 0xe1c   :  { %3065 = vmatpush3.bf16.msra.mxu1 %v3699_v5  ;;  %2951 = vmatprep.mubr.msk.f32.mxu1 %vm3498_vm0, %v3499_v1 }
 0xe1d   :  { %3069 = vmatprep.subr.bf16.mxu1 %v3497_v0 }
 0xeee   :  { %v992_v28 = vpop.f32.mrb[20].mxu1 }
 0xeef   :  { %v993_v29 = vadd.f32 %v3713_v9, %v992_v28  ;;  %v2939_v30 = vpop.f32.mrb[21].mxu1 }
 0xef1   :  { %1004 = vrot.lane.b32.xlu0 %v993_v29, %s3500_s17  ;;  %v996_v32 = vadd.f32 %v993_v29, %v923_v31 }
 0xef3   :  { %v2754_v33 = vmul.f32 -1.442695, %v996_v32 }
 0xef5   :  { %3167 = vpow2.f32 %v2754_v33 }
 0xeff   :  { %v3168_v34 = vpop.eup %3167 }
 0xf00   :  { %v1000_v35 = vadd.f32 1.0, %v3168_v34 }
 0xf02   :  { %3169 = vrcp.f32 %v1000_v35 }
 0xf0c   :  { %v3170_v36 = vpop.eup %3169 }
 0xf0d   :  { %v1014_v41 = vsub.f32 1.0, %v3170_v36  ;;  %v1020_v43 = vmul.f32 %v3170_v36, %v915_v26 }
 0xf63   :  { %v1005_v5 = vpop.permute.xlu0 %1004 }
 0xf64   :  { %v1007_v37 = vmul.f32 %v3170_v36, %v1005_v5 }
 0xf66   :  { %1009 = vrot.lane.b32.xlu1 %v1007_v37, %s3501_s7 }
 0xfd8   :  { %v1010_v38 = vpop.permute.xlu1 %1009 }
 0xfd9   :  { %v1012_v39 = vadd.f32 %v1010_v38, %v923_v31 }
 0xfdb   :  { %3171 = vtanh.f32 %v1012_v39  ;;  %v1458_v39 = vsel %vm1457_vm6, 1, %v3503_v4  ;;  %vm2538_vm6 = vcmask 1042434  }
 0xfe5   :  { %v3172_v40 = vpop.eup %3171 }
 0xfe6   :  { %1016 = vrot.lane.b32.xlu0 %v3172_v40, %s3502_s28  ;;  %v1358_v40 = vld [vmem:[#allocation3 + $0x30] sm:$0xff] }
0x1058   :  { %v1017_v42 = vpop.permute.xlu0 %1016 }
0x1059   :  { %v1019_v44 = vmul.f32 %v1017_v42, %v1014_v41 }
0x105b   :  { %v3818_v45 = vadd.f32 %v1020_v43, %v1019_v44 }
0x105d   :  { %1023 = vrot.lane.b32.xlu1 %v3818_v45, %s3502_s28 }
0x10cf   :  { %v1024_v49 = vpop.permute.xlu1 %1023 }
0x10d0   :  { %1027 = vst.msk [vmem:[#allocation4 + $0x28] sm:$0xff] %vm393_vm3, %v1024_v49  ;;  %2945 = vmatmul.mubr.msk.f32.vlgmr.msra.gmra.mrb[6].mxu0 %vm393_vm3, %v1024_v49 }
0x10d1   :  { %3068 = vmatpush3.bf16.msra.mxu0 %v3822_v48  ;;  %2958 = vmatprep.mubr.msk.f32.mxu0 %vm3498_vm0, %v3499_v1 }
0x10d2   :  { %3072 = vmatprep.subr.bf16.mxu0 %v3497_v0 }
0x10d4   :  { %2959 = vmatmul.mubr.f32.vlgmr.msra.gmra.mrb[8].mxu0 %v3499_v1 }
0x10d5   :  { %3074 = vmatpush3.bf16.msra.mxu0 %v3822_v48  ;;  %2972 = vmatprep.mubr.msk.f32.mxu0 %vm3498_vm0, %v3499_v1 }
0x10d6   :  { %3078 = vmatprep.subr.bf16.mxu0 %v3497_v0 }
0x11a3   :  { %v1098_v50 = vpop.f32.mrb[6].mxu0 }
0x11a4   :  { %v1099_v51 = vadd.f32 %v3713_v9, %v1098_v50  ;;  %v2946_v52 = vpop.f32.mrb[7].mxu0 }
0x11a6   :  { %1110 = vrot.lane.b32.xlu0 %v1099_v51, %s3500_s17  ;;  %v1102_v58 = vadd.f32 %v1099_v51, %v1029_v57 }
0x11a7   :  { %v1314_v54 = vpop.f32.mrb[8].mxu0 }
0x11a8   :  { %v1315_v55 = vadd.f32 %v3836_v53, %v1314_v54  ;;  %v2960_v56 = vpop.f32.mrb[9].mxu0  ;;  %v2756_v60 = vmul.f32 -1.442695, %v1102_v58 }
0x11aa   :  { %1326 = vrot.lane.b32.xlu1 %v1315_v55, %s3500_s17  ;;  %v1318_v61 = vadd.f32 %v1315_v55, %v1241_v59  ;;  %3173 = vpow2.f32 %v2756_v60 }
0x11ac   :  { %v2760_v62 = vmul.f32 -1.442695, %v1318_v61 }
0x11ae   :  { %3175 = vpow2.f32 %v2760_v62 }
0x11b4   :  { %v3174_v9 = vpop.eup %3173 }
0x11b5   :  { %v1106_v63 = vadd.f32 1.0, %v3174_v9 }
0x11b7   :  { %3177 = vrcp.f32 %v1106_v63  ;;  %v1471_v63 = vld [vmem:[#allocation3 + $0x28] sm:$0xff] }
0x11b8   :  { %v3176_v2 = vpop.eup %3175 }
0x11b9   :  { %v1322_v3 = vadd.f32 1.0, %v3176_v2 }
0x11bb   :  { %3179 = vrcp.f32 %v1322_v3 }
0x11c1   :  { %v3178_v7 = vpop.eup %3177 }
0x11c2   :  { %v1120_v21 = vsub.f32 1.0, %v3178_v7  ;;  %v1126_v23 = vmul.f32 %v3178_v7, %v3818_v45 }
0x11c5   :  { %v3180_v11 = vpop.eup %3179 }
0x11c6   :  { %v1336_v26 = vsub.f32 1.0, %v3180_v11  ;;  %v1342_v29 = vmul.f32 0.0, %v3180_v11 }
0x1218   :  { %v1111_v8 = vpop.permute.xlu0 %1110 }
0x1219   :  { %v1113_v10 = vmul.f32 %v3178_v7, %v1111_v8 }
0x121b   :  { %1115 = vrot.lane.b32.xlu0 %v1113_v10, %s3501_s7  ;;  %v1571_v10 = vsel %vm1570_vm8, 1, %v3503_v4  ;;  %vm2542_vm8 = vcmask 1044484  }
0x121c   :  { %v1327_v12 = vpop.permute.xlu1 %1326 }
0x121d   :  { %v1329_v14 = vmul.f32 %v3180_v11, %v1327_v12 }
0x121f   :  { %1331 = vrot.lane.b32.xlu1 %v1329_v14, %s3501_s7  ;;  %1347 = vperm.xlu0 %3127, %v1345_v13  }
0x128d   :  { %v1116_v15 = vpop.permute.xlu0 %1115 }
0x128e   :  { %v1118_v16 = vadd.f32 %v1116_v15, %v1029_v57 }
0x1290   :  { %3181 = vtanh.f32 %v1118_v16 }
0x1291   :  { %v1332_v17 = vpop.permute.xlu1 %1331 }
0x1292   :  { %v1334_v18 = vadd.f32 %v1332_v17, %v1241_v59 }
0x1294   :  { %3183 = vtanh.f32 %v1334_v18 }
0x129a   :  { %v3182_v19 = vpop.eup %3181 }
0x129b   :  { %1122 = vrot.lane.b32.xlu1 %v3182_v19, %s3502_s28 }
0x129e   :  { %v3184_v20 = vpop.eup %3183  ;;  %v1348_v27 = vpop.permute.xlu0 %1347 }
0x129f   :  { %1338 = vrot.lane.b32.xlu1 %v3184_v20, %s3502_s28  ;;  %vm1349_vm5 = vcmp.eq.s32.totalorder %v1348_v27, 1 }
0x130d   :  { %v1123_v22 = vpop.permute.xlu1 %1122 }
0x130e   :  { %v1125_v24 = vmul.f32 %v1123_v22, %v1120_v21 }
0x1310   :  { %v3855_v25 = vadd.f32 %v1126_v23, %v1125_v24 }
0x1311   :  { %v1339_v28 = vpop.permute.xlu1 %1338 }
0x1312   :  { %v1341_v30 = vmul.f32 %v1339_v28, %v1336_v26  ;;  %1129 = vrot.lane.b32.xlu0 %v3855_v25, %s3502_s28 }
0x1314   :  { %v1343_v31 = vadd.f32 %v1342_v29, %v1341_v30  ;;  %v1684_v29 = vsel %vm1683_vm10, 1, %v3503_v4  ;;  %v1584_v30 = vld [vmem:[#allocation3 + $0x20] sm:$0xff]  ;;  %vm2546_vm10 = vcmask 1046534  }
0x1316   :  { %v1350_v32 = vsel %vm1349_vm5, %v1343_v31, 0.0  ;;  %vm2536_vm5 = vcmask 1041409  }
0x1317   :  { %1352 = vrot.lane.b32.xlu1 %v1350_v32, %s3502_s28 }
0x1384   :  { %v1130_v33 = vpop.permute.xlu0 %1129 }
0x1385   :  { %1133 = vst.msk [vmem:[#allocation4 + $0x30] sm:$0xff] %vm393_vm3, %v1130_v33  ;;  %2952 = vmatmul.mubr.msk.f32.vlgmr.msra.gmra.mrb[22].mxu1 %vm393_vm3, %v1130_v33 }
0x1386   :  { %3071 = vmatpush3.bf16.msra.mxu1 %v3822_v48  ;;  %2965 = vmatprep.mubr.msk.f32.mxu1 %vm3498_vm0, %v3499_v1 }
0x1387   :  { %3075 = vmatprep.subr.bf16.mxu1 %v3497_v0 }
0x1389   :  { %v1353_v34 = vpop.permute.xlu1 %1352 }
0x138a   :  { %1356 = vst.msk [vmem:[#allocation5 + $0x38] sm:$0xff] %vm393_vm3, %v1353_v34  ;;  %2966 = vmatmul.mubr.msk.f32.vlgmr.msra.gmra.mrb[24].mxu1 %vm393_vm3, %v1353_v34 }
0x138b   :  { %3077 = vmatpush3.bf16.msra.mxu1 %v3822_v48  ;;  %2979 = vmatprep.mubr.msk.f32.mxu1 %vm3498_vm0, %v3499_v1 }
0x138c   :  { %3081 = vmatprep.subr.bf16.mxu1 %v3497_v0 }
0x1458   :  { %v3872_v35 = vpop.f32.mrb[22].mxu1 }
0x1459   :  { %v2953_v36 = vpop.f32.mrb[23].mxu1 }
0x145d   :  { %v1427_v5 = vpop.f32.mrb[24].mxu1 }
0x145e   :  { %v1428_v37 = vadd.f32 %v3836_v53, %v1427_v5  ;;  %v2967_v38 = vpop.f32.mrb[25].mxu1 }
0x1460   :  { %1439 = vrot.lane.b32.xlu0 %v1428_v37, %s3500_s17  ;;  %v1431_v41 = vadd.f32 %v1428_v37, %v1358_v40 }
0x1462   :  { %v2762_v42 = vmul.f32 -1.442695, %v1431_v41 }
0x1464   :  { %1460 = vperm.xlu0 %3127, %v1458_v39   ;;  %3185 = vpow2.f32 %v2762_v42 }
0x146e   :  { %v3186_v43 = vpop.eup %3185 }
0x146f   :  { %v1435_v44 = vadd.f32 1.0, %v3186_v43 }
0x1471   :  { %3187 = vrcp.f32 %v1435_v44 }
0x147b   :  { %v3188_v45 = vpop.eup %3187 }
0x147c   :  { %v1449_v52 = vsub.f32 1.0, %v3188_v45  ;;  %v1455_v56 = vmul.f32 %v3188_v45, %v1350_v32 }
0x14d2   :  { %v1440_v46 = vpop.permute.xlu0 %1439 }
0x14d3   :  { %v1442_v47 = vmul.f32 %v3188_v45, %v1440_v46 }
0x14d5   :  { %1444 = vrot.lane.b32.xlu1 %v1442_v47, %s3501_s7 }
0x14e3   :  { %v1461_v55 = vpop.permute.xlu0 %1460 }
0x14e4   :  { %vm1462_vm7 = vcmp.eq.s32.totalorder %v1461_v55, 1 }
0x1547   :  { %v1445_v49 = vpop.permute.xlu1 %1444 }
0x1548   :  { %v1447_v50 = vadd.f32 %v1445_v49, %v1358_v40 }
0x154a   :  { %3189 = vtanh.f32 %v1447_v50 }
0x1554   :  { %v3190_v51 = vpop.eup %3189 }
0x1555   :  { %1451 = vrot.lane.b32.xlu1 %v3190_v51, %s3502_s28 }
0x15c7   :  { %v1452_v54 = vpop.permute.xlu1 %1451 }
0x15c8   :  { %v1454_v57 = vmul.f32 %v1452_v54, %v1449_v52  ;;  %v1797_v52 = vsel %vm1796_vm12, 1, %v3503_v4  ;;  %v1697_v54 = vld [vmem:[#allocation3 + $0x18] sm:$0xff] }
0x15ca   :  { %v1456_v58 = vadd.f32 %v1455_v56, %v1454_v57 }
0x15cc   :  { %v1463_v59 = vsel %vm1462_vm7, %v1456_v58, %v1350_v32  ;;  %vm2540_vm7 = vcmask 1043459  }
0x15cd   :  { %1465 = vrot.lane.b32.xlu0 %v1463_v59, %s3502_s28 }
0x163f   :  { %v1466_v60 = vpop.permute.xlu0 %1465 }
0x1640   :  { %1469 = vst.msk [vmem:[#allocation5 + $0x30] sm:$0xff] %vm393_vm3, %v1466_v60  ;;  %2973 = vmatmul.mubr.msk.f32.vlgmr.msra.gmra.mrb[10].mxu0 %vm393_vm3, %v1466_v60 }
0x1641   :  { %3080 = vmatpush3.bf16.msra.mxu0 %v3822_v48  ;;  %2986 = vmatprep.mubr.msk.f32.mxu0 %vm3498_vm0, %v3499_v1 }
0x1642   :  { %3084 = vmatprep.subr.bf16.mxu0 %v3497_v0 }
0x1713   :  { %v1540_v61 = vpop.f32.mrb[10].mxu0 }
0x1714   :  { %v1541_v62 = vadd.f32 %v3836_v53, %v1540_v61  ;;  %v2974_v9 = vpop.f32.mrb[11].mxu0 }
0x1716   :  { %1552 = vrot.lane.b32.xlu1 %v1541_v62, %s3500_s17  ;;  %v1544_v2 = vadd.f32 %v1541_v62, %v1471_v63 }
0x1718   :  { %v2764_v3 = vmul.f32 -1.442695, %v1544_v2 }
0x171a   :  { %3191 = vpow2.f32 %v2764_v3  ;;  %1573 = vperm.xlu1 %3128, %v1571_v10  }
0x1724   :  { %v3192_v7 = vpop.eup %3191 }
0x1725   :  { %v1548_v8 = vadd.f32 1.0, %v3192_v7 }
0x1727   :  { %3193 = vrcp.f32 %v1548_v8 }
0x1731   :  { %v3194_v11 = vpop.eup %3193 }
0x1732   :  { %v1562_v17 = vsub.f32 1.0, %v3194_v11  ;;  %v1568_v20 = vmul.f32 %v3194_v11, %v1463_v59 }
0x1788   :  { %v1553_v12 = vpop.permute.xlu1 %1552 }
0x1789   :  { %v1555_v13 = vmul.f32 %v3194_v11, %v1553_v12 }
0x178b   :  { %1557 = vrot.lane.b32.xlu0 %v1555_v13, %s3501_s7 }
0x1799   :  { %v1574_v18 = vpop.permute.xlu1 %1573 }
0x179a   :  { %vm1575_vm9 = vcmp.eq.s32.totalorder %v1574_v18, 1  ;;  %v1810_v18 = vld [vmem:[#allocation3 + $0x10] sm:$0xff] }
0x17fd   :  { %v1558_v14 = vpop.permute.xlu0 %1557 }
0x17fe   :  { %v1560_v15 = vadd.f32 %v1558_v14, %v1471_v63 }
0x1800   :  { %3195 = vtanh.f32 %v1560_v15 }
0x180a   :  { %v3196_v16 = vpop.eup %3195 }
0x180b   :  { %1564 = vrot.lane.b32.xlu0 %v3196_v16, %s3502_s28 }
0x187d   :  { %v1565_v19 = vpop.permute.xlu0 %1564 }
0x187e   :  { %v1567_v21 = vmul.f32 %v1565_v19, %v1562_v17  ;;  %v1910_v17 = vsel %vm1909_vm14, 1, %v3503_v4 }
0x1880   :  { %v1569_v22 = vadd.f32 %v1568_v20, %v1567_v21 }
0x1882   :  { %v1576_v23 = vsel %vm1575_vm9, %v1569_v22, %v1463_v59  ;;  %vm2544_vm9 = vcmask 1045509  }
0x1883   :  { %1578 = vrot.lane.b32.xlu1 %v1576_v23, %s3502_s28 }
0x18f5   :  { %v1579_v24 = vpop.permute.xlu1 %1578 }
0x18f6   :  { %1582 = vst.msk [vmem:[#allocation5 + $0x28] sm:$0xff] %vm393_vm3, %v1579_v24  ;;  %2980 = vmatmul.mubr.msk.f32.vlgmr.msra.gmra.mrb[26].mxu1 %vm393_vm3, %v1579_v24 }
0x18f7   :  { %3083 = vmatpush3.bf16.msra.mxu1 %v3822_v48  ;;  %2993 = vmatprep.mubr.msk.f32.mxu1 %vm3498_vm0, %v3499_v1 }
0x18f8   :  { %3087 = vmatprep.subr.bf16.mxu1 %v3497_v0 }
0x19c9   :  { %v1653_v26 = vpop.f32.mrb[26].mxu1 }
0x19ca   :  { %v1654_v27 = vadd.f32 %v3836_v53, %v1653_v26  ;;  %v2981_v28 = vpop.f32.mrb[27].mxu1 }
0x19cc   :  { %1665 = vrot.lane.b32.xlu0 %v1654_v27, %s3500_s17  ;;  %v1657_v31 = vadd.f32 %v1654_v27, %v1584_v30 }
0x19ce   :  { %v2766_v32 = vmul.f32 -1.442695, %v1657_v31 }
0x19d0   :  { %1686 = vperm.xlu0 %3127, %v1684_v29   ;;  %3197 = vpow2.f32 %v2766_v32 }
0x19da   :  { %v3198_v33 = vpop.eup %3197 }
0x19db   :  { %v1661_v34 = vadd.f32 1.0, %v3198_v33 }
0x19dd   :  { %3199 = vrcp.f32 %v1661_v34 }
0x19e7   :  { %v3200_v36 = vpop.eup %3199 }
0x19e8   :  { %v1675_v40 = vsub.f32 1.0, %v3200_v36  ;;  %v1681_v43 = vmul.f32 %v3200_v36, %v1576_v23 }
0x1a3e   :  { %v1666_v0 = vpop.permute.xlu0 %1665 }
0x1a3f   :  { %v1668_v5 = vmul.f32 %v3200_v36, %v1666_v0 }
0x1a41   :  { %1670 = vrot.lane.b32.xlu1 %v1668_v5, %s3501_s7 }
0x1a4f   :  { %v1687_v42 = vpop.permute.xlu0 %1686 }
0x1a50   :  { %vm1688_vm11 = vcmp.eq.s32.totalorder %v1687_v42, 1 }
0x1ab3   :  { %v1671_v37 = vpop.permute.xlu1 %1670 }
0x1ab4   :  { %v1673_v38 = vadd.f32 %v1671_v37, %v1584_v30 }
0x1ab6   :  { %3201 = vtanh.f32 %v1673_v38 }
0x1ac0   :  { %v3202_v39 = vpop.eup %3201 }
0x1ac1   :  { %1677 = vrot.lane.b32.xlu1 %v3202_v39, %s3502_s28  ;;  %v1923_v39 = vld [vmem:[#allocation3 + $0x8] sm:$0xff] }
0x1b33   :  { %v1678_v41 = vpop.permute.xlu1 %1677 }
0x1b34   :  { %v1680_v44 = vmul.f32 %v1678_v41, %v1675_v40 }
0x1b36   :  { %v1682_v45 = vadd.f32 %v1681_v43, %v1680_v44 }
0x1b38   :  { %v1689_v46 = vsel %vm1688_vm11, %v1682_v45, %v1576_v23  ;;  %vm2548_vm11 = vcmask 1047559  }
0x1b39   :  { %1691 = vrot.lane.b32.xlu0 %v1689_v46, %s3502_s28 }
0x1bab   :  { %v1692_v47 = vpop.permute.xlu0 %1691 }
0x1bac   :  { %1695 = vst.msk [vmem:[#allocation5 + $0x20] sm:$0xff] %vm393_vm3, %v1692_v47  ;;  %2987 = vmatmul.mubr.msk.f32.vlgmr.msra.gmra.mrb[12].mxu0 %vm393_vm3, %v1692_v47 }
0x1bad   :  { %3086 = vmatpush3.bf16.msra.mxu0 %v3822_v48  ;;  %3000 = vmatprep.mubr.msk.f32.mxu0 %vm3498_vm0, %v3499_v1 }
0x1c7f   :  { %v1766_v49 = vpop.f32.mrb[12].mxu0 }
0x1c80   :  { %v1767_v50 = vadd.f32 %v3836_v53, %v1766_v49  ;;  %v2988_v51 = vpop.f32.mrb[13].mxu0 }
0x1c82   :  { %1778 = vrot.lane.b32.xlu1 %v1767_v50, %s3500_s17  ;;  %v1770_v55 = vadd.f32 %v1767_v50, %v1697_v54 }
0x1c84   :  { %v2768_v56 = vmul.f32 -1.442695, %v1770_v55 }
0x1c86   :  { %1799 = vperm.xlu1 %3128, %v1797_v52   ;;  %3203 = vpow2.f32 %v2768_v56 }
0x1c90   :  { %v3204_v57 = vpop.eup %3203 }
0x1c91   :  { %v1774_v58 = vadd.f32 1.0, %v3204_v57 }
0x1c93   :  { %3205 = vrcp.f32 %v1774_v58 }
0x1c9d   :  { %v3206_v59 = vpop.eup %3205 }
0x1c9e   :  { %v1788_v2 = vsub.f32 1.0, %v3206_v59  ;;  %v1794_v8 = vmul.f32 %v3206_v59, %v1689_v46 }
0x1cf4   :  { %v1779_v60 = vpop.permute.xlu1 %1778 }
0x1cf5   :  { %v1781_v61 = vmul.f32 %v3206_v59, %v1779_v60  ;;  %v3253_v59 = vld [vmem:[#allocation15] ss:$0 sm:$0xff] }
0x1cf6   :  { %v1205_v60 = vadd.f32 %v3253_v59, %v3872_v35 }
0x1cf7   :  { %1783 = vrot.lane.b32.xlu0 %v1781_v61, %s3501_s7  ;;  %v1135_v61 = vld [vmem:[#allocation2 + $0x38] sm:$0xff] }
0x1d05   :  { %v1800_v7 = vpop.permute.xlu1 %1799 }
0x1d06   :  { %vm1801_vm13 = vcmp.eq.s32.totalorder %v1800_v7, 1 }
0x1d69   :  { %v1784_v62 = vpop.permute.xlu0 %1783 }
0x1d6a   :  { %v1786_v9 = vadd.f32 %v1784_v62, %v1697_v54  ;;  %v1208_v62 = vadd.f32 %v1205_v60, %v1135_v61 }
0x1d6c   :  { %3207 = vtanh.f32 %v1786_v9  ;;  %v2758_v9 = vmul.f32 -1.442695, %v1208_v62 }
0x1d76   :  { %v3208_v63 = vpop.eup %3207 }
0x1d77   :  { %1790 = vrot.lane.b32.xlu0 %v3208_v63, %s3502_s28 }
0x1de9   :  { %v1791_v3 = vpop.permute.xlu0 %1790 }
0x1dea   :  { %v1793_v10 = vmul.f32 %v1791_v3, %v1788_v2 }
0x1dec   :  { %v1795_v11 = vadd.f32 %v1794_v8, %v1793_v10 }
0x1dee   :  { %v1802_v12 = vsel %vm1801_vm13, %v1795_v11, %v1689_v46  ;;  %vm2552_vm13 = vcmask 64512  }
0x1def   :  { %1804 = vrot.lane.b32.xlu1 %v1802_v12, %s3502_s28 }
0x1e61   :  { %v1805_v13 = vpop.permute.xlu1 %1804 }
0x1e62   :  { %1808 = vst.msk [vmem:[#allocation5 + $0x18] sm:$0xff] %vm393_vm3, %v1805_v13  ;;  %2994 = vmatmul.mubr.msk.f32.vlgmr.msra.gmra.mrb[28].mxu1 %vm393_vm3, %v1805_v13  ;;  %v2035_v13 = vld [vmem:[#allocation3] sm:$0xff] }
0x1e63   :  { %3089 = vmatpush3.bf16.msra.mxu1 %v3822_v48  ;;  %3007 = vmatprep.mubr.msk.f32.mxu1 %vm3498_vm0, %v3499_v1  ;;  %vm2022_vm0 = vcmp.gt.s32.totalorder %v3846_v6, 1 }
0x1e64   :  { %v2023_v38 = vsel %vm2022_vm0, 1, %v3503_v4 }
0x1f35   :  { %v1879_v14 = vpop.f32.mrb[28].mxu1 }
0x1f36   :  { %v1880_v15 = vadd.f32 %v3836_v53, %v1879_v14  ;;  %v2995_v16 = vpop.f32.mrb[29].mxu1 }
0x1f38   :  { %1891 = vrot.lane.b32.xlu0 %v1880_v15, %s3500_s17  ;;  %v1883_v19 = vadd.f32 %v1880_v15, %v1810_v18 }
0x1f3a   :  { %v2770_v20 = vmul.f32 -1.442695, %v1883_v19 }
0x1f3c   :  { %1912 = vperm.xlu0 %3127, %v1910_v17   ;;  %3209 = vpow2.f32 %v2770_v20 }
0x1f46   :  { %v3210_v21 = vpop.eup %3209 }
0x1f47   :  { %v1887_v48 = vadd.f32 1.0, %v3210_v21 }
0x1f49   :  { %3211 = vrcp.f32 %v1887_v48 }
0x1f53   :  { %v3212_v22 = vpop.eup %3211 }
0x1f54   :  { %v1901_v28 = vsub.f32 1.0, %v3212_v22  ;;  %v1907_v31 = vmul.f32 %v3212_v22, %v1802_v12 }
0x1faa   :  { %v1892_v1 = vpop.permute.xlu0 %1891 }
0x1fab   :  { %v1894_v23 = vmul.f32 %v3212_v22, %v1892_v1 }
0x1fad   :  { %1896 = vrot.lane.b32.xlu1 %v1894_v23, %s3501_s7 }
0x1fbb   :  { %v1913_v30 = vpop.permute.xlu0 %1912 }
0x1fbc   :  { %vm1914_vm15 = vcmp.eq.s32.totalorder %v1913_v30, 1 }
0x201f   :  { %v1897_v24 = vpop.permute.xlu1 %1896 }
0x2020   :  { %v1899_v26 = vadd.f32 %v1897_v24, %v1810_v18 }
0x2022   :  { %3213 = vtanh.f32 %v1899_v26 }
0x202c   :  { %v3214_v27 = vpop.eup %3213 }
0x202d   :  { %1903 = vrot.lane.b32.xlu1 %v3214_v27, %s3502_s28 }
0x209f   :  { %v1904_v29 = vpop.permute.xlu1 %1903 }
0x20a0   :  { %v1906_v32 = vmul.f32 %v1904_v29, %v1901_v28 }
0x20a2   :  { %v1908_v33 = vadd.f32 %v1907_v31, %v1906_v32  ;;  %v2165_v31 = vld [vmem:[%s4170_s12 + $0x8] sm:$0xff] }
0x20a4   :  { %v1915_v34 = vsel %vm1914_vm15, %v1908_v33, %v1802_v12 }
0x20a5   :  { %1917 = vrot.lane.b32.xlu0 %v1915_v34, %s3502_s28 }
0x2117   :  { %v1918_v36 = vpop.permute.xlu0 %1917 }
0x2118   :  { %1921 = vst.msk [vmem:[#allocation5 + $0x10] sm:$0xff] %vm393_vm3, %v1918_v36  ;;  %3001 = vmatmul.mubr.msk.f32.vlgmr.msra.gmra.mrb[14].mxu0 %vm393_vm3, %v1918_v36 }
0x21eb   :  { %v1992_v0 = vpop.f32.mrb[14].mxu0 }
0x21ec   :  { %v1993_v5 = vadd.f32 %v3836_v53, %v1992_v0  ;;  %v3002_v37 = vpop.f32.mrb[15].mxu0  ;;  %v2162_v0 = vld [vmem:[%s4169_s11] sm:$0xff] }
0x21ee   :  { %2004 = vrot.lane.b32.xlu1 %v1993_v5, %s3500_s17  ;;  %v1996_v40 = vadd.f32 %v1993_v5, %v1923_v39  ;;  %v2163_v5 = vld [vmem:[%s4169_s11 + $0x8] sm:$0xff] }
0x21ef   :  { %v3094_v37 = vpack.c.bf16 %v2163_v5, %v2162_v0  ;;  %v2487_v5 = vlaneseq }
0x21f0   :  { %v2772_v41 = vmul.f32 -1.442695, %v1996_v40 }
0x21f2   :  { %2025 = vperm.xlu1 %3128, %v2023_v38   ;;  %3215 = vpow2.f32 %v2772_v41 }
0x21fc   :  { %v3216_v42 = vpop.eup %3215 }
0x21fd   :  { %v2000_v43 = vadd.f32 1.0, %v3216_v42 }
0x21ff   :  { %3217 = vrcp.f32 %v2000_v43 }
0x2209   :  { %v3218_v44 = vpop.eup %3217 }
0x220a   :  { %v2014_v51 = vsub.f32 1.0, %v3218_v44  ;;  %v2020_v55 = vmul.f32 %v3218_v44, %v1915_v34 }
0x2260   :  { %v2005_v45 = vpop.permute.xlu1 %2004 }
0x2261   :  { %v2007_v46 = vmul.f32 %v3218_v44, %v2005_v45  ;;  %v3982_v44 = vld [vmem:[#allocation5 + $0x10] sm:$0xff]  ;;  %v3986_v45 = vld [vmem:[#allocation5 + $0x18] sm:$0xff] }
0x2263   :  { %2009 = vrot.lane.b32.xlu0 %v2007_v46, %s3501_s7  ;;  %v3990_v46 = vld [vmem:[#allocation5 + $0x20] sm:$0xff] }
0x2271   :  { %v2026_v54 = vpop.permute.xlu1 %2025 }
0x2272   :  { %vm2027_vm1 = vcmp.eq.s32.totalorder %v2026_v54, 1  ;;  %v4014_v54 = vld [vmem:[#allocation4 + $0x10] sm:$0xff] }
0x22d5   :  { %v2010_v47 = vpop.permute.xlu0 %2009 }
0x22d6   :  { %v2012_v49 = vadd.f32 %v2010_v47, %v1923_v39  ;;  %v3994_v47 = vld [vmem:[#allocation5 + $0x28] sm:$0xff] }
0x22d8   :  { %3219 = vtanh.f32 %v2012_v49  ;;  %v3998_v49 = vld [vmem:[#allocation5 + $0x30] sm:$0xff] }
0x22d9   :  { %3221 = vpow2.f32 %v2758_v9 }
0x22e2   :  { %v3220_v50 = vpop.eup %3219 }
0x22e3   :  { %2016 = vrot.lane.b32.xlu0 %v3220_v50, %s3502_s28  ;;  %v3222_v63 = vpop.eup %3221  ;;  %v4002_v50 = vld [vmem:[#allocation5 + $0x38] sm:$0xff] }
0x22e4   :  { %v1212_v2 = vadd.f32 1.0, %v3222_v63 }
0x22e6   :  { %3223 = vrcp.f32 %v1212_v2 }
0x22f0   :  { %v3224_v7 = vpop.eup %3223 }
0x22f1   :  { %v1226_v27 = vsub.f32 1.0, %v3224_v7  ;;  %v1232_v29 = vmul.f32 %v3224_v7, %v3855_v25 }
0x2355   :  { %v2017_v52 = vpop.permute.xlu0 %2016 }
0x2356   :  { %v2019_v56 = vmul.f32 %v2017_v52, %v2014_v51  ;;  %v4006_v51 = vld [vmem:[#allocation4] sm:$0xff]  ;;  %v4010_v52 = vld [vmem:[#allocation4 + $0x8] sm:$0xff] }
0x2358   :  { %v2021_v57 = vadd.f32 %v2020_v55, %v2019_v56  ;;  %v4018_v55 = vld [vmem:[#allocation4 + $0x18] sm:$0xff]  ;;  %v4022_v56 = vld [vmem:[#allocation4 + $0x20] sm:$0xff] }
0x235a   :  { %v3939_v58 = vsel %vm2027_vm1, %v2021_v57, %v1915_v34  ;;  %v4026_v57 = vld [vmem:[#allocation4 + $0x28] sm:$0xff] }
0x235b   :  { %2030 = vrot.lane.b32.xlu1 %v3939_v58, %s3502_s28 }
0x235f   :  { %1216 = vrot.lane.b32.xlu1 %v1205_v60, %s3500_s17  ;;  %v2791_v60 = vld [vmem:[%s4171_s13] ss:$0 sm:$0xff] }
0x23cd   :  { %v2031_v3 = vpop.permute.xlu1 %2030 }
0x23ce   :  { %2034 = vst.msk [vmem:[#allocation5 + $0x8] sm:$0xff] %vm393_vm3, %v2031_v3  ;;  %3008 = vmatmul.mubr.msk.f32.vlgmr.msra.gmra.mrb[30].mxu1 %vm393_vm3, %v2031_v3 }
0x23d1   :  { %v1217_v8 = vpop.permute.xlu1 %1216 }
0x23d2   :  { %v1219_v10 = vmul.f32 %v3224_v7, %v1217_v8 }
0x23d4   :  { %1221 = vrot.lane.b32.xlu1 %v1219_v10, %s3501_s7 }
0x23d5   :  { %v3978_v43 = vld [vmem:[#allocation5 + $0x8] sm:$0xff] }
0x2446   :  { %v1222_v18 = vpop.permute.xlu1 %1221 }
0x2447   :  { %v1224_v19 = vadd.f32 %v1222_v18, %v1135_v61 }
0x24a1   :  { %v2104_v35 = vpop.f32.mrb[30].mxu1 }
0x24a2   :  { %v2105_v11 = vadd.f32 %v3836_v53, %v2104_v35  ;;  %v3009_v12 = vpop.f32.mrb[31].mxu1  ;;  %v2135_v53 = vsel %vm2134_vm2, 1, %v3503_v4  ;;  %v2164_v4 = vld [vmem:[%s4170_s12] sm:$0xff] }
0x24a3   :  { %v3090_v32 = vpack.c.bf16 %v2165_v31, %v2164_v4 }
0x24a4   :  { %2116 = vrot.lane.b32.xlu0 %v2105_v11, %s3500_s17  ;;  %v2108_v14 = vadd.f32 %v2105_v11, %v2035_v13 }
0x24a5   :  { %3091 = vmatprep.subr.bf16.mxu0 %v3090_v32 }
0x24a6   :  { %v2774_v15 = vmul.f32 -1.442695, %v2108_v14  ;;  %3093 = vmatpush3.bf16.msra.mxu0 %v3090_v32 }
0x24a7   :  { %3095 = vmatprep.subr.bf16.mxu0 %v3094_v37 }
0x24a8   :  { %3225 = vpow2.f32 %v2774_v15 }
0x24b2   :  { %v3226_v16 = vpop.eup %3225 }
0x24b3   :  { %v2112_v17 = vadd.f32 1.0, %v3226_v16 }
0x24b5   :  { %3227 = vrcp.f32 %v2112_v17 }
0x24b6   :  { %3229 = vtanh.f32 %v1224_v19 }
0x24bf   :  { %v3228_v20 = vpop.eup %3227 }
0x24c0   :  { %v3230_v22 = vpop.eup %3229  ;;  %v2126_v33 = vsub.f32 1.0, %v3228_v20  ;;  %v2132_v36 = vmul.f32 %v3228_v20, %v3939_v58 }
0x2516   :  { %v2117_v21 = vpop.permute.xlu0 %2116 }
0x2517   :  { %v2119_v48 = vmul.f32 %v3228_v20, %v2117_v21 }
0x2519   :  { %2121 = vrot.lane.b32.xlu0 %v2119_v48, %s3501_s7 }
0x251d   :  { %2137 = vperm.xlu0 %3127, %v2135_v53  }
0x2521   :  { %1228 = vrot.lane.b32.xlu0 %v3230_v22, %s3502_s28 }
0x258b   :  { %v2122_v1 = vpop.permute.xlu0 %2121 }
0x258c   :  { %v2124_v23 = vadd.f32 %v2122_v1, %v2035_v13  ;;  %v2792_v13 = vld [vmem:[%s4172_s14] ss:$0 sm:$0xff] }
0x258e   :  { %3231 = vtanh.f32 %v2124_v23 }
0x2598   :  { %v3232_v24 = vpop.eup %3231 }
0x2599   :  { %2128 = vrot.lane.b32.xlu1 %v3232_v24, %s3502_s28 }
0x259c   :  { %v2138_v26 = vpop.permute.xlu0 %2137 }
0x259d   :  { %vm2139_vm4 = vcmp.eq.s32.totalorder %v2138_v26, 1 }
0x25a0   :  { %v1229_v28 = vpop.permute.xlu0 %1228 }
0x25a1   :  { %v1231_v6 = vmul.f32 %v1229_v28, %v1226_v27 }
0x25a3   :  { %v1233_v30 = vadd.f32 %v1232_v29, %v1231_v6 }
0x25a5   :  { %1235 = vrot.lane.b32.xlu0 %v1233_v30, %s3502_s28 }
0x260b   :  { %v2129_v34 = vpop.permute.xlu1 %2128 }
0x260c   :  { %v2131_v25 = vmul.f32 %v2129_v34, %v2126_v33 }
0x260e   :  { %v2133_v38 = vadd.f32 %v2132_v36, %v2131_v25 }
0x2610   :  { %v2140_v39 = vsel %vm2139_vm4, %v2133_v38, %v3939_v58  ;;  %v4030_v58 = vld [vmem:[#allocation4 + $0x30] sm:$0xff]  ;;  %v2503_v38 = vand.u32 127, %v2487_v5 }
0x2611   :  { %2142 = vrot.lane.b32.xlu1 %v2140_v39, %s3502_s28 }
0x2617   :  { %v1236_v40 = vpop.permute.xlu0 %1235 }
0x2618   :  { %1239 = vst.msk [vmem:[#allocation4 + $0x38] sm:$0xff] %vm393_vm3, %v1236_v40 }
0x261f   :  { %v4034_v59 = vld [vmem:[#allocation4 + $0x38] sm:$0xff] }
0x2683   :  { %v2143_v41 = vpop.permute.xlu1 %2142 }
0x2684   :  { %2145 = vst.msk [vmem:[#allocation5] sm:$0xff] %vm393_vm3, %v2143_v41 }
0x268b   :  { %v3974_v42 = vld [vmem:[#allocation5] sm:$0xff] }
0x268c   :  { %3014 = vmatprep.mubr.msk.f32.mxu0 %vm393_vm3, %v3974_v42 }
0x268d   :  { %3015 = vmatmul.mubr.msk.f32.vlgmr.msra.gmra.mrb[16].mxu0 %vm393_vm3, %v3978_v43 }
0x268e   :  { %3097 = vmatpush3.bf16.msra.mxu0 %v3094_v37  ;;  %3017 = vmatprep.mubr.msk.f32.mxu0 %vm393_vm3, %v3982_v44  ;;  %v4052_v37 = vshrl.u32 %v2487_v5, 7 }
0x2690   :  { %v2506_v39 = vsub.s32 %v2503_v38, %v4052_v37  ;;  %v2585_v5 = vsub.s32 1, %v4052_v37  ;;  %v2578_v38 = vsub.s32 0, %v4052_v37 }
0x2691   :  { %3018 = vmatmul.mubr.msk.f32.gmra.mrb[18].mxu0 %vm393_vm3, %v3986_v45 }
0x2692   :  { %3020 = vmatprep.mubr.msk.f32.mxu0 %vm393_vm3, %v3990_v46 }
0x2695   :  { %3021 = vmatmul.mubr.msk.f32.gmra.mrb[20].mxu0 %vm393_vm3, %v3994_v47 }
0x2696   :  { %3023 = vmatprep.mubr.msk.f32.mxu0 %vm393_vm3, %v3998_v49 }
0x2699   :  { %3024 = vmatmul.mubr.msk.f32.gmra.mrb[22].mxu0 %vm393_vm3, %v4002_v50 }
0x269a   :  { %3030 = vmatprep.mubr.msk.f32.mxu0 %vm393_vm3, %v4006_v51 }
0x269d   :  { %3031 = vmatmul.mubr.msk.f32.vlgmr.msra.gmra.mrb[16].mxu0 %vm393_vm3, %v4010_v52 }
0x269e   :  { %3033 = vmatprep.mubr.msk.f32.mxu0 %vm393_vm3, %v4014_v54 }
0x26a1   :  { %3034 = vmatmul.mubr.msk.f32.gmra.mrb[18].mxu0 %vm393_vm3, %v4018_v55 }
0x26a2   :  { %3036 = vmatprep.mubr.msk.f32.mxu0 %vm393_vm3, %v4022_v56 }
0x26a5   :  { %3037 = vmatmul.mubr.msk.f32.gmra.mrb[20].mxu0 %vm393_vm3, %v4026_v57 }
0x26a6   :  { %3039 = vmatprep.mubr.msk.f32.mxu0 %vm393_vm3, %v4030_v58 }
0x26a9   :  { %3040 = vmatmul.mubr.msk.f32.gmra.mrb[22].mxu0 %vm393_vm3, %v4034_v59 }
0x2770   :  { %v3032_v61 = vpop.f32.mrb[16].mxu0 }
0x2771   :  { %v2432_v62 = vadd.f32 %v3032_v61, %v2791_v60  ;;  %v2385_v9 = vpop.f32.mrb[17].mxu0 }
0x2772   :  { %v2431_v63 = vadd.f32 %v2791_v60, %v2385_v9 }
0x2773   :  { %3233 = vtanh.f32 %v2432_v62 }
0x2774   :  { %3235 = vtanh.f32 %v2431_v63  ;;  %v3035_v2 = vpop.f32.mrb[18].mxu0 }
0x2775   :  { %v2434_v3 = vadd.f32 %v3035_v2, %v2791_v60  ;;  %v2395_v7 = vpop.f32.mrb[19].mxu0 }
0x2776   :  { %v2433_v8 = vadd.f32 %v2791_v60, %v2395_v7 }
0x2777   :  { %3237 = vtanh.f32 %v2434_v3 }
0x2778   :  { %3239 = vtanh.f32 %v2433_v8  ;;  %v3038_v10 = vpop.f32.mrb[20].mxu0 }
0x2779   :  { %v2436_v35 = vadd.f32 %v3038_v10, %v2791_v60  ;;  %v2405_v11 = vpop.f32.mrb[21].mxu0 }
0x277a   :  { %v2435_v12 = vadd.f32 %v2791_v60, %v2405_v11 }
0x277b   :  { %3241 = vtanh.f32 %v2436_v35 }
0x277c   :  { %3243 = vtanh.f32 %v2435_v12  ;;  %v3041_v14 = vpop.f32.mrb[22].mxu0 }
0x277d   :  { %v3234_v15 = vpop.eup %3233  ;;  %v2438_v16 = vadd.f32 %v3041_v14, %v2791_v60  ;;  %v2415_v17 = vpop.f32.mrb[23].mxu0  ;;  %v2793_v14 = vld [vmem:[%s4160_s2] ss:$0 sm:$0xff]  ;;  %s3504_s2 = smov [#allocation19]  }
0x277e   :  { %v3236_v18 = vpop.eup %3235  ;;  %v2437_v19 = vadd.f32 %v2791_v60, %v2415_v17  ;;  %v2455_v20 = vmul.f32 %v3234_v15, %v2792_v13  ;;  %vm2493_vm12 = vcmp.lt.s32.totalorder %v4052_v37, %v2793_v14  ;;  %s2696_s8 = sshll.u32 %s3504_s2, 4  ;;  %s2697_s8 = int_to_ptr.vmem [resolvable:$true] %s2696_s8 }
0x277f   :  { %3245 = vtanh.f32 %v2438_v16  ;;  %v2454_v21 = vmul.f32 %v3236_v18, %v2792_v13  ;;  %s3408_s9 = scalar_lea.vmem %s2697_s8, 128  ;;  %p3413_p1 = scmp.lt.s32.totalorder %s2697_s8, %s2697_s8 }
0x2780   :  { %3247 = vtanh.f32 %v2437_v19  ;;  %v2465_v48 = vsel %vm393_vm3, %v2455_v20, 0.0  ;;  %p3409_p0 = scmp.ne.s32.totalorder %s2697_s8, %s3408_s9  ;;  %p3414_p2 = scmp.lt.s32.totalorder %s3408_s9, %s3408_s9 }
0x2781   :  { %v3238_v53 = vpop.eup %3237  ;;  %2466 = vadd.xlane.f32.xlu0 %v2465_v48  ;;  %v2462_v22 = vsel %vm393_vm3, %v2454_v21, 0.0 }
0x2782   :  { %v3240_v1 = vpop.eup %3239  ;;  %2463 = vadd.xlane.f32.xlu1 %v2462_v22  ;;  %v2457_v23 = vmul.f32 %v3238_v53, %v2792_v13  ;;  %p3415_p3 = por %p3414_p2, %p3413_p1 }
0x2783   :  { %v2456_v24 = vmul.f32 %v3240_v1, %v2792_v13 }
0x2784   :  { %v2471_v26 = vsel %vm393_vm3, %v2457_v23, 0.0  ;;  %p3416_p4 = pnand %p3415_p3, %p3409_p0 }
0x2785   :  { %v3242_v27 = vpop.eup %3241  ;;  %v2468_v28 = vsel %vm393_vm3, %v2456_v24, 0.0 }
0x2786   :  { %v3244_v29 = vpop.eup %3243  ;;  %2472 = vadd.xlane.f32.xlu1 %v2471_v26  ;;  %2469 = vadd.xlane.f32.xlu0 %v2468_v28  ;;  %v2459_v6 = vmul.f32 %v3242_v27, %v2792_v13 }
0x2787   :  { %v2458_v30 = vmul.f32 %v3244_v29, %v2792_v13 }
0x2788   :  { %v2477_v4 = vsel %vm393_vm3, %v2459_v6, 0.0 }
0x2789   :  { %v3246_v31 = vpop.eup %3245  ;;  %v2474_v32 = vsel %vm393_vm3, %v2458_v30, 0.0 }
0x278a   :  { %v3248_v33 = vpop.eup %3247  ;;  %2478 = vadd.xlane.f32.xlu1 %v2477_v4  ;;  %2475 = vadd.xlane.f32.xlu0 %v2474_v32  ;;  %v2461_v34 = vmul.f32 %v3246_v31, %v2792_v13 }
0x278b   :  { %v2460_v36 = vmul.f32 %v3248_v33, %v2792_v13 }
0x278c   :  { %v2483_v25 = vsel %vm393_vm3, %v2461_v34, 0.0 }
0x278d   :  { %v2480_v0 = vsel %vm393_vm3, %v2460_v36, 0.0 }
0x278e   :  { %2484 = vadd.xlane.f32.xlu1 %v2483_v25  ;;  %2481 = vadd.xlane.f32.xlu0 %v2480_v0 }
0x280e   :  { %v2467_v40 = vpop.xlane.xlu0 %2466 }
0x280f   :  { %v2464_v41 = vpop.xlane.xlu1 %2463  ;;  %v2511_v60 = vrot.slane %v2467_v40, %v2506_v39 }
0x2810   :  { %v2507_v61 = vrot.slane %v2464_v41, %v2506_v39 }
0x2812   :  { %v2537_v2 = vsel %vm2536_vm5, %v2511_v60, %v2507_v61  ;;  %v2592_v61 = vsub.s32 2, %v4052_v37 }
0x2813   :  { %v2473_v62 = vpop.xlane.xlu1 %2472  ;;  %v2470_v9 = vpop.xlane.xlu0 %2469 }
0x2814   :  { %v2515_v63 = vrot.slane %v2470_v9, %v2506_v39  ;;  %v2519_v3 = vrot.slane %v2473_v62, %v2506_v39  ;;  %v2599_v62 = vsub.s32 3, %v4052_v37 }
0x2816   :  { %v2539_v7 = vsel %vm2538_vm6, %v2515_v63, %v2537_v2  ;;  %v2606_v2 = vsub.s32 4, %v4052_v37 }
0x2817   :  { %v2479_v8 = vpop.xlane.xlu1 %2478  ;;  %v2476_v10 = vpop.xlane.xlu0 %2475  ;;  %v2541_v12 = vsel %vm2540_vm7, %v2519_v3, %v2539_v7  ;;  %v2613_v3 = vsub.s32 5, %v4052_v37 }
0x2818   :  { %v2523_v35 = vrot.slane %v2476_v10, %v2506_v39  ;;  %v2527_v11 = vrot.slane %v2479_v8, %v2506_v39  ;;  %v2620_v10 = vsub.s32 6, %v4052_v37 }
0x281a   :  { %v2543_v13 = vsel %vm2542_vm8, %v2523_v35, %v2541_v12  ;;  %v2627_v35 = vsub.s32 7, %v4052_v37 }
0x281b   :  { %v2485_v15 = vpop.xlane.xlu1 %2484  ;;  %v2482_v16 = vpop.xlane.xlu0 %2481  ;;  %v2545_v19 = vsel %vm2544_vm9, %v2527_v11, %v2543_v13 }
0x281c   :  { %v2535_v17 = vrot.slane %v2485_v15, %v2506_v39  ;;  %v2531_v18 = vrot.slane %v2482_v16, %v2506_v39 }
0x281e   :  { %v2547_v20 = vsel %vm2546_vm10, %v2531_v18, %v2545_v19 }
0x281f   :  { %v2549_v21 = vsel %vm2548_vm11, %v2535_v17, %v2547_v20 }
0x2820   :  { %v2551_v48 = vsel %vm2493_vm12, %v2549_v21, -1e+30 }
0x2821   :  { %v2553_v53 = vsel %vm2552_vm13, %v2551_v48, -inf }
0x2822   :  { %v2554_v22 = vrot.slane %v2553_v53, 4 }
0x2824   :  { %v2555_v1 = vmax.f32 %v2553_v53, %v2554_v22 }
0x2826   :  { %v2556_v23 = vrot.slane %v2555_v1, 2 }
0x2828   :  { %v2557_v24 = vmax.f32 %v2555_v1, %v2556_v23 }
0x282a   :  { %v2558_v26 = vrot.slane %v2557_v24, 1 }
0x282c   :  { %v2559_v27 = vmax.f32 %v2557_v24, %v2558_v26 }
0x282e   :  { %v2560_v28 = vsub.f32 %v2551_v48, %v2559_v27 }
0x2830   :  { %v2561_v29 = vmul.f32 1.442695, %v2560_v28 }
0x2832   :  { %3249 = vpow2.f32 %v2561_v29 }
0x283c   :  { %v3250_v6 = vpop.eup %3249 }
0x283d   :  { %v2563_v30 = vsel %vm2493_vm12, %v3250_v6, 0.0 }
0x283e   :  { %v2564_v4 = vsel %vm2552_vm13, %v2563_v30, 0.0 }
0x283f   :  { %v2565_v31 = vrot.slane %v2564_v4, 4 }
0x2841   :  { %v2566_v32 = vadd.f32 %v2565_v31, %v2564_v4 }
0x2843   :  { %v2567_v33 = vrot.slane %v2566_v32, 2 }
0x2845   :  { %v2568_v34 = vadd.f32 %v2567_v33, %v2566_v32 }
0x2847   :  { %v2569_v36 = vrot.slane %v2568_v34, 1 }
0x2849   :  { %v2570_v25 = vadd.f32 %v2569_v36, %v2568_v34 }
0x284b   :  { %vm2571_vm14 = vcmp.gt.f32.partialorder %v2570_v25, 0.0 }
0x284c   :  { %v2572_v0 = vsel %vm2571_vm14, %v2570_v25, 1.0 }
0x284d   :  { %3251 = vrcp.f32 %v2572_v0 }
0x2857   :  { %v3252_v39 = vpop.eup %3251 }
0x2858   :  { %v2574_v40 = vmul.f32 %v3252_v39, %v2563_v30 }
0x285a   :  { %2575 = vst.msk [vmem:[#allocation21] sm:$0xff] %vm2552_vm13, %v2574_v40  ;;  %v2586_v41 = vrot.slane %v2574_v40, %v2585_v5  ;;  %v2579_v60 = vrot.slane %v2574_v40, %v2578_v38  ;;  %v2593_v9 = vrot.slane %v2574_v40, %v2592_v61  ;;  %v2600_v63 = vrot.slane %v2574_v40, %v2599_v62 }
0x285b   :  { %v2607_v7 = vrot.slane %v2574_v40, %v2606_v2  ;;  %v2614_v8 = vrot.slane %v2574_v40, %v2613_v3  ;;  %v2621_v11 = vrot.slane %v2574_v40, %v2620_v10  ;;  %v2628_v12 = vrot.slane %v2574_v40, %v2627_v35 }
0x285c   :  { %2588 = vbcast.lane.b32.xlu1 %v2586_v41, 256  ;;  %2581 = vbcast.lane.b32.xlu0 %v2579_v60, 256 }
0x2860   :  { %2595 = vbcast.lane.b32.xlu1 %v2593_v9, 256  ;;  %2602 = vbcast.lane.b32.xlu0 %v2600_v63, 256 }
0x2864   :  { %2609 = vbcast.lane.b32.xlu1 %v2607_v7, 256  ;;  %2616 = vbcast.lane.b32.xlu0 %v2614_v8, 256 }
0x2868   :  { %2623 = vbcast.lane.b32.xlu1 %v2621_v11, 256  ;;  %2630 = vbcast.lane.b32.xlu0 %v2628_v12, 256 }
0x28ce   :  { %v2589_v13 = vpop.permute.xlu1 %2588  ;;  %v2582_v14 = vpop.permute.xlu0 %2581 }
0x28cf   :  { %v2633_v15 = vmul.f32 %v2589_v13, %v4010_v52  ;;  %v2657_v16 = vmul.f32 %v2589_v13, %v3978_v43  ;;  %v2632_v17 = vmul.f32 %v2582_v14, %v4006_v51  ;;  %v2656_v18 = vmul.f32 %v2582_v14, %v3974_v42 }
0x28d1   :  { %v2641_v19 = vsel %vm393_vm3, %v2633_v15, 0.0  ;;  %v2665_v37 = vsel %vm393_vm3, %v2657_v16, 0.0  ;;  %v2640_v20 = vsel %vm393_vm3, %v2632_v17, 0.0  ;;  %v2664_v21 = vsel %vm393_vm3, %v2656_v18, 0.0 }
0x28d2   :  { %v2596_v48 = vpop.permute.xlu1 %2595  ;;  %v2603_v53 = vpop.permute.xlu0 %2602  ;;  %v2642_v1 = vadd.f32 %v2641_v19, %v2640_v20  ;;  %v2666_v42 = vadd.f32 %v2665_v37, %v2664_v21 }
0x28d3   :  { %v2634_v22 = vmul.f32 %v2596_v48, %v4014_v54  ;;  %v2658_v52 = vmul.f32 %v2596_v48, %v3982_v44  ;;  %v2635_v43 = vmul.f32 %v2603_v53, %v4018_v55  ;;  %v2659_v51 = vmul.f32 %v2603_v53, %v3986_v45 }
0x28d5   :  { %v2643_v23 = vsel %vm393_vm3, %v2634_v22, 0.0  ;;  %v2667_v24 = vsel %vm393_vm3, %v2658_v52, 0.0  ;;  %v2645_v28 = vsel %vm393_vm3, %v2635_v43, 0.0  ;;  %v2669_v29 = vsel %vm393_vm3, %v2659_v51, 0.0 }
0x28d6   :  { %v2644_v26 = vadd.f32 %v2643_v23, %v2642_v1  ;;  %v2668_v27 = vadd.f32 %v2667_v24, %v2666_v42  ;;  %v2610_v6 = vpop.permute.xlu1 %2609  ;;  %v2617_v54 = vpop.permute.xlu0 %2616 }
0x28d7   :  { %v2636_v44 = vmul.f32 %v2610_v6, %v4022_v56  ;;  %v2660_v55 = vmul.f32 %v2610_v6, %v3990_v46  ;;  %v2637_v45 = vmul.f32 %v2617_v54, %v4026_v57  ;;  %v2661_v30 = vmul.f32 %v2617_v54, %v3994_v47 }
0x28d8   :  { %v2646_v4 = vadd.f32 %v2645_v28, %v2644_v26  ;;  %v2670_v31 = vadd.f32 %v2669_v29, %v2668_v27 }
0x28d9   :  { %v2647_v32 = vsel %vm393_vm3, %v2636_v44, 0.0  ;;  %v2671_v33 = vsel %vm393_vm3, %v2660_v55, 0.0  ;;  %v2649_v25 = vsel %vm393_vm3, %v2637_v45, 0.0  ;;  %v2673_v0 = vsel %vm393_vm3, %v2661_v30, 0.0 }
0x28da   :  { %v2648_v34 = vadd.f32 %v2647_v32, %v2646_v4  ;;  %v2672_v36 = vadd.f32 %v2671_v33, %v2670_v31  ;;  %v2624_v5 = vpop.permute.xlu1 %2623  ;;  %v2631_v56 = vpop.permute.xlu0 %2630 }
0x28db   :  { %v2638_v46 = vmul.f32 %v2624_v5, %v4030_v58  ;;  %v2662_v57 = vmul.f32 %v2624_v5, %v3998_v49  ;;  %v2639_v47 = vmul.f32 %v2631_v56, %v4034_v59  ;;  %v2663_v38 = vmul.f32 %v2631_v56, %v4002_v50 }
0x28dc   :  { %v2650_v39 = vadd.f32 %v2649_v25, %v2648_v34  ;;  %v2674_v40 = vadd.f32 %v2673_v0, %v2672_v36 }
0x28dd   :  { %v2651_v41 = vsel %vm393_vm3, %v2638_v46, 0.0  ;;  %v2675_v60 = vsel %vm393_vm3, %v2662_v57, 0.0  ;;  %v2653_v58 = vsel %vm393_vm3, %v2639_v47, 0.0  ;;  %v2677_v49 = vsel %vm393_vm3, %v2663_v38, 0.0 }
0x28de   :  { %v2652_v61 = vadd.f32 %v2651_v41, %v2650_v39  ;;  %v2676_v62 = vadd.f32 %v2675_v60, %v2674_v40 }
0x28e0   :  { %v2654_v59 = vadd.f32 %v2653_v58, %v2652_v61  ;;  %v2678_v50 = vadd.f32 %v2677_v49, %v2676_v62 }
0x28e2   :  { %2655 = vst.msk [vmem:[#allocation18] sm:$0xff] %vm393_vm3, %v2654_v59  ;;  %2679 = vst.msk [vmem:[#allocation19] sm:$0xff] %vm393_vm3, %v2678_v50 }
0x28e3   :  { %3419 = shalt.err (!%p3416_p4)
}
0x28e4   :  { %s3420_s17 = scalar_lea.hbm %s4174_s16, 128 }
0x28e5   :  { %p3421_p5 = scmp.ne.s32.totalorder %s4174_s16, %s3420_s17  ;;  %p3424_p6 = scmp.lt.u32.totalorder %s3420_s17, %s4174_s16 }
0x28e7   :  { %p3426_p7 = pnand %p3424_p6, %p3421_p5 }
0x28e9   :  { %3429 = shalt.err (!%p3426_p7)
}
0x28ea   :  { %2699 = dma.vmem_to_hbm [thread:$0]  %s2697_s8, 128, %s4174_s16, [#allocation20]  }
0x28eb   :  { %s3430_s30 = scalar_lea.vmem %s4106_s25, 128  ;;  %p3435_p9 = scmp.lt.s32.totalorder %s4106_s25, %s4106_s25 }
0x28ec   :  { %p3431_p8 = scmp.ne.s32.totalorder %s4106_s25, %s3430_s30  ;;  %p3436_p10 = scmp.lt.s32.totalorder %s3430_s30, %s3430_s30 }
0x28ee   :  { %p3437_p11 = por %p3436_p10, %p3435_p9 }
0x28f0   :  { %p3438_p12 = pnand %p3437_p11, %p3431_p8 }
0x28f2   :  { %3441 = shalt.err (!%p3438_p12)
}
0x28f3   :  { %s3442_s20 = scalar_lea.hbm %s4173_s15, 128 }
0x28f4   :  { %p3443_p13 = scmp.ne.s32.totalorder %s4173_s15, %s3442_s20  ;;  %p3446_p0 = scmp.lt.u32.totalorder %s3442_s20, %s4173_s15 }
0x28f6   :  { %p3448_p1 = pnand %p3446_p0, %p3443_p13 }
0x28f8   :  { %3451 = shalt.err (!%p3448_p1)
}
0x28f9   :  { %2689 = dma.vmem_to_hbm [thread:$0]  %s4106_s25, 128, %s4173_s15, [#allocation8]  }
0x28fa   :  { %s3452_s27 = scalar_lea.vmem %s4110_s10, 128  ;;  %p3457_p3 = scmp.lt.s32.totalorder %s4110_s10, %s4110_s10 }
0x28fb   :  { %p3453_p2 = scmp.ne.s32.totalorder %s4110_s10, %s3452_s27  ;;  %p3458_p4 = scmp.lt.s32.totalorder %s3452_s27, %s3452_s27 }
0x28fd   :  { %p3459_p5 = por %p3458_p4, %p3457_p3 }
0x28ff   :  { %p3460_p6 = pnand %p3459_p5, %p3453_p2 }
0x2901   :  { %3463 = shalt.err (!%p3460_p6)
}
0x2902   :  { %s4185_s14 = sld [smem:[#allocation30_spill]] }
0x2908   :  { %s3464_s2 = scalar_lea.hbm %s4185_s14, 128 }
0x2909   :  { %p3465_p7 = scmp.ne.s32.totalorder %s4185_s14, %s3464_s2  ;;  %p3468_p8 = scmp.lt.u32.totalorder %s3464_s2, %s4185_s14 }
0x290b   :  { %p3470_p9 = pnand %p3468_p8, %p3465_p7 }
0x290d   :  { %3473 = shalt.err (!%p3470_p9)
}
0x290e   :  { %2709 = dma.vmem_to_hbm [thread:$0]  %s4110_s10, 128, %s4185_s14, [#allocation20]  }
0x290f   :  { %3482 = dma.done.wait [#allocation8], 128  }
0x2910   :  { %3483 = vsyncadd [#allocation8], 4294967168 }
0x2911   :  { %3484 = dma.done.wait [#allocation20], 256  }
0x2912   :  { %3485 = vsyncadd [#allocation20], 4294967040 }
0x2913   :  { %2719 = vsyncpa [#allocation7], 1 }
0x2914   :  { %2720 = vsyncpa [#allocation10], 1 }
0x2915   :  { %2721 = vsyncpa [#allocation13], 1 }
0x2916   :  { %2722 = vsyncpa [#allocation16], 1 }
0x2917   :  { %2723 = vsyncpa [#allocation8], 1 }
0x2918   :  { %2724 = vsyncpa [#allocation20], 1 }

</bundles_post_ra>
